<compile_context>
chip_gen: v7x
topology: tpu7x:2x2x1
jax: 0.10.0
libtpu: 0.0.40
codegen_flags: <defaults>
</compile_context>

<pallas_src>
import jax
import jax.numpy as jnp
from jax import lax
from jax.experimental import pallas as pl
from jax.experimental.pallas import tpu as pltpu


VIEWS = ("user", "app", "userlog")
N_EMB = 100
N_CUT = 16
FEAT = N_EMB + 2 * N_CUT          # 132
DENSE_HIDDEN = 128                # inner width of the Dense module
NEG_INF = -1e30
VMEM_LIMIT = 64 * 1024 * 1024     # safe on v5e/v6e (128 MiB) and v7x (64 MiB)


def _round_up(x, m):
    return (x + m - 1) // m * m


def _gelu(v):
    # GeLU exactly as in the PyTorch module
    return 0.5 * v * (1.0 + jnp.tanh(v * 0.7978845608 * (1.0 + 0.044715 * v * v)))


def _sigmoid(v):
    # sigma(v) = 0.5*(tanh(v/2)+1): exact, runs on the EUP, no vdiv in the loop
    return 0.5 * (jnp.tanh(0.5 * v) + 1.0)


# --------------------------------------------------------------------------
# Kernel A: per-view GRU sequence encoder (fused gates, pre-projected input)
# --------------------------------------------------------------------------
def view_encoder_kernel(
    xp_ref,                                   # (T*Bb, 3H) bf16, x@W_i + b_i, row = t*Bb + b
    lens_ref,                                 # (Bb, 1)    int32
    whh_ref,                                  # (H, 3H)    bf16 fused recurrent weights [r|z|n]
    bh3_ref,                                  # (1, 3H)    f32  fused recurrent biases  [r|z|n]
    wp1_ref,                                  # (H, H)     bf16 attention proj 1 (no bias)
    wp2_ref,                                  # (1, H)     f32  attention proj 2 as a row
    wd1_ref, bd1_ref, wd2_ref, bd2_ref,       # per-view Dense(H->128, GeLU, ->H)
    hid_ref,                                  # (Bb, H)    f32 output
    rnn_scr,                                  # (T*Bb, H)  f32 scratch (all GRU outputs)
    sc_scr,                                   # (T*Bb, 1)  f32 scratch (attention scores)
):
    TB = xp_ref.shape[0]
    Bb, H = hid_ref.shape
    T = TB // Bb

    whh = whh_ref[...]                        # bf16, loaded once
    bh3 = bh3_ref[...]
    bhr = bh3[:, 0:H]
    bhz = bh3[:, H:2 * H]
    bhn = bh3[:, 2 * H:3 * H]

    # (1) serial GRU: single fused (Bb,H)@(H,3H) recurrent matmul per step;
    #     pre-projected input read straight from the bf16 input slab.
    def gru_step(t, h):
        row = pl.multiple_of(t * Bb, Bb)
        x = xp_ref[pl.ds(row, Bb), :].astype(jnp.float32)           # (Bb, 3H), b_i included
        gh = jnp.dot(h.astype(jnp.bfloat16), whh,
                     preferred_element_type=jnp.float32)            # (Bb, 3H)
        r = _sigmoid(x[:, 0:H] + gh[:, 0:H] + bhr)
        z = _sigmoid(x[:, H:2 * H] + gh[:, H:2 * H] + bhz)
        n = jnp.tanh(x[:, 2 * H:3 * H] + r * (gh[:, 2 * H:3 * H] + bhn))  # b_hn inside r*(.)
        h_new = (1.0 - z) * n + z * h
        rnn_scr[pl.ds(row, Bb), :] = h_new
        return h_new

    lax.fori_loop(0, T, gru_step, jnp.zeros((Bb, H), jnp.float32), unroll=True)

    # (2) attention scores in one batched pass over all T*Bb rows.
    p = jnp.tanh(jnp.dot(rnn_scr[...].astype(jnp.bfloat16), wp1_ref[...],
                         preferred_element_type=jnp.float32))
    sc_scr[...] = jnp.sum(p * wp2_ref[...], axis=-1, keepdims=True)

    # (3) length-masked online-softmax pooling: single unrolled T-trip pass.
    lens = lens_ref[...]                                             # (Bb, 1) int32

    def pool_step(t, carry):
        m, d, acc = carry
        row = pl.multiple_of(t * Bb, Bb)
        s_t = sc_scr[pl.ds(row, Bb), :]
        valid = t < lens
        s_m = jnp.where(valid, s_t, NEG_INF)
        m_new = jnp.maximum(m, s_m)
        alpha = jnp.exp(m - m_new)
        pw = jnp.where(valid, jnp.exp(s_m - m_new), 0.0)
        d_new = d * alpha + pw
        acc_new = acc * alpha + pw * rnn_scr[pl.ds(row, Bb), :]
        return m_new, d_new, acc_new

    m0 = jnp.full((Bb, 1), NEG_INF, jnp.float32)
    d0 = jnp.zeros((Bb, 1), jnp.float32)
    a0 = jnp.zeros((Bb, H), jnp.float32)
    _, denom, acc = lax.fori_loop(0, T, pool_step, (m0, d0, a0), unroll=True)
    pooled = acc * pl.reciprocal(jnp.maximum(denom, 1e-20), approx=True)   # len==0 guard

    # (4) per-view Dense(H->128, GeLU, ->H)
    mid = _gelu(jnp.dot(pooled.astype(jnp.bfloat16), wd1_ref[...],
                        preferred_element_type=jnp.float32) + bd1_ref[...])
    hid_ref[...] = jnp.dot(mid.astype(jnp.bfloat16), wd2_ref[...],
                           preferred_element_type=jnp.float32) + bd2_ref[...]


# --------------------------------------------------------------------------
# Kernel B: multi-view fusion head (attention pools, decoders, losses, heads)
# --------------------------------------------------------------------------
def fusion_head_kernel(
    hv_ref,       # (3, Bb, H) per-view hiddens (user, app, userlog)
    vm_ref,       # (3, Bb, 1) 3-view mask (already get_3view_mask'ed), {0,1}
    valid_ref,    # (Bb, 1)    1.0 for real rows, 0.0 for batch padding
    labs_ref,     # (4, Bb, 1) int32
    wa1_ref, wa2_ref,                               # attention_pool1
    wb1_ref, wb2_ref,                               # attention_pool2
    wdec1_ref, bdec1_ref, wdec2_ref, bdec2_ref,     # decoders: fused L1 (H,384), stacked L2
    wf1_ref, bf1_ref, wf2_ref, bf2_ref,             # final Dense(H->H)
    wh1_ref, bh1_ref, wh2_ref, bh2_ref,             # fused heads (H,512),(1,512),(512,8),(1,8)
    lrows_ref,    # (Bb, 8)  per-row loss terms: [rebuild, ce1..ce4, 0, 0, 0]
    y_ref,        # (Bb, 8)  lane-dense [y1|y2|y3|y4]
    hid_ref,      # (Bb, H)  v_final
    gen_ref,      # (3, Bb, H) generated per-view hiddens
):
    _, Bb, H = hv_ref.shape
    valid = valid_ref[...]
    hv = [hv_ref[i] for i in range(3)]
    vm = [vm_ref[i] for i in range(3)]

    def dense1(x, w_ref, b_ref):
        return jnp.dot(x.astype(jnp.bfloat16), w_ref[...],
                       preferred_element_type=jnp.float32) + b_ref[...]

    def mlp_attention_pool(keys, w1_ref, w2_ref, masks):
        # one stacked (3Bb,H)@(H,H) score matmul instead of three
        flat = jnp.concatenate(keys, axis=0)                          # (3Bb, H)
        p = jnp.tanh(jnp.dot(flat.astype(jnp.bfloat16), w1_ref[...],
                             preferred_element_type=jnp.float32))
        s_all = jnp.sum(p * w2_ref[...], axis=-1, keepdims=True)      # (3Bb, 1)
        scores = [s_all[v * Bb:(v + 1) * Bb, :] for v in range(3)]
        if masks is not None:
            scores = [jnp.where(masks[v] > 0.0, scores[v], NEG_INF) for v in range(3)]
        m = jnp.maximum(jnp.maximum(scores[0], scores[1]), scores[2])
        es = [jnp.exp(s - m) for s in scores]
        if masks is not None:
            es = [jnp.where(masks[v] > 0.0, es[v], 0.0) for v in range(3)]
        inv = pl.reciprocal(jnp.maximum(es[0] + es[1] + es[2], 1e-20), approx=True)
        return (es[0] * inv) * keys[0] + (es[1] * inv) * keys[1] + (es[2] * inv) * keys[2]

    # masked attention over the 3 encoder views
    hidden = mlp_attention_pool(hv, wa1_ref, wa2_ref, vm)             # (Bb, H)

    # decoders: fused first layer (Bb,H)@(H,384), 128-aligned lane splits
    mid_all = _gelu(dense1(hidden, wdec1_ref, bdec1_ref))             # (Bb, 384)
    gens = []
    reb_rows = jnp.zeros((Bb, 1), jnp.float32)
    for i in range(3):
        mid_i = mid_all[:, i * DENSE_HIDDEN:(i + 1) * DENSE_HIDDEN]
        g = jnp.dot(mid_i.astype(jnp.bfloat16), wdec2_ref[i],
                    preferred_element_type=jnp.float32) + bdec2_ref[i]
        gen_ref[i] = g
        gens.append(g)
        d = hv[i] - g
        # per-row rebuild contribution; torch .mean() over (B,H) -> /H here, /B in JAX
        reb_rows = reb_rows + jnp.sum(d * d * vm[i], axis=1, keepdims=True) * (1.0 / H)

    # unmasked attention over generated views, residual, final Dense(H->H)
    hidden_gen = mlp_attention_pool(gens, wb1_ref, wb2_ref, None)
    mid_f = _gelu(dense1(hidden + hidden_gen, wf1_ref, bf1_ref))
    hid_final = jnp.dot(mid_f.astype(jnp.bfloat16), wf2_ref[...],
                        preferred_element_type=jnp.float32) + bf2_ref[...]
    hid_ref[...] = hid_final

    # 4 heads fused: one (H,512) matmul, GeLU, one block-diagonal (512,8) matmul
    mid_h = _gelu(dense1(hid_final, wh1_ref, bh1_ref))                # (Bb, 512)
    y_all = jnp.dot(mid_h.astype(jnp.bfloat16), wh2_ref[...],
                    preferred_element_type=jnp.float32) + bh2_ref[...]
    y_ref[...] = y_all

    # per-head cross entropy rows (masked by batch validity)
    lrows_ref[...] = jnp.zeros((Bb, 8), jnp.float32)
    lrows_ref[:, 0:1] = reb_rows
    cls = lax.broadcasted_iota(jnp.int32, (Bb, 2), 1)
    for i in range(4):
        yi = y_all[:, 2 * i:2 * i + 2]                                # (Bb, 2)
        onehot = (cls == labs_ref[i]).astype(jnp.float32)
        ymax = jnp.max(yi, axis=1, keepdims=True)
        lse = jnp.log(jnp.sum(jnp.exp(yi - ymax), axis=1, keepdims=True)) + ymax
        picked = jnp.sum(onehot * yi, axis=1, keepdims=True)
        lrows_ref[:, i + 1:i + 2] = (lse - picked) * valid


# --------------------------------------------------------------------------
# Parameters / glue
# --------------------------------------------------------------------------
def init_params(key, vocab=50, hidden=32):
    H = hidden
    keys = iter(jax.random.split(key, 128))

    def nrm(shape, scale=0.1):
        return (scale * jax.random.normal(next(keys), shape)).astype(jnp.float32)

    def view_params():
        return dict(
            emb=nrm((vocab, N_EMB), 1.0),
            cut_time_emb=nrm((64, N_CUT), 1.0),
            qcut_time_emb=nrm((64, N_CUT), 1.0),   # defined but unused (matches the source quirk)
            wir=nrm((FEAT, H)), wiz=nrm((FEAT, H)), win=nrm((FEAT, H)),
            bir=nrm((1, H)), biz=nrm((1, H)), bin=nrm((1, H)),
            whr=nrm((H, H)), whz=nrm((H, H)), whn=nrm((H, H)),
            bhr=nrm((1, H)), bhz=nrm((1, H)), bhn=nrm((1, H)),
            wp1=nrm((H, H)), wp2=nrm((1, H)),
            wd1=nrm((H, DENSE_HIDDEN)), bd1=nrm((1, DENSE_HIDDEN)),
            wd2=nrm((DENSE_HIDDEN, H)), bd2=nrm((1, H)),
        )

    fusion = dict(
        wa1=nrm((H, H)), wa2=nrm((1, H)),
        wb1=nrm((H, H)), wb2=nrm((1, H)),
        wdec1=nrm((3, H, DENSE_HIDDEN)), bdec1=nrm((3, 1, DENSE_HIDDEN)),
        wdec2=nrm((3, DENSE_HIDDEN, H)), bdec2=nrm((3, 1, H)),
        wf1=nrm((H, DENSE_HIDDEN)), bf1=nrm((1, DENSE_HIDDEN)),
        wf2=nrm((DENSE_HIDDEN, H)), bf2=nrm((1, H)),
        head_w1=nrm((4, H, DENSE_HIDDEN)), head_b1=nrm((4, 1, DENSE_HIDDEN)),
        head_w2=nrm((4, DENSE_HIDDEN, 2)), head_b2=nrm((4, 1, 2)),
    )
    return dict(views={v: view_params() for v in VIEWS}, fusion=fusion)


def get_3view_mask(view_mask):
    vm = view_mask.astype(jnp.float32)
    c0 = vm[:, 0]
    c1 = (vm[:, 1] + vm[:, 2] >= 1.0).astype(jnp.float32)
    c2 = vm[:, -1]
    return jnp.stack([c0, c1, c2], axis=0)[..., None]           # (3, B, 1)


def multiview_forward(params, input_dict):
    H = params["fusion"]["wa1"].shape[0]
    G3 = 3 * H
    B = input_dict["labels1"].shape[0]
    T = input_dict["user_ids"].shape[1]

    # Batch tile: multiple of 16 (bf16 sublane tile) capped at 128.
    # TODO(synk): per-generation tuning — raise the cap to 256 on v6e, keep <=128 on v7x.
    Bb = min(_round_up(B, 16), 128)
    Bp = _round_up(B, Bb)              # padded batch
    nb = Bp // Bb
    pad = Bp - B

    def pad_rows(x):
        if pad == 0:
            return x
        return jnp.pad(x, [(0, pad)] + [(0, 0)] * (x.ndim - 1))

    # ---- per-view: fold W_i{r,z,n}+b_i into the embedding tables, gather+add,
    #      time-major batch tiling (plain JAX glue) -> pre-projected bf16 slabs.
    xps, lens = [], []
    for v in VIEWS:
        pv = params["views"][v]
        wi = jnp.concatenate([pv["wir"], pv["wiz"], pv["win"]], axis=1)   # (FEAT, 3H)
        bi = jnp.concatenate([pv["bir"], pv["biz"], pv["bin"]], axis=1)   # (1, 3H)
        emb_p = pv["emb"] @ wi[:N_EMB] + bi                               # (vocab, 3H)
        cut_p = pv["cut_time_emb"] @ wi[N_EMB:N_EMB + N_CUT]              # (64, 3H)
        # TODO(synk): qcut uses cut_time_emb (qcut_time_emb unused) matching the source quirk.
        qcut_p = pv["cut_time_emb"] @ wi[N_EMB + N_CUT:]                  # (64, 3H)
        ids = pad_rows(input_dict[f"{v}_ids"])
        tc = pad_rows(input_dict[f"{v}_time_cut"])
        tq = pad_rows(input_dict[f"{v}_time_qcut"])
        ln = pad_rows(input_dict[f"{v}_len"].astype(jnp.int32))           # padded rows -> len 0
        xp = emb_p[ids] + cut_p[tc] + qcut_p[tq]                          # (Bp, T, 3H) f32
        # (Bp,T,3H) -> (nb, T*Bb, 3H), rows t-major inside each batch tile
        xp = xp.reshape(nb, Bb, T, G3).transpose(0, 2, 1, 3).reshape(nb, T * Bb, G3)
        xps.append(xp.astype(jnp.bfloat16))
        lens.append(ln.reshape(nb, Bb, 1))
    xp_all = jnp.stack(xps)                                               # (3, nb, T*Bb, 3H) bf16
    lens_all = jnp.stack(lens)                                            # (3, nb, Bb, 1)   i32

    def sv(fn, dtype=None):
        a = jnp.stack([fn(params["views"][v]) for v in VIEWS])
        return a.astype(dtype) if dtype is not None else a

    whh = sv(lambda p: jnp.concatenate([p["whr"], p["whz"], p["whn"]], axis=1), jnp.bfloat16)
    bh3 = sv(lambda p: jnp.concatenate([p["bhr"], p["bhz"], p["bhn"]], axis=1))
    wp1 = sv(lambda p: p["wp1"], jnp.bfloat16)
    wp2 = sv(lambda p: p["wp2"])
    wd1 = sv(lambda p: p["wd1"], jnp.bfloat16)
    bd1 = sv(lambda p: p["bd1"])
    wd2 = sv(lambda p: p["wd2"], jnp.bfloat16)
    bd2 = sv(lambda p: p["bd2"])

    def wspec(d1, d2):       # per-view weight arrays (3, d1, d2), not blocked over batch
        return pl.BlockSpec((None, d1, d2), lambda v, j: (v, 0, 0))

    enc_in_specs = [
        pl.BlockSpec((None, None, T * Bb, G3), lambda v, j: (v, j, 0, 0)),
        pl.BlockSpec((None, None, Bb, 1), lambda v, j: (v, j, 0, 0)),
        wspec(H, G3), wspec(1, G3),
        wspec(H, H), wspec(1, H),
        wspec(H, DENSE_HIDDEN), wspec(1, DENSE_HIDDEN),
        wspec(DENSE_HIDDEN, H), wspec(1, H),
    ]

    hidden_views = pl.pallas_call(
        view_encoder_kernel,
        out_shape=jax.ShapeDtypeStruct((3, nb, Bb, H), jnp.float32),
        grid=(3, nb),
        in_specs=enc_in_specs,
        out_specs=pl.BlockSpec((None, None, Bb, H), lambda v, j: (v, j, 0, 0)),
        scratch_shapes=[
            pltpu.VMEM((T * Bb, H), jnp.float32),   # all GRU outputs
            pltpu.VMEM((T * Bb, 1), jnp.float32),   # attention scores
        ],
        compiler_params=pltpu.CompilerParams(
            dimension_semantics=("parallel", "parallel"),
            vmem_limit_bytes=VMEM_LIMIT),
    )(xp_all, lens_all, whh, bh3, wp1, wp2, wd1, bd1, wd2, bd2)

    hidden_views = hidden_views.reshape(3, Bp, H)

    # ---- fusion head glue
    f = params["fusion"]
    vm3 = jnp.pad(get_3view_mask(input_dict["view_mask"]), ((0, 0), (0, pad), (0, 0)))
    valid = jnp.concatenate(
        [jnp.ones((B, 1), jnp.float32), jnp.zeros((pad, 1), jnp.float32)], axis=0)
    labs = jnp.stack([input_dict["labels1"], input_dict["labels2"],
                      input_dict["labels3"], input_dict["labels4"]]).astype(jnp.int32)
    labs = jnp.pad(labs, ((0, 0), (0, pad)))[..., None]                   # (4, Bp, 1)

    wdec1c = jnp.concatenate([f["wdec1"][i] for i in range(3)], axis=1).astype(jnp.bfloat16)
    bdec1c = f["bdec1"].reshape(1, 3 * DENSE_HIDDEN)
    wh1 = jnp.concatenate([f["head_w1"][i] for i in range(4)], axis=1).astype(jnp.bfloat16)
    bh1 = f["head_b1"].reshape(1, 4 * DENSE_HIDDEN)
    wh2 = jnp.zeros((4 * DENSE_HIDDEN, 8), jnp.float32)
    for i in range(4):
        wh2 = wh2.at[i * DENSE_HIDDEN:(i + 1) * DENSE_HIDDEN, 2 * i:2 * i + 2].set(
            f["head_w2"][i])
    wh2 = wh2.astype(jnp.bfloat16)
    bh2 = f["head_b2"].reshape(1, 8)

    nb2 = Bp // Bb

    def cspec(shape):        # full-array weight block, constant index map
        n = len(shape)
        return pl.BlockSpec(shape, lambda j, _n=n: (0,) * _n)

    fus_in_specs = [
        pl.BlockSpec((3, Bb, H), lambda j: (0, j, 0)),
        pl.BlockSpec((3, Bb, 1), lambda j: (0, j, 0)),
        pl.BlockSpec((Bb, 1), lambda j: (j, 0)),
        pl.BlockSpec((4, Bb, 1), lambda j: (0, j, 0)),
        cspec((H, H)), cspec((1, H)), cspec((H, H)), cspec((1, H)),
        cspec((H, 3 * DENSE_HIDDEN)), cspec((1, 3 * DENSE_HIDDEN)),
        cspec((3, DENSE_HIDDEN, H)), cspec((3, 1, H)),
        cspec((H, DENSE_HIDDEN)), cspec((1, DENSE_HIDDEN)),
        cspec((DENSE_HIDDEN, H)), cspec((1, H)),
        cspec((H, 4 * DENSE_HIDDEN)), cspec((1, 4 * DENSE_HIDDEN)),
        cspec((4 * DENSE_HIDDEN, 8)), cspec((1, 8)),
    ]
    fus_out_specs = (
        pl.BlockSpec((Bb, 8), lambda j: (j, 0)),
        pl.BlockSpec((Bb, 8), lambda j: (j, 0)),
        pl.BlockSpec((Bb, H), lambda j: (j, 0)),
        pl.BlockSpec((3, Bb, H), lambda j: (0, j, 0)),
    )

    loss_rows, y_all, hid_final, gen_all = pl.pallas_call(
        fusion_head_kernel,
        out_shape=(
            jax.ShapeDtypeStruct((Bp, 8), jnp.float32),
            jax.ShapeDtypeStruct((Bp, 8), jnp.float32),
            jax.ShapeDtypeStruct((Bp, H), jnp.float32),
            jax.ShapeDtypeStruct((3, Bp, H), jnp.float32),
        ),
        grid=(nb2,),
        in_specs=fus_in_specs,
        out_specs=fus_out_specs,
        compiler_params=pltpu.CompilerParams(
            dimension_semantics=("parallel",),
            vmem_limit_bytes=VMEM_LIMIT),
    )(hidden_views, vm3, valid, labs,
      f["wa1"].astype(jnp.bfloat16), f["wa2"],
      f["wb1"].astype(jnp.bfloat16), f["wb2"],
      wdec1c, bdec1c, f["wdec2"].astype(jnp.bfloat16), f["bdec2"],
      f["wf1"].astype(jnp.bfloat16), f["bf1"],
      f["wf2"].astype(jnp.bfloat16), f["bf2"],
      wh1, bh1, wh2, bh2)

    # exact 1/B normalization (rebuild rows already carry 1/H; padded rows are 0)
    loss = jnp.sum(loss_rows) / B

    y1, y2, y3, y4 = (y_all[:B, 2 * i:2 * i + 2] for i in range(4))
    hidden_dict = {
        "v_final": hid_final[:B],
        "v_user_attribute": hidden_views[0, :B],
        "v_app": hidden_views[1, :B],
        "v_app_inlog": hidden_views[2, :B],
        "v_g_user_attribute": gen_all[0, :B],
        "v_g_app": gen_all[1, :B],
        "v_g_app_inlog": gen_all[2, :B],
    }
    return loss, y1, y2, y3, y4, hidden_dict


if __name__ == "__main__":
    B, T, H, V = 4, 8, 32, 50
    key = jax.random.PRNGKey(0)
    kp, kd = jax.random.split(key)
    params = init_params(kp, vocab=V, hidden=H)

    dk = iter(jax.random.split(kd, 32))
    input_dict = {}
    for v in VIEWS:
        input_dict[f"{v}_ids"] = jax.random.randint(next(dk), (B, T), 1, V, dtype=jnp.int32)
        input_dict[f"{v}_time_cut"] = jax.random.randint(next(dk), (B, T), 0, 64, dtype=jnp.int32)
        input_dict[f"{v}_time_qcut"] = jax.random.randint(next(dk), (B, T), 0, 64, dtype=jnp.int32)
        input_dict[f"{v}_len"] = jax.random.randint(next(dk), (B,), 1, T + 1, dtype=jnp.int32)
    for i in range(1, 5):
        input_dict[f"labels{i}"] = jax.random.randint(next(dk), (B,), 0, 2, dtype=jnp.int32)
    input_dict["view_mask"] = jax.random.randint(next(dk), (B, 4), 0, 2, dtype=jnp.int32)

    out = multiview_forward(params, input_dict)
    jax.block_until_ready(out)
    assert bool(jnp.isfinite(out[0]))
    print("KERNEL_OK")
</pallas_src>

<mosaic_0001>
module attributes {stable_mosaic.version = 11 : i64} {
  func.func @view_encoder_kernel(%arg0: i32, %arg1: i32, %arg2: memref<1x1x128x96xbf16, #tpu.memory_space<vmem>>, %arg3: memref<1x1x16x1xi32, #tpu.memory_space<vmem>>, %arg4: memref<1x32x96xbf16, #tpu.memory_space<vmem>>, %arg5: memref<1x1x96xf32, #tpu.memory_space<vmem>>, %arg6: memref<1x32x32xbf16, #tpu.memory_space<vmem>>, %arg7: memref<1x1x32xf32, #tpu.memory_space<vmem>>, %arg8: memref<1x32x128xbf16, #tpu.memory_space<vmem>>, %arg9: memref<1x1x128xf32, #tpu.memory_space<vmem>>, %arg10: memref<1x128x32xbf16, #tpu.memory_space<vmem>>, %arg11: memref<1x1x32xf32, #tpu.memory_space<vmem>>, %arg12: memref<1x1x16x32xf32, #tpu.memory_space<vmem>>, %arg13: memref<128x32xf32, #tpu.memory_space<vmem>>, %arg14: memref<128x1xf32, #tpu.memory_space<vmem>>) attributes {dimension_semantics = [#tpu.dimension_semantics<parallel>, #tpu.dimension_semantics<parallel>], iteration_bounds = array<i64: 3, 1>, scalar_prefetch = 0 : i64, scratch_operands = 2 : i64, tpu.core_type = #tpu.core_type<tc>, window_params = [{transform_indices = @transform_0, window_bounds = array<i64: 1, 1, 128, 96>}, {transform_indices = @transform_1, window_bounds = array<i64: 1, 1, 16, 1>}, {transform_indices = @transform_2, window_bounds = array<i64: 1, 32, 96>}, {transform_indices = @transform_3, window_bounds = array<i64: 1, 1, 96>}, {transform_indices = @transform_4, window_bounds = array<i64: 1, 32, 32>}, {transform_indices = @transform_5, window_bounds = array<i64: 1, 1, 32>}, {transform_indices = @transform_6, window_bounds = array<i64: 1, 32, 128>}, {transform_indices = @transform_7, window_bounds = array<i64: 1, 1, 128>}, {transform_indices = @transform_8, window_bounds = array<i64: 1, 128, 32>}, {transform_indices = @transform_9, window_bounds = array<i64: 1, 1, 32>}, {transform_indices = @transform_10, window_bounds = array<i64: 1, 1, 16, 32>}]} {
    %c0 = arith.constant 0 : index
    %c0_0 = arith.constant 0 : index
    %c0_1 = arith.constant 0 : index
    %0 = vector.load %arg4[%c0, %c0_0, %c0_1] : memref<1x32x96xbf16, #tpu.memory_space<vmem>>, vector<1x32x96xbf16>
    %1 = vector.shape_cast %0 : vector<1x32x96xbf16> to vector<32x96xbf16>
    %c0_2 = arith.constant 0 : index
    %c0_3 = arith.constant 0 : index
    %c0_4 = arith.constant 0 : index
    %2 = vector.load %arg5[%c0_2, %c0_3, %c0_4] : memref<1x1x96xf32, #tpu.memory_space<vmem>>, vector<1x1x96xf32>
    %3 = vector.shape_cast %2 : vector<1x1x96xf32> to vector<1x96xf32>
    %4 = vector.extract_strided_slice %3 {offsets = [0, 0], sizes = [1, 32], strides = [1, 1]} : vector<1x96xf32> to vector<1x32xf32>
    %5 = vector.extract_strided_slice %3 {offsets = [0, 32], sizes = [1, 32], strides = [1, 1]} : vector<1x96xf32> to vector<1x32xf32>
    %6 = vector.extract_strided_slice %3 {offsets = [0, 64], sizes = [1, 32], strides = [1, 1]} : vector<1x96xf32> to vector<1x32xf32>
    %cst = arith.constant 0.000000e+00 : f32
    %7 = vector.broadcast %cst : f32 to vector<16x32xf32>
    %c0_i32 = arith.constant 0 : i32
    %c16_i32 = arith.constant 16 : i32
    %8 = arith.muli %c0_i32, %c16_i32 : i32
    %9 = tpu.assume_multiple %8, 16 : i32
    %c0_5 = arith.constant 0 : index
    %c0_6 = arith.constant 0 : index
    %10 = arith.index_cast %9 : i32 to index
    %c0_7 = arith.constant 0 : index
    %11 = vector.load %arg2[%c0_5, %c0_6, %10, %c0_7] : memref<1x1x128x96xbf16, #tpu.memory_space<vmem>>, vector<1x1x16x96xbf16>
    %12 = vector.shape_cast %11 : vector<1x1x16x96xbf16> to vector<16x96xbf16>
    %13 = arith.extf %12 : vector<16x96xbf16> to vector<16x96xf32>
    %14 = arith.truncf %7 : vector<16x32xf32> to vector<16x32xbf16>
    %cst_8 = arith.constant dense<0.000000e+00> : vector<16x96xf32>
    %15 = tpu.matmul %14, %1, %cst_8 {dimension_numbers = #tpu.dot_dimension_numbers<[1], [0], [0], [1], [0, 0, 1, 1], [], []>} : vector<16x32xbf16>, vector<32x96xbf16>, vector<16x96xf32> -> vector<16x96xf32>
    %16 = vector.extract_strided_slice %13 {offsets = [0, 0], sizes = [16, 32], strides = [1, 1]} : vector<16x96xf32> to vector<16x32xf32>
    %17 = vector.extract_strided_slice %15 {offsets = [0, 0], sizes = [16, 32], strides = [1, 1]} : vector<16x96xf32> to vector<16x32xf32>
    %18 = arith.addf %16, %17 : vector<16x32xf32>
    %19 = vector.broadcast %4 : vector<1x32xf32> to vector<16x32xf32>
    %20 = arith.addf %18, %19 : vector<16x32xf32>
    %cst_9 = arith.constant 5.000000e-01 : f32
    %21 = vector.broadcast %cst_9 : f32 to vector<16x32xf32>
    %22 = arith.mulf %21, %20 : vector<16x32xf32>
    %23 = math.tanh %22 : vector<16x32xf32>
    %cst_10 = arith.constant 1.000000e+00 : f32
    %24 = vector.broadcast %cst_10 : f32 to vector<16x32xf32>
    %25 = arith.addf %23, %24 : vector<16x32xf32>
    %cst_11 = arith.constant 5.000000e-01 : f32
    %26 = vector.broadcast %cst_11 : f32 to vector<16x32xf32>
    %27 = arith.mulf %26, %25 : vector<16x32xf32>
    %28 = vector.extract_strided_slice %13 {offsets = [0, 32], sizes = [16, 32], strides = [1, 1]} : vector<16x96xf32> to vector<16x32xf32>
    %29 = vector.extract_strided_slice %15 {offsets = [0, 32], sizes = [16, 32], strides = [1, 1]} : vector<16x96xf32> to vector<16x32xf32>
    %30 = arith.addf %28, %29 : vector<16x32xf32>
    %31 = vector.broadcast %5 : vector<1x32xf32> to vector<16x32xf32>
    %32 = arith.addf %30, %31 : vector<16x32xf32>
    %cst_12 = arith.constant 5.000000e-01 : f32
    %33 = vector.broadcast %cst_12 : f32 to vector<16x32xf32>
    %34 = arith.mulf %33, %32 : vector<16x32xf32>
    %35 = math.tanh %34 : vector<16x32xf32>
    %cst_13 = arith.constant 1.000000e+00 : f32
    %36 = vector.broadcast %cst_13 : f32 to vector<16x32xf32>
    %37 = arith.addf %35, %36 : vector<16x32xf32>
    %cst_14 = arith.constant 5.000000e-01 : f32
    %38 = vector.broadcast %cst_14 : f32 to vector<16x32xf32>
    %39 = arith.mulf %38, %37 : vector<16x32xf32>
    %40 = vector.extract_strided_slice %13 {offsets = [0, 64], sizes = [16, 32], strides = [1, 1]} : vector<16x96xf32> to vector<16x32xf32>
    %41 = vector.extract_strided_slice %15 {offsets = [0, 64], sizes = [16, 32], strides = [1, 1]} : vector<16x96xf32> to vector<16x32xf32>
    %42 = vector.broadcast %6 : vector<1x32xf32> to vector<16x32xf32>
    %43 = arith.addf %41, %42 : vector<16x32xf32>
    %44 = arith.mulf %27, %43 : vector<16x32xf32>
    %45 = arith.addf %40, %44 : vector<16x32xf32>
    %46 = math.tanh %45 : vector<16x32xf32>
    %cst_15 = arith.constant 1.000000e+00 : f32
    %47 = vector.broadcast %cst_15 : f32 to vector<16x32xf32>
    %48 = arith.subf %47, %39 : vector<16x32xf32>
    %49 = arith.mulf %48, %46 : vector<16x32xf32>
    %50 = arith.mulf %39, %7 : vector<16x32xf32>
    %51 = arith.addf %49, %50 : vector<16x32xf32>
    %52 = arith.index_cast %9 : i32 to index
    %c0_16 = arith.constant 0 : index
    %53 = vector.load %arg13[%52, %c0_16] : memref<128x32xf32, #tpu.memory_space<vmem>>, vector<16x32xf32>
    tpu.vector_store %arg13[%52, %c0_16], %51 {strides = array<i32>} : memref<128x32xf32, #tpu.memory_space<vmem>>, vector<16x32xf32>,
    %c1_i32 = arith.constant 1 : i32
    %c16_i32_17 = arith.constant 16 : i32
    %54 = arith.muli %c1_i32, %c16_i32_17 : i32
    %55 = tpu.assume_multiple %54, 16 : i32
    %c0_18 = arith.constant 0 : index
    %c0_19 = arith.constant 0 : index
    %56 = arith.index_cast %55 : i32 to index
    %c0_20 = arith.constant 0 : index
    %57 = vector.load %arg2[%c0_18, %c0_19, %56, %c0_20] : memref<1x1x128x96xbf16, #tpu.memory_space<vmem>>, vector<1x1x16x96xbf16>
    %58 = vector.shape_cast %57 : vector<1x1x16x96xbf16> to vector<16x96xbf16>
    %59 = arith.extf %58 : vector<16x96xbf16> to vector<16x96xf32>
    %60 = arith.truncf %51 : vector<16x32xf32> to vector<16x32xbf16>
    %cst_21 = arith.constant dense<0.000000e+00> : vector<16x96xf32>
    %61 = tpu.matmul %60, %1, %cst_21 {dimension_numbers = #tpu.dot_dimension_numbers<[1], [0], [0], [1], [0, 0, 1, 1], [], []>} : vector<16x32xbf16>, vector<32x96xbf16>, vector<16x96xf32> -> vector<16x96xf32>
    %62 = vector.extract_strided_slice %59 {offsets = [0, 0], sizes = [16, 32], strides = [1, 1]} : vector<16x96xf32> to vector<16x32xf32>
    %63 = vector.extract_strided_slice %61 {offsets = [0, 0], sizes = [16, 32], strides = [1, 1]} : vector<16x96xf32> to vector<16x32xf32>
    %64 = arith.addf %62, %63 : vector<16x32xf32>
    %65 = vector.broadcast %4 : vector<1x32xf32> to vector<16x32xf32>
    %66 = arith.addf %64, %65 : vector<16x32xf32>
    %cst_22 = arith.constant 5.000000e-01 : f32
    %67 = vector.broadcast %cst_22 : f32 to vector<16x32xf32>
    %68 = arith.mulf %67, %66 : vector<16x32xf32>
    %69 = math.tanh %68 : vector<16x32xf32>
    %cst_23 = arith.constant 1.000000e+00 : f32
    %70 = vector.broadcast %cst_23 : f32 to vector<16x32xf32>
    %71 = arith.addf %69, %70 : vector<16x32xf32>
    %cst_24 = arith.constant 5.000000e-01 : f32
    %72 = vector.broadcast %cst_24 : f32 to vector<16x32xf32>
    %73 = arith.mulf %72, %71 : vector<16x32xf32>
    %74 = vector.extract_strided_slice %59 {offsets = [0, 32], sizes = [16, 32], strides = [1, 1]} : vector<16x96xf32> to vector<16x32xf32>
    %75 = vector.extract_strided_slice %61 {offsets = [0, 32], sizes = [16, 32], strides = [1, 1]} : vector<16x96xf32> to vector<16x32xf32>
    %76 = arith.addf %74, %75 : vector<16x32xf32>
    %77 = vector.broadcast %5 : vector<1x32xf32> to vector<16x32xf32>
    %78 = arith.addf %76, %77 : vector<16x32xf32>
    %cst_25 = arith.constant 5.000000e-01 : f32
    %79 = vector.broadcast %cst_25 : f32 to vector<16x32xf32>
    %80 = arith.mulf %79, %78 : vector<16x32xf32>
    %81 = math.tanh %80 : vector<16x32xf32>
    %cst_26 = arith.constant 1.000000e+00 : f32
    %82 = vector.broadcast %cst_26 : f32 to vector<16x32xf32>
    %83 = arith.addf %81, %82 : vector<16x32xf32>
    %cst_27 = arith.constant 5.000000e-01 : f32
    %84 = vector.broadcast %cst_27 : f32 to vector<16x32xf32>
    %85 = arith.mulf %84, %83 : vector<16x32xf32>
    %86 = vector.extract_strided_slice %59 {offsets = [0, 64], sizes = [16, 32], strides = [1, 1]} : vector<16x96xf32> to vector<16x32xf32>
    %87 = vector.extract_strided_slice %61 {offsets = [0, 64], sizes = [16, 32], strides = [1, 1]} : vector<16x96xf32> to vector<16x32xf32>
    %88 = vector.broadcast %6 : vector<1x32xf32> to vector<16x32xf32>
    %89 = arith.addf %87, %88 : vector<16x32xf32>
    %90 = arith.mulf %73, %89 : vector<16x32xf32>
    %91 = arith.addf %86, %90 : vector<16x32xf32>
    %92 = math.tanh %91 : vector<16x32xf32>
    %cst_28 = arith.constant 1.000000e+00 : f32
    %93 = vector.broadcast %cst_28 : f32 to vector<16x32xf32>
    %94 = arith.subf %93, %85 : vector<16x32xf32>
    %95 = arith.mulf %94, %92 : vector<16x32xf32>
    %96 = arith.mulf %85, %51 : vector<16x32xf32>
    %97 = arith.addf %95, %96 : vector<16x32xf32>
    %98 = arith.index_cast %55 : i32 to index
    %c0_29 = arith.constant 0 : index
    %99 = vector.load %arg13[%98, %c0_29] : memref<128x32xf32, #tpu.memory_space<vmem>>, vector<16x32xf32>
    tpu.vector_store %arg13[%98, %c0_29], %97 {strides = array<i32>} : memref<128x32xf32, #tpu.memory_space<vmem>>, vector<16x32xf32>,
    %c2_i32 = arith.constant 2 : i32
    %c16_i32_30 = arith.constant 16 : i32
    %100 = arith.muli %c2_i32, %c16_i32_30 : i32
    %101 = tpu.assume_multiple %100, 16 : i32
    %c0_31 = arith.constant 0 : index
    %c0_32 = arith.constant 0 : index
    %102 = arith.index_cast %101 : i32 to index
    %c0_33 = arith.constant 0 : index
    %103 = vector.load %arg2[%c0_31, %c0_32, %102, %c0_33] : memref<1x1x128x96xbf16, #tpu.memory_space<vmem>>, vector<1x1x16x96xbf16>
    %104 = vector.shape_cast %103 : vector<1x1x16x96xbf16> to vector<16x96xbf16>
    %105 = arith.extf %104 : vector<16x96xbf16> to vector<16x96xf32>
    %106 = arith.truncf %97 : vector<16x32xf32> to vector<16x32xbf16>
    %cst_34 = arith.constant dense<0.000000e+00> : vector<16x96xf32>
    %107 = tpu.matmul %106, %1, %cst_34 {dimension_numbers = #tpu.dot_dimension_numbers<[1], [0], [0], [1], [0, 0, 1, 1], [], []>} : vector<16x32xbf16>, vector<32x96xbf16>, vector<16x96xf32> -> vector<16x96xf32>
    %108 = vector.extract_strided_slice %105 {offsets = [0, 0], sizes = [16, 32], strides = [1, 1]} : vector<16x96xf32> to vector<16x32xf32>
    %109 = vector.extract_strided_slice %107 {offsets = [0, 0], sizes = [16, 32], strides = [1, 1]} : vector<16x96xf32> to vector<16x32xf32>
    %110 = arith.addf %108, %109 : vector<16x32xf32>
    %111 = vector.broadcast %4 : vector<1x32xf32> to vector<16x32xf32>
    %112 = arith.addf %110, %111 : vector<16x32xf32>
    %cst_35 = arith.constant 5.000000e-01 : f32
    %113 = vector.broadcast %cst_35 : f32 to vector<16x32xf32>
    %114 = arith.mulf %113, %112 : vector<16x32xf32>
    %115 = math.tanh %114 : vector<16x32xf32>
    %cst_36 = arith.constant 1.000000e+00 : f32
    %116 = vector.broadcast %cst_36 : f32 to vector<16x32xf32>
    %117 = arith.addf %115, %116 : vector<16x32xf32>
    %cst_37 = arith.constant 5.000000e-01 : f32
    %118 = vector.broadcast %cst_37 : f32 to vector<16x32xf32>
    %119 = arith.mulf %118, %117 : vector<16x32xf32>
    %120 = vector.extract_strided_slice %105 {offsets = [0, 32], sizes = [16, 32], strides = [1, 1]} : vector<16x96xf32> to vector<16x32xf32>
    %121 = vector.extract_strided_slice %107 {offsets = [0, 32], sizes = [16, 32], strides = [1, 1]} : vector<16x96xf32> to vector<16x32xf32>
    %122 = arith.addf %120, %121 : vector<16x32xf32>
    %123 = vector.broadcast %5 : vector<1x32xf32> to vector<16x32xf32>
    %124 = arith.addf %122, %123 : vector<16x32xf32>
    %cst_38 = arith.constant 5.000000e-01 : f32
    %125 = vector.broadcast %cst_38 : f32 to vector<16x32xf32>
    %126 = arith.mulf %125, %124 : vector<16x32xf32>
    %127 = math.tanh %126 : vector<16x32xf32>
    %cst_39 = arith.constant 1.000000e+00 : f32
    %128 = vector.broadcast %cst_39 : f32 to vector<16x32xf32>
    %129 = arith.addf %127, %128 : vector<16x32xf32>
    %cst_40 = arith.constant 5.000000e-01 : f32
    %130 = vector.broadcast %cst_40 : f32 to vector<16x32xf32>
    %131 = arith.mulf %130, %129 : vector<16x32xf32>
    %132 = vector.extract_strided_slice %105 {offsets = [0, 64], sizes = [16, 32], strides = [1, 1]} : vector<16x96xf32> to vector<16x32xf32>
    %133 = vector.extract_strided_slice %107 {offsets = [0, 64], sizes = [16, 32], strides = [1, 1]} : vector<16x96xf32> to vector<16x32xf32>
    %134 = vector.broadcast %6 : vector<1x32xf32> to vector<16x32xf32>
    %135 = arith.addf %133, %134 : vector<16x32xf32>
    %136 = arith.mulf %119, %135 : vector<16x32xf32>
    %137 = arith.addf %132, %136 : vector<16x32xf32>
    %138 = math.tanh %137 : vector<16x32xf32>
    %cst_41 = arith.constant 1.000000e+00 : f32
    %139 = vector.broadcast %cst_41 : f32 to vector<16x32xf32>
    %140 = arith.subf %139, %131 : vector<16x32xf32>
    %141 = arith.mulf %140, %138 : vector<16x32xf32>
    %142 = arith.mulf %131, %97 : vector<16x32xf32>
    %143 = arith.addf %141, %142 : vector<16x32xf32>
    %144 = arith.index_cast %101 : i32 to index
    %c0_42 = arith.constant 0 : index
    %145 = vector.load %arg13[%144, %c0_42] : memref<128x32xf32, #tpu.memory_space<vmem>>, vector<16x32xf32>
    tpu.vector_store %arg13[%144, %c0_42], %143 {strides = array<i32>} : memref<128x32xf32, #tpu.memory_space<vmem>>, vector<16x32xf32>,
    %c3_i32 = arith.constant 3 : i32
    %c16_i32_43 = arith.constant 16 : i32
    %146 = arith.muli %c3_i32, %c16_i32_43 : i32
    %147 = tpu.assume_multiple %146, 16 : i32
    %c0_44 = arith.constant 0 : index
    %c0_45 = arith.constant 0 : index
    %148 = arith.index_cast %147 : i32 to index
    %c0_46 = arith.constant 0 : index
    %149 = vector.load %arg2[%c0_44, %c0_45, %148, %c0_46] : memref<1x1x128x96xbf16, #tpu.memory_space<vmem>>, vector<1x1x16x96xbf16>
    %150 = vector.shape_cast %149 : vector<1x1x16x96xbf16> to vector<16x96xbf16>
    %151 = arith.extf %150 : vector<16x96xbf16> to vector<16x96xf32>
    %152 = arith.truncf %143 : vector<16x32xf32> to vector<16x32xbf16>
    %cst_47 = arith.constant dense<0.000000e+00> : vector<16x96xf32>
    %153 = tpu.matmul %152, %1, %cst_47 {dimension_numbers = #tpu.dot_dimension_numbers<[1], [0], [0], [1], [0, 0, 1, 1], [], []>} : vector<16x32xbf16>, vector<32x96xbf16>, vector<16x96xf32> -> vector<16x96xf32>
    %154 = vector.extract_strided_slice %151 {offsets = [0, 0], sizes = [16, 32], strides = [1, 1]} : vector<16x96xf32> to vector<16x32xf32>
    %155 = vector.extract_strided_slice %153 {offsets = [0, 0], sizes = [16, 32], strides = [1, 1]} : vector<16x96xf32> to vector<16x32xf32>
    %156 = arith.addf %154, %155 : vector<16x32xf32>
    %157 = vector.broadcast %4 : vector<1x32xf32> to vector<16x32xf32>
    %158 = arith.addf %156, %157 : vector<16x32xf32>
    %cst_48 = arith.constant 5.000000e-01 : f32
    %159 = vector.broadcast %cst_48 : f32 to vector<16x32xf32>
    %160 = arith.mulf %159, %158 : vector<16x32xf32>
    %161 = math.tanh %160 : vector<16x32xf32>
    %cst_49 = arith.constant 1.000000e+00 : f32
    %162 = vector.broadcast %cst_49 : f32 to vector<16x32xf32>
    %163 = arith.addf %161, %162 : vector<16x32xf32>
    %cst_50 = arith.constant 5.000000e-01 : f32
    %164 = vector.broadcast %cst_50 : f32 to vector<16x32xf32>
    %165 = arith.mulf %164, %163 : vector<16x32xf32>
    %166 = vector.extract_strided_slice %151 {offsets = [0, 32], sizes = [16, 32], strides = [1, 1]} : vector<16x96xf32> to vector<16x32xf32>
    %167 = vector.extract_strided_slice %153 {offsets = [0, 32], sizes = [16, 32], strides = [1, 1]} : vector<16x96xf32> to vector<16x32xf32>
    %168 = arith.addf %166, %167 : vector<16x32xf32>
    %169 = vector.broadcast %5 : vector<1x32xf32> to vector<16x32xf32>
    %170 = arith.addf %168, %169 : vector<16x32xf32>
    %cst_51 = arith.constant 5.000000e-01 : f32
    %171 = vector.broadcast %cst_51 : f32 to vector<16x32xf32>
    %172 = arith.mulf %171, %170 : vector<16x32xf32>
    %173 = math.tanh %172 : vector<16x32xf32>
    %cst_52 = arith.constant 1.000000e+00 : f32
    %174 = vector.broadcast %cst_52 : f32 to vector<16x32xf32>
    %175 = arith.addf %173, %174 : vector<16x32xf32>
    %cst_53 = arith.constant 5.000000e-01 : f32
    %176 = vector.broadcast %cst_53 : f32 to vector<16x32xf32>
    %177 = arith.mulf %176, %175 : vector<16x32xf32>
    %178 = vector.extract_strided_slice %151 {offsets = [0, 64], sizes = [16, 32], strides = [1, 1]} : vector<16x96xf32> to vector<16x32xf32>
    %179 = vector.extract_strided_slice %153 {offsets = [0, 64], sizes = [16, 32], strides = [1, 1]} : vector<16x96xf32> to vector<16x32xf32>
    %180 = vector.broadcast %6 : vector<1x32xf32> to vector<16x32xf32>
    %181 = arith.addf %179, %180 : vector<16x32xf32>
    %182 = arith.mulf %165, %181 : vector<16x32xf32>
    %183 = arith.addf %178, %182 : vector<16x32xf32>
    %184 = math.tanh %183 : vector<16x32xf32>
    %cst_54 = arith.constant 1.000000e+00 : f32
    %185 = vector.broadcast %cst_54 : f32 to vector<16x32xf32>
    %186 = arith.subf %185, %177 : vector<16x32xf32>
    %187 = arith.mulf %186, %184 : vector<16x32xf32>
    %188 = arith.mulf %177, %143 : vector<16x32xf32>
    %189 = arith.addf %187, %188 : vector<16x32xf32>
    %190 = arith.index_cast %147 : i32 to index
    %c0_55 = arith.constant 0 : index
    %191 = vector.load %arg13[%190, %c0_55] : memref<128x32xf32, #tpu.memory_space<vmem>>, vector<16x32xf32>
    tpu.vector_store %arg13[%190, %c0_55], %189 {strides = array<i32>} : memref<128x32xf32, #tpu.memory_space<vmem>>, vector<16x32xf32>,
    %c4_i32 = arith.constant 4 : i32
    %c16_i32_56 = arith.constant 16 : i32
    %192 = arith.muli %c4_i32, %c16_i32_56 : i32
    %193 = tpu.assume_multiple %192, 16 : i32
    %c0_57 = arith.constant 0 : index
    %c0_58 = arith.constant 0 : index
    %194 = arith.index_cast %193 : i32 to index
    %c0_59 = arith.constant 0 : index
    %195 = vector.load %arg2[%c0_57, %c0_58, %194, %c0_59] : memref<1x1x128x96xbf16, #tpu.memory_space<vmem>>, vector<1x1x16x96xbf16>
    %196 = vector.shape_cast %195 : vector<1x1x16x96xbf16> to vector<16x96xbf16>
    %197 = arith.extf %196 : vector<16x96xbf16> to vector<16x96xf32>
    %198 = arith.truncf %189 : vector<16x32xf32> to vector<16x32xbf16>
    %cst_60 = arith.constant dense<0.000000e+00> : vector<16x96xf32>
    %199 = tpu.matmul %198, %1, %cst_60 {dimension_numbers = #tpu.dot_dimension_numbers<[1], [0], [0], [1], [0, 0, 1, 1], [], []>} : vector<16x32xbf16>, vector<32x96xbf16>, vector<16x96xf32> -> vector<16x96xf32>
    %200 = vector.extract_strided_slice %197 {offsets = [0, 0], sizes = [16, 32], strides = [1, 1]} : vector<16x96xf32> to vector<16x32xf32>
    %201 = vector.extract_strided_slice %199 {offsets = [0, 0], sizes = [16, 32], strides = [1, 1]} : vector<16x96xf32> to vector<16x32xf32>
    %202 = arith.addf %200, %201 : vector<16x32xf32>
    %203 = vector.broadcast %4 : vector<1x32xf32> to vector<16x32xf32>
    %204 = arith.addf %202, %203 : vector<16x32xf32>
    %cst_61 = arith.constant 5.000000e-01 : f32
    %205 = vector.broadcast %cst_61 : f32 to vector<16x32xf32>
    %206 = arith.mulf %205, %204 : vector<16x32xf32>
    %207 = math.tanh %206 : vector<16x32xf32>
    %cst_62 = arith.constant 1.000000e+00 : f32
    %208 = vector.broadcast %cst_62 : f32 to vector<16x32xf32>
    %209 = arith.addf %207, %208 : vector<16x32xf32>
    %cst_63 = arith.constant 5.000000e-01 : f32
    %210 = vector.broadcast %cst_63 : f32 to vector<16x32xf32>
    %211 = arith.mulf %210, %209 : vector<16x32xf32>
    %212 = vector.extract_strided_slice %197 {offsets = [0, 32], sizes = [16, 32], strides = [1, 1]} : vector<16x96xf32> to vector<16x32xf32>
    %213 = vector.extract_strided_slice %199 {offsets = [0, 32], sizes = [16, 32], strides = [1, 1]} : vector<16x96xf32> to vector<16x32xf32>
    %214 = arith.addf %212, %213 : vector<16x32xf32>
    %215 = vector.broadcast %5 : vector<1x32xf32> to vector<16x32xf32>
    %216 = arith.addf %214, %215 : vector<16x32xf32>
    %cst_64 = arith.constant 5.000000e-01 : f32
    %217 = vector.broadcast %cst_64 : f32 to vector<16x32xf32>
    %218 = arith.mulf %217, %216 : vector<16x32xf32>
    %219 = math.tanh %218 : vector<16x32xf32>
    %cst_65 = arith.constant 1.000000e+00 : f32
    %220 = vector.broadcast %cst_65 : f32 to vector<16x32xf32>
    %221 = arith.addf %219, %220 : vector<16x32xf32>
    %cst_66 = arith.constant 5.000000e-01 : f32
    %222 = vector.broadcast %cst_66 : f32 to vector<16x32xf32>
    %223 = arith.mulf %222, %221 : vector<16x32xf32>
    %224 = vector.extract_strided_slice %197 {offsets = [0, 64], sizes = [16, 32], strides = [1, 1]} : vector<16x96xf32> to vector<16x32xf32>
    %225 = vector.extract_strided_slice %199 {offsets = [0, 64], sizes = [16, 32], strides = [1, 1]} : vector<16x96xf32> to vector<16x32xf32>
    %226 = vector.broadcast %6 : vector<1x32xf32> to vector<16x32xf32>
    %227 = arith.addf %225, %226 : vector<16x32xf32>
    %228 = arith.mulf %211, %227 : vector<16x32xf32>
    %229 = arith.addf %224, %228 : vector<16x32xf32>
    %230 = math.tanh %229 : vector<16x32xf32>
    %cst_67 = arith.constant 1.000000e+00 : f32
    %231 = vector.broadcast %cst_67 : f32 to vector<16x32xf32>
    %232 = arith.subf %231, %223 : vector<16x32xf32>
    %233 = arith.mulf %232, %230 : vector<16x32xf32>
    %234 = arith.mulf %223, %189 : vector<16x32xf32>
    %235 = arith.addf %233, %234 : vector<16x32xf32>
    %236 = arith.index_cast %193 : i32 to index
    %c0_68 = arith.constant 0 : index
    %237 = vector.load %arg13[%236, %c0_68] : memref<128x32xf32, #tpu.memory_space<vmem>>, vector<16x32xf32>
    tpu.vector_store %arg13[%236, %c0_68], %235 {strides = array<i32>} : memref<128x32xf32, #tpu.memory_space<vmem>>, vector<16x32xf32>,
    %c5_i32 = arith.constant 5 : i32
    %c16_i32_69 = arith.constant 16 : i32
    %238 = arith.muli %c5_i32, %c16_i32_69 : i32
    %239 = tpu.assume_multiple %238, 16 : i32
    %c0_70 = arith.constant 0 : index
    %c0_71 = arith.constant 0 : index
    %240 = arith.index_cast %239 : i32 to index
    %c0_72 = arith.constant 0 : index
    %241 = vector.load %arg2[%c0_70, %c0_71, %240, %c0_72] : memref<1x1x128x96xbf16, #tpu.memory_space<vmem>>, vector<1x1x16x96xbf16>
    %242 = vector.shape_cast %241 : vector<1x1x16x96xbf16> to vector<16x96xbf16>
    %243 = arith.extf %242 : vector<16x96xbf16> to vector<16x96xf32>
    %244 = arith.truncf %235 : vector<16x32xf32> to vector<16x32xbf16>
    %cst_73 = arith.constant dense<0.000000e+00> : vector<16x96xf32>
    %245 = tpu.matmul %244, %1, %cst_73 {dimension_numbers = #tpu.dot_dimension_numbers<[1], [0], [0], [1], [0, 0, 1, 1], [], []>} : vector<16x32xbf16>, vector<32x96xbf16>, vector<16x96xf32> -> vector<16x96xf32>
    %246 = vector.extract_strided_slice %243 {offsets = [0, 0], sizes = [16, 32], strides = [1, 1]} : vector<16x96xf32> to vector<16x32xf32>
    %247 = vector.extract_strided_slice %245 {offsets = [0, 0], sizes = [16, 32], strides = [1, 1]} : vector<16x96xf32> to vector<16x32xf32>
    %248 = arith.addf %246, %247 : vector<16x32xf32>
    %249 = vector.broadcast %4 : vector<1x32xf32> to vector<16x32xf32>
    %250 = arith.addf %248, %249 : vector<16x32xf32>
    %cst_74 = arith.constant 5.000000e-01 : f32
    %251 = vector.broadcast %cst_74 : f32 to vector<16x32xf32>
    %252 = arith.mulf %251, %250 : vector<16x32xf32>
    %253 = math.tanh %252 : vector<16x32xf32>
    %cst_75 = arith.constant 1.000000e+00 : f32
    %254 = vector.broadcast %cst_75 : f32 to vector<16x32xf32>
    %255 = arith.addf %253, %254 : vector<16x32xf32>
    %cst_76 = arith.constant 5.000000e-01 : f32
    %256 = vector.broadcast %cst_76 : f32 to vector<16x32xf32>
    %257 = arith.mulf %256, %255 : vector<16x32xf32>
    %258 = vector.extract_strided_slice %243 {offsets = [0, 32], sizes = [16, 32], strides = [1, 1]} : vector<16x96xf32> to vector<16x32xf32>
    %259 = vector.extract_strided_slice %245 {offsets = [0, 32], sizes = [16, 32], strides = [1, 1]} : vector<16x96xf32> to vector<16x32xf32>
    %260 = arith.addf %258, %259 : vector<16x32xf32>
    %261 = vector.broadcast %5 : vector<1x32xf32> to vector<16x32xf32>
    %262 = arith.addf %260, %261 : vector<16x32xf32>
    %cst_77 = arith.constant 5.000000e-01 : f32
    %263 = vector.broadcast %cst_77 : f32 to vector<16x32xf32>
    %264 = arith.mulf %263, %262 : vector<16x32xf32>
    %265 = math.tanh %264 : vector<16x32xf32>
    %cst_78 = arith.constant 1.000000e+00 : f32
    %266 = vector.broadcast %cst_78 : f32 to vector<16x32xf32>
    %267 = arith.addf %265, %266 : vector<16x32xf32>
    %cst_79 = arith.constant 5.000000e-01 : f32
    %268 = vector.broadcast %cst_79 : f32 to vector<16x32xf32>
    %269 = arith.mulf %268, %267 : vector<16x32xf32>
    %270 = vector.extract_strided_slice %243 {offsets = [0, 64], sizes = [16, 32], strides = [1, 1]} : vector<16x96xf32> to vector<16x32xf32>
    %271 = vector.extract_strided_slice %245 {offsets = [0, 64], sizes = [16, 32], strides = [1, 1]} : vector<16x96xf32> to vector<16x32xf32>
    %272 = vector.broadcast %6 : vector<1x32xf32> to vector<16x32xf32>
    %273 = arith.addf %271, %272 : vector<16x32xf32>
    %274 = arith.mulf %257, %273 : vector<16x32xf32>
    %275 = arith.addf %270, %274 : vector<16x32xf32>
    %276 = math.tanh %275 : vector<16x32xf32>
    %cst_80 = arith.constant 1.000000e+00 : f32
    %277 = vector.broadcast %cst_80 : f32 to vector<16x32xf32>
    %278 = arith.subf %277, %269 : vector<16x32xf32>
    %279 = arith.mulf %278, %276 : vector<16x32xf32>
    %280 = arith.mulf %269, %235 : vector<16x32xf32>
    %281 = arith.addf %279, %280 : vector<16x32xf32>
    %282 = arith.index_cast %239 : i32 to index
    %c0_81 = arith.constant 0 : index
    %283 = vector.load %arg13[%282, %c0_81] : memref<128x32xf32, #tpu.memory_space<vmem>>, vector<16x32xf32>
    tpu.vector_store %arg13[%282, %c0_81], %281 {strides = array<i32>} : memref<128x32xf32, #tpu.memory_space<vmem>>, vector<16x32xf32>,
    %c6_i32 = arith.constant 6 : i32
    %c16_i32_82 = arith.constant 16 : i32
    %284 = arith.muli %c6_i32, %c16_i32_82 : i32
    %285 = tpu.assume_multiple %284, 16 : i32
    %c0_83 = arith.constant 0 : index
    %c0_84 = arith.constant 0 : index
    %286 = arith.index_cast %285 : i32 to index
    %c0_85 = arith.constant 0 : index
    %287 = vector.load %arg2[%c0_83, %c0_84, %286, %c0_85] : memref<1x1x128x96xbf16, #tpu.memory_space<vmem>>, vector<1x1x16x96xbf16>
    %288 = vector.shape_cast %287 : vector<1x1x16x96xbf16> to vector<16x96xbf16>
    %289 = arith.extf %288 : vector<16x96xbf16> to vector<16x96xf32>
    %290 = arith.truncf %281 : vector<16x32xf32> to vector<16x32xbf16>
    %cst_86 = arith.constant dense<0.000000e+00> : vector<16x96xf32>
    %291 = tpu.matmul %290, %1, %cst_86 {dimension_numbers = #tpu.dot_dimension_numbers<[1], [0], [0], [1], [0, 0, 1, 1], [], []>} : vector<16x32xbf16>, vector<32x96xbf16>, vector<16x96xf32> -> vector<16x96xf32>
    %292 = vector.extract_strided_slice %289 {offsets = [0, 0], sizes = [16, 32], strides = [1, 1]} : vector<16x96xf32> to vector<16x32xf32>
    %293 = vector.extract_strided_slice %291 {offsets = [0, 0], sizes = [16, 32], strides = [1, 1]} : vector<16x96xf32> to vector<16x32xf32>
    %294 = arith.addf %292, %293 : vector<16x32xf32>
    %295 = vector.broadcast %4 : vector<1x32xf32> to vector<16x32xf32>
    %296 = arith.addf %294, %295 : vector<16x32xf32>
    %cst_87 = arith.constant 5.000000e-01 : f32
    %297 = vector.broadcast %cst_87 : f32 to vector<16x32xf32>
    %298 = arith.mulf %297, %296 : vector<16x32xf32>
    %299 = math.tanh %298 : vector<16x32xf32>
    %cst_88 = arith.constant 1.000000e+00 : f32
    %300 = vector.broadcast %cst_88 : f32 to vector<16x32xf32>
    %301 = arith.addf %299, %300 : vector<16x32xf32>
    %cst_89 = arith.constant 5.000000e-01 : f32
    %302 = vector.broadcast %cst_89 : f32 to vector<16x32xf32>
    %303 = arith.mulf %302, %301 : vector<16x32xf32>
    %304 = vector.extract_strided_slice %289 {offsets = [0, 32], sizes = [16, 32], strides = [1, 1]} : vector<16x96xf32> to vector<16x32xf32>
    %305 = vector.extract_strided_slice %291 {offsets = [0, 32], sizes = [16, 32], strides = [1, 1]} : vector<16x96xf32> to vector<16x32xf32>
    %306 = arith.addf %304, %305 : vector<16x32xf32>
    %307 = vector.broadcast %5 : vector<1x32xf32> to vector<16x32xf32>
    %308 = arith.addf %306, %307 : vector<16x32xf32>
    %cst_90 = arith.constant 5.000000e-01 : f32
    %309 = vector.broadcast %cst_90 : f32 to vector<16x32xf32>
    %310 = arith.mulf %309, %308 : vector<16x32xf32>
    %311 = math.tanh %310 : vector<16x32xf32>
    %cst_91 = arith.constant 1.000000e+00 : f32
    %312 = vector.broadcast %cst_91 : f32 to vector<16x32xf32>
    %313 = arith.addf %311, %312 : vector<16x32xf32>
    %cst_92 = arith.constant 5.000000e-01 : f32
    %314 = vector.broadcast %cst_92 : f32 to vector<16x32xf32>
    %315 = arith.mulf %314, %313 : vector<16x32xf32>
    %316 = vector.extract_strided_slice %289 {offsets = [0, 64], sizes = [16, 32], strides = [1, 1]} : vector<16x96xf32> to vector<16x32xf32>
    %317 = vector.extract_strided_slice %291 {offsets = [0, 64], sizes = [16, 32], strides = [1, 1]} : vector<16x96xf32> to vector<16x32xf32>
    %318 = vector.broadcast %6 : vector<1x32xf32> to vector<16x32xf32>
    %319 = arith.addf %317, %318 : vector<16x32xf32>
    %320 = arith.mulf %303, %319 : vector<16x32xf32>
    %321 = arith.addf %316, %320 : vector<16x32xf32>
    %322 = math.tanh %321 : vector<16x32xf32>
    %cst_93 = arith.constant 1.000000e+00 : f32
    %323 = vector.broadcast %cst_93 : f32 to vector<16x32xf32>
    %324 = arith.subf %323, %315 : vector<16x32xf32>
    %325 = arith.mulf %324, %322 : vector<16x32xf32>
    %326 = arith.mulf %315, %281 : vector<16x32xf32>
    %327 = arith.addf %325, %326 : vector<16x32xf32>
    %328 = arith.index_cast %285 : i32 to index
    %c0_94 = arith.constant 0 : index
    %329 = vector.load %arg13[%328, %c0_94] : memref<128x32xf32, #tpu.memory_space<vmem>>, vector<16x32xf32>
    tpu.vector_store %arg13[%328, %c0_94], %327 {strides = array<i32>} : memref<128x32xf32, #tpu.memory_space<vmem>>, vector<16x32xf32>,
    %c7_i32 = arith.constant 7 : i32
    %c16_i32_95 = arith.constant 16 : i32
    %330 = arith.muli %c7_i32, %c16_i32_95 : i32
    %331 = tpu.assume_multiple %330, 16 : i32
    %c0_96 = arith.constant 0 : index
    %c0_97 = arith.constant 0 : index
    %332 = arith.index_cast %331 : i32 to index
    %c0_98 = arith.constant 0 : index
    %333 = vector.load %arg2[%c0_96, %c0_97, %332, %c0_98] : memref<1x1x128x96xbf16, #tpu.memory_space<vmem>>, vector<1x1x16x96xbf16>
    %334 = vector.shape_cast %333 : vector<1x1x16x96xbf16> to vector<16x96xbf16>
    %335 = arith.extf %334 : vector<16x96xbf16> to vector<16x96xf32>
    %336 = arith.truncf %327 : vector<16x32xf32> to vector<16x32xbf16>
    %cst_99 = arith.constant dense<0.000000e+00> : vector<16x96xf32>
    %337 = tpu.matmul %336, %1, %cst_99 {dimension_numbers = #tpu.dot_dimension_numbers<[1], [0], [0], [1], [0, 0, 1, 1], [], []>} : vector<16x32xbf16>, vector<32x96xbf16>, vector<16x96xf32> -> vector<16x96xf32>
    %338 = vector.extract_strided_slice %335 {offsets = [0, 0], sizes = [16, 32], strides = [1, 1]} : vector<16x96xf32> to vector<16x32xf32>
    %339 = vector.extract_strided_slice %337 {offsets = [0, 0], sizes = [16, 32], strides = [1, 1]} : vector<16x96xf32> to vector<16x32xf32>
    %340 = arith.addf %338, %339 : vector<16x32xf32>
    %341 = vector.broadcast %4 : vector<1x32xf32> to vector<16x32xf32>
    %342 = arith.addf %340, %341 : vector<16x32xf32>
    %cst_100 = arith.constant 5.000000e-01 : f32
    %343 = vector.broadcast %cst_100 : f32 to vector<16x32xf32>
    %344 = arith.mulf %343, %342 : vector<16x32xf32>
    %345 = math.tanh %344 : vector<16x32xf32>
    %cst_101 = arith.constant 1.000000e+00 : f32
    %346 = vector.broadcast %cst_101 : f32 to vector<16x32xf32>
    %347 = arith.addf %345, %346 : vector<16x32xf32>
    %cst_102 = arith.constant 5.000000e-01 : f32
    %348 = vector.broadcast %cst_102 : f32 to vector<16x32xf32>
    %349 = arith.mulf %348, %347 : vector<16x32xf32>
    %350 = vector.extract_strided_slice %335 {offsets = [0, 32], sizes = [16, 32], strides = [1, 1]} : vector<16x96xf32> to vector<16x32xf32>
    %351 = vector.extract_strided_slice %337 {offsets = [0, 32], sizes = [16, 32], strides = [1, 1]} : vector<16x96xf32> to vector<16x32xf32>
    %352 = arith.addf %350, %351 : vector<16x32xf32>
    %353 = vector.broadcast %5 : vector<1x32xf32> to vector<16x32xf32>
    %354 = arith.addf %352, %353 : vector<16x32xf32>
    %cst_103 = arith.constant 5.000000e-01 : f32
    %355 = vector.broadcast %cst_103 : f32 to vector<16x32xf32>
    %356 = arith.mulf %355, %354 : vector<16x32xf32>
    %357 = math.tanh %356 : vector<16x32xf32>
    %cst_104 = arith.constant 1.000000e+00 : f32
    %358 = vector.broadcast %cst_104 : f32 to vector<16x32xf32>
    %359 = arith.addf %357, %358 : vector<16x32xf32>
    %cst_105 = arith.constant 5.000000e-01 : f32
    %360 = vector.broadcast %cst_105 : f32 to vector<16x32xf32>
    %361 = arith.mulf %360, %359 : vector<16x32xf32>
    %362 = vector.extract_strided_slice %335 {offsets = [0, 64], sizes = [16, 32], strides = [1, 1]} : vector<16x96xf32> to vector<16x32xf32>
    %363 = vector.extract_strided_slice %337 {offsets = [0, 64], sizes = [16, 32], strides = [1, 1]} : vector<16x96xf32> to vector<16x32xf32>
    %364 = vector.broadcast %6 : vector<1x32xf32> to vector<16x32xf32>
    %365 = arith.addf %363, %364 : vector<16x32xf32>
    %366 = arith.mulf %349, %365 : vector<16x32xf32>
    %367 = arith.addf %362, %366 : vector<16x32xf32>
    %368 = math.tanh %367 : vector<16x32xf32>
    %cst_106 = arith.constant 1.000000e+00 : f32
    %369 = vector.broadcast %cst_106 : f32 to vector<16x32xf32>
    %370 = arith.subf %369, %361 : vector<16x32xf32>
    %371 = arith.mulf %370, %368 : vector<16x32xf32>
    %372 = arith.mulf %361, %327 : vector<16x32xf32>
    %373 = arith.addf %371, %372 : vector<16x32xf32>
    %374 = arith.index_cast %331 : i32 to index
    %c0_107 = arith.constant 0 : index
    %375 = vector.load %arg13[%374, %c0_107] : memref<128x32xf32, #tpu.memory_space<vmem>>, vector<16x32xf32>
    tpu.vector_store %arg13[%374, %c0_107], %373 {strides = array<i32>} : memref<128x32xf32, #tpu.memory_space<vmem>>, vector<16x32xf32>,
    %c8_i32 = arith.constant 8 : i32
    %c0_108 = arith.constant 0 : index
    %c0_109 = arith.constant 0 : index
    %376 = vector.load %arg13[%c0_108, %c0_109] : memref<128x32xf32, #tpu.memory_space<vmem>>, vector<128x32xf32>
    %377 = arith.truncf %376 : vector<128x32xf32> to vector<128x32xbf16>
    %c0_110 = arith.constant 0 : index
    %c0_111 = arith.constant 0 : index
    %c0_112 = arith.constant 0 : index
    %378 = vector.load %arg6[%c0_110, %c0_111, %c0_112] : memref<1x32x32xbf16, #tpu.memory_space<vmem>>, vector<1x32x32xbf16>
    %379 = vector.shape_cast %378 : vector<1x32x32xbf16> to vector<32x32xbf16>
    %cst_113 = arith.constant dense<0.000000e+00> : vector<128x32xf32>
    %380 = tpu.matmul %377, %379, %cst_113 {dimension_numbers = #tpu.dot_dimension_numbers<[1], [0], [0], [1], [0, 0, 1, 1], [], []>} : vector<128x32xbf16>, vector<32x32xbf16>, vector<128x32xf32> -> vector<128x32xf32>
    %381 = math.tanh %380 : vector<128x32xf32>
    %c0_114 = arith.constant 0 : index
    %c0_115 = arith.constant 0 : index
    %c0_116 = arith.constant 0 : index
    %382 = vector.load %arg7[%c0_114, %c0_115, %c0_116] : memref<1x1x32xf32, #tpu.memory_space<vmem>>, vector<1x1x32xf32>
    %383 = vector.shape_cast %382 : vector<1x1x32xf32> to vector<1x32xf32>
    %384 = vector.broadcast %383 : vector<1x32xf32> to vector<128x32xf32>
    %385 = arith.mulf %381, %384 : vector<128x32xf32>
    %cst_117 = arith.constant dense<0.000000e+00> : vector<128xf32>
    %386 = vector.multi_reduction <add>, %385, %cst_117 [1] : vector<128x32xf32> to vector<128xf32>
    %387 = vector.shape_cast %386 : vector<128xf32> to vector<128x1xf32>
    %c0_118 = arith.constant 0 : index
    %c0_119 = arith.constant 0 : index
    %388 = vector.load %arg14[%c0_118, %c0_119] : memref<128x1xf32, #tpu.memory_space<vmem>>, vector<128x1xf32>
    tpu.vector_store %arg14[%c0_118, %c0_119], %387 {strides = array<i32>} : memref<128x1xf32, #tpu.memory_space<vmem>>, vector<128x1xf32>,
    %c0_120 = arith.constant 0 : index
    %c0_121 = arith.constant 0 : index
    %c0_122 = arith.constant 0 : index
    %c0_123 = arith.constant 0 : index
    %389 = vector.load %arg3[%c0_120, %c0_121, %c0_122, %c0_123] : memref<1x1x16x1xi32, #tpu.memory_space<vmem>>, vector<1x1x16x1xi32>
    %390 = vector.shape_cast %389 : vector<1x1x16x1xi32> to vector<16x1xi32>
    %cst_124 = arith.constant -1.000000e+30 : f32
    %391 = vector.broadcast %cst_124 : f32 to vector<16x1xf32>
    %cst_125 = arith.constant 0.000000e+00 : f32
    %392 = vector.broadcast %cst_125 : f32 to vector<16x1xf32>
    %cst_126 = arith.constant 0.000000e+00 : f32
    %393 = vector.broadcast %cst_126 : f32 to vector<16x32xf32>
    %c0_i32_127 = arith.constant 0 : i32
    %c16_i32_128 = arith.constant 16 : i32
    %394 = arith.muli %c0_i32_127, %c16_i32_128 : i32
    %395 = tpu.assume_multiple %394, 16 : i32
    %396 = arith.index_cast %395 : i32 to index
    %c0_129 = arith.constant 0 : index
    %397 = vector.load %arg14[%396, %c0_129] : memref<128x1xf32, #tpu.memory_space<vmem>>, vector<16x1xf32>
    %398 = vector.broadcast %c0_i32_127 : i32 to vector<16x1xi32>
    %399 = arith.cmpi slt, %398, %390 : vector<16x1xi32>
    %cst_130 = arith.constant -1.000000e+30 : f32
    %400 = vector.broadcast %cst_130 : f32 to vector<16x1xf32>
    %401 = arith.select %399, %397, %400 : vector<16x1xi1>, vector<16x1xf32>
    %402 = arith.maximumf %391, %401 : vector<16x1xf32>
    %403 = arith.subf %391, %402 : vector<16x1xf32>
    %404 = math.exp %403 : vector<16x1xf32>
    %405 = arith.subf %401, %402 : vector<16x1xf32>
    %406 = math.exp %405 : vector<16x1xf32>
    %cst_131 = arith.constant 0.000000e+00 : f32
    %407 = vector.broadcast %cst_131 : f32 to vector<16x1xf32>
    %408 = arith.select %399, %406, %407 : vector<16x1xi1>, vector<16x1xf32>
    %409 = arith.mulf %392, %404 : vector<16x1xf32>
    %410 = arith.addf %409, %408 : vector<16x1xf32>
    %411 = vector.broadcast %404 : vector<16x1xf32> to vector<16x32xf32>
    %412 = arith.mulf %393, %411 : vector<16x32xf32>
    %413 = arith.index_cast %395 : i32 to index
    %c0_132 = arith.constant 0 : index
    %414 = vector.load %arg13[%413, %c0_132] : memref<128x32xf32, #tpu.memory_space<vmem>>, vector<16x32xf32>
    %415 = vector.broadcast %408 : vector<16x1xf32> to vector<16x32xf32>
    %416 = arith.mulf %415, %414 : vector<16x32xf32>
    %417 = arith.addf %412, %416 : vector<16x32xf32>
    %c1_i32_133 = arith.constant 1 : i32
    %c16_i32_134 = arith.constant 16 : i32
    %418 = arith.muli %c1_i32_133, %c16_i32_134 : i32
    %419 = tpu.assume_multiple %418, 16 : i32
    %420 = arith.index_cast %419 : i32 to index
    %c0_135 = arith.constant 0 : index
    %421 = vector.load %arg14[%420, %c0_135] : memref<128x1xf32, #tpu.memory_space<vmem>>, vector<16x1xf32>
    %422 = vector.broadcast %c1_i32_133 : i32 to vector<16x1xi32>
    %423 = arith.cmpi slt, %422, %390 : vector<16x1xi32>
    %cst_136 = arith.constant -1.000000e+30 : f32
    %424 = vector.broadcast %cst_136 : f32 to vector<16x1xf32>
    %425 = arith.select %423, %421, %424 : vector<16x1xi1>, vector<16x1xf32>
    %426 = arith.maximumf %402, %425 : vector<16x1xf32>
    %427 = arith.subf %402, %426 : vector<16x1xf32>
    %428 = math.exp %427 : vector<16x1xf32>
    %429 = arith.subf %425, %426 : vector<16x1xf32>
    %430 = math.exp %429 : vector<16x1xf32>
    %cst_137 = arith.constant 0.000000e+00 : f32
    %431 = vector.broadcast %cst_137 : f32 to vector<16x1xf32>
    %432 = arith.select %423, %430, %431 : vector<16x1xi1>, vector<16x1xf32>
    %433 = arith.mulf %410, %428 : vector<16x1xf32>
    %434 = arith.addf %433, %432 : vector<16x1xf32>
    %435 = vector.broadcast %428 : vector<16x1xf32> to vector<16x32xf32>
    %436 = arith.mulf %417, %435 : vector<16x32xf32>
    %437 = arith.index_cast %419 : i32 to index
    %c0_138 = arith.constant 0 : index
    %438 = vector.load %arg13[%437, %c0_138] : memref<128x32xf32, #tpu.memory_space<vmem>>, vector<16x32xf32>
    %439 = vector.broadcast %432 : vector<16x1xf32> to vector<16x32xf32>
    %440 = arith.mulf %439, %438 : vector<16x32xf32>
    %441 = arith.addf %436, %440 : vector<16x32xf32>
    %c2_i32_139 = arith.constant 2 : i32
    %c16_i32_140 = arith.constant 16 : i32
    %442 = arith.muli %c2_i32_139, %c16_i32_140 : i32
    %443 = tpu.assume_multiple %442, 16 : i32
    %444 = arith.index_cast %443 : i32 to index
    %c0_141 = arith.constant 0 : index
    %445 = vector.load %arg14[%444, %c0_141] : memref<128x1xf32, #tpu.memory_space<vmem>>, vector<16x1xf32>
    %446 = vector.broadcast %c2_i32_139 : i32 to vector<16x1xi32>
    %447 = arith.cmpi slt, %446, %390 : vector<16x1xi32>
    %cst_142 = arith.constant -1.000000e+30 : f32
    %448 = vector.broadcast %cst_142 : f32 to vector<16x1xf32>
    %449 = arith.select %447, %445, %448 : vector<16x1xi1>, vector<16x1xf32>
    %450 = arith.maximumf %426, %449 : vector<16x1xf32>
    %451 = arith.subf %426, %450 : vector<16x1xf32>
    %452 = math.exp %451 : vector<16x1xf32>
    %453 = arith.subf %449, %450 : vector<16x1xf32>
    %454 = math.exp %453 : vector<16x1xf32>
    %cst_143 = arith.constant 0.000000e+00 : f32
    %455 = vector.broadcast %cst_143 : f32 to vector<16x1xf32>
    %456 = arith.select %447, %454, %455 : vector<16x1xi1>, vector<16x1xf32>
    %457 = arith.mulf %434, %452 : vector<16x1xf32>
    %458 = arith.addf %457, %456 : vector<16x1xf32>
    %459 = vector.broadcast %452 : vector<16x1xf32> to vector<16x32xf32>
    %460 = arith.mulf %441, %459 : vector<16x32xf32>
    %461 = arith.index_cast %443 : i32 to index
    %c0_144 = arith.constant 0 : index
    %462 = vector.load %arg13[%461, %c0_144] : memref<128x32xf32, #tpu.memory_space<vmem>>, vector<16x32xf32>
    %463 = vector.broadcast %456 : vector<16x1xf32> to vector<16x32xf32>
    %464 = arith.mulf %463, %462 : vector<16x32xf32>
    %465 = arith.addf %460, %464 : vector<16x32xf32>
    %c3_i32_145 = arith.constant 3 : i32
    %c16_i32_146 = arith.constant 16 : i32
    %466 = arith.muli %c3_i32_145, %c16_i32_146 : i32
    %467 = tpu.assume_multiple %466, 16 : i32
    %468 = arith.index_cast %467 : i32 to index
    %c0_147 = arith.constant 0 : index
    %469 = vector.load %arg14[%468, %c0_147] : memref<128x1xf32, #tpu.memory_space<vmem>>, vector<16x1xf32>
    %470 = vector.broadcast %c3_i32_145 : i32 to vector<16x1xi32>
    %471 = arith.cmpi slt, %470, %390 : vector<16x1xi32>
    %cst_148 = arith.constant -1.000000e+30 : f32
    %472 = vector.broadcast %cst_148 : f32 to vector<16x1xf32>
    %473 = arith.select %471, %469, %472 : vector<16x1xi1>, vector<16x1xf32>
    %474 = arith.maximumf %450, %473 : vector<16x1xf32>
    %475 = arith.subf %450, %474 : vector<16x1xf32>
    %476 = math.exp %475 : vector<16x1xf32>
    %477 = arith.subf %473, %474 : vector<16x1xf32>
    %478 = math.exp %477 : vector<16x1xf32>
    %cst_149 = arith.constant 0.000000e+00 : f32
    %479 = vector.broadcast %cst_149 : f32 to vector<16x1xf32>
    %480 = arith.select %471, %478, %479 : vector<16x1xi1>, vector<16x1xf32>
    %481 = arith.mulf %458, %476 : vector<16x1xf32>
    %482 = arith.addf %481, %480 : vector<16x1xf32>
    %483 = vector.broadcast %476 : vector<16x1xf32> to vector<16x32xf32>
    %484 = arith.mulf %465, %483 : vector<16x32xf32>
    %485 = arith.index_cast %467 : i32 to index
    %c0_150 = arith.constant 0 : index
    %486 = vector.load %arg13[%485, %c0_150] : memref<128x32xf32, #tpu.memory_space<vmem>>, vector<16x32xf32>
    %487 = vector.broadcast %480 : vector<16x1xf32> to vector<16x32xf32>
    %488 = arith.mulf %487, %486 : vector<16x32xf32>
    %489 = arith.addf %484, %488 : vector<16x32xf32>
    %c4_i32_151 = arith.constant 4 : i32
    %c16_i32_152 = arith.constant 16 : i32
    %490 = arith.muli %c4_i32_151, %c16_i32_152 : i32
    %491 = tpu.assume_multiple %490, 16 : i32
    %492 = arith.index_cast %491 : i32 to index
    %c0_153 = arith.constant 0 : index
    %493 = vector.load %arg14[%492, %c0_153] : memref<128x1xf32, #tpu.memory_space<vmem>>, vector<16x1xf32>
    %494 = vector.broadcast %c4_i32_151 : i32 to vector<16x1xi32>
    %495 = arith.cmpi slt, %494, %390 : vector<16x1xi32>
    %cst_154 = arith.constant -1.000000e+30 : f32
    %496 = vector.broadcast %cst_154 : f32 to vector<16x1xf32>
    %497 = arith.select %495, %493, %496 : vector<16x1xi1>, vector<16x1xf32>
    %498 = arith.maximumf %474, %497 : vector<16x1xf32>
    %499 = arith.subf %474, %498 : vector<16x1xf32>
    %500 = math.exp %499 : vector<16x1xf32>
    %501 = arith.subf %497, %498 : vector<16x1xf32>
    %502 = math.exp %501 : vector<16x1xf32>
    %cst_155 = arith.constant 0.000000e+00 : f32
    %503 = vector.broadcast %cst_155 : f32 to vector<16x1xf32>
    %504 = arith.select %495, %502, %503 : vector<16x1xi1>, vector<16x1xf32>
    %505 = arith.mulf %482, %500 : vector<16x1xf32>
    %506 = arith.addf %505, %504 : vector<16x1xf32>
    %507 = vector.broadcast %500 : vector<16x1xf32> to vector<16x32xf32>
    %508 = arith.mulf %489, %507 : vector<16x32xf32>
    %509 = arith.index_cast %491 : i32 to index
    %c0_156 = arith.constant 0 : index
    %510 = vector.load %arg13[%509, %c0_156] : memref<128x32xf32, #tpu.memory_space<vmem>>, vector<16x32xf32>
    %511 = vector.broadcast %504 : vector<16x1xf32> to vector<16x32xf32>
    %512 = arith.mulf %511, %510 : vector<16x32xf32>
    %513 = arith.addf %508, %512 : vector<16x32xf32>
    %c5_i32_157 = arith.constant 5 : i32
    %c16_i32_158 = arith.constant 16 : i32
    %514 = arith.muli %c5_i32_157, %c16_i32_158 : i32
    %515 = tpu.assume_multiple %514, 16 : i32
    %516 = arith.index_cast %515 : i32 to index
    %c0_159 = arith.constant 0 : index
    %517 = vector.load %arg14[%516, %c0_159] : memref<128x1xf32, #tpu.memory_space<vmem>>, vector<16x1xf32>
    %518 = vector.broadcast %c5_i32_157 : i32 to vector<16x1xi32>
    %519 = arith.cmpi slt, %518, %390 : vector<16x1xi32>
    %cst_160 = arith.constant -1.000000e+30 : f32
    %520 = vector.broadcast %cst_160 : f32 to vector<16x1xf32>
    %521 = arith.select %519, %517, %520 : vector<16x1xi1>, vector<16x1xf32>
    %522 = arith.maximumf %498, %521 : vector<16x1xf32>
    %523 = arith.subf %498, %522 : vector<16x1xf32>
    %524 = math.exp %523 : vector<16x1xf32>
    %525 = arith.subf %521, %522 : vector<16x1xf32>
    %526 = math.exp %525 : vector<16x1xf32>
    %cst_161 = arith.constant 0.000000e+00 : f32
    %527 = vector.broadcast %cst_161 : f32 to vector<16x1xf32>
    %528 = arith.select %519, %526, %527 : vector<16x1xi1>, vector<16x1xf32>
    %529 = arith.mulf %506, %524 : vector<16x1xf32>
    %530 = arith.addf %529, %528 : vector<16x1xf32>
    %531 = vector.broadcast %524 : vector<16x1xf32> to vector<16x32xf32>
    %532 = arith.mulf %513, %531 : vector<16x32xf32>
    %533 = arith.index_cast %515 : i32 to index
    %c0_162 = arith.constant 0 : index
    %534 = vector.load %arg13[%533, %c0_162] : memref<128x32xf32, #tpu.memory_space<vmem>>, vector<16x32xf32>
    %535 = vector.broadcast %528 : vector<16x1xf32> to vector<16x32xf32>
    %536 = arith.mulf %535, %534 : vector<16x32xf32>
    %537 = arith.addf %532, %536 : vector<16x32xf32>
    %c6_i32_163 = arith.constant 6 : i32
    %c16_i32_164 = arith.constant 16 : i32
    %538 = arith.muli %c6_i32_163, %c16_i32_164 : i32
    %539 = tpu.assume_multiple %538, 16 : i32
    %540 = arith.index_cast %539 : i32 to index
    %c0_165 = arith.constant 0 : index
    %541 = vector.load %arg14[%540, %c0_165] : memref<128x1xf32, #tpu.memory_space<vmem>>, vector<16x1xf32>
    %542 = vector.broadcast %c6_i32_163 : i32 to vector<16x1xi32>
    %543 = arith.cmpi slt, %542, %390 : vector<16x1xi32>
    %cst_166 = arith.constant -1.000000e+30 : f32
    %544 = vector.broadcast %cst_166 : f32 to vector<16x1xf32>
    %545 = arith.select %543, %541, %544 : vector<16x1xi1>, vector<16x1xf32>
    %546 = arith.maximumf %522, %545 : vector<16x1xf32>
    %547 = arith.subf %522, %546 : vector<16x1xf32>
    %548 = math.exp %547 : vector<16x1xf32>
    %549 = arith.subf %545, %546 : vector<16x1xf32>
    %550 = math.exp %549 : vector<16x1xf32>
    %cst_167 = arith.constant 0.000000e+00 : f32
    %551 = vector.broadcast %cst_167 : f32 to vector<16x1xf32>
    %552 = arith.select %543, %550, %551 : vector<16x1xi1>, vector<16x1xf32>
    %553 = arith.mulf %530, %548 : vector<16x1xf32>
    %554 = arith.addf %553, %552 : vector<16x1xf32>
    %555 = vector.broadcast %548 : vector<16x1xf32> to vector<16x32xf32>
    %556 = arith.mulf %537, %555 : vector<16x32xf32>
    %557 = arith.index_cast %539 : i32 to index
    %c0_168 = arith.constant 0 : index
    %558 = vector.load %arg13[%557, %c0_168] : memref<128x32xf32, #tpu.memory_space<vmem>>, vector<16x32xf32>
    %559 = vector.broadcast %552 : vector<16x1xf32> to vector<16x32xf32>
    %560 = arith.mulf %559, %558 : vector<16x32xf32>
    %561 = arith.addf %556, %560 : vector<16x32xf32>
    %c7_i32_169 = arith.constant 7 : i32
    %c16_i32_170 = arith.constant 16 : i32
    %562 = arith.muli %c7_i32_169, %c16_i32_170 : i32
    %563 = tpu.assume_multiple %562, 16 : i32
    %564 = arith.index_cast %563 : i32 to index
    %c0_171 = arith.constant 0 : index
    %565 = vector.load %arg14[%564, %c0_171] : memref<128x1xf32, #tpu.memory_space<vmem>>, vector<16x1xf32>
    %566 = vector.broadcast %c7_i32_169 : i32 to vector<16x1xi32>
    %567 = arith.cmpi slt, %566, %390 : vector<16x1xi32>
    %cst_172 = arith.constant -1.000000e+30 : f32
    %568 = vector.broadcast %cst_172 : f32 to vector<16x1xf32>
    %569 = arith.select %567, %565, %568 : vector<16x1xi1>, vector<16x1xf32>
    %570 = arith.maximumf %546, %569 : vector<16x1xf32>
    %571 = arith.subf %546, %570 : vector<16x1xf32>
    %572 = math.exp %571 : vector<16x1xf32>
    %573 = arith.subf %569, %570 : vector<16x1xf32>
    %574 = math.exp %573 : vector<16x1xf32>
    %cst_173 = arith.constant 0.000000e+00 : f32
    %575 = vector.broadcast %cst_173 : f32 to vector<16x1xf32>
    %576 = arith.select %567, %574, %575 : vector<16x1xi1>, vector<16x1xf32>
    %577 = arith.mulf %554, %572 : vector<16x1xf32>
    %578 = arith.addf %577, %576 : vector<16x1xf32>
    %579 = vector.broadcast %572 : vector<16x1xf32> to vector<16x32xf32>
    %580 = arith.mulf %561, %579 : vector<16x32xf32>
    %581 = arith.index_cast %563 : i32 to index
    %c0_174 = arith.constant 0 : index
    %582 = vector.load %arg13[%581, %c0_174] : memref<128x32xf32, #tpu.memory_space<vmem>>, vector<16x32xf32>
    %583 = vector.broadcast %576 : vector<16x1xf32> to vector<16x32xf32>
    %584 = arith.mulf %583, %582 : vector<16x32xf32>
    %585 = arith.addf %580, %584 : vector<16x32xf32>
    %c8_i32_175 = arith.constant 8 : i32
    %cst_176 = arith.constant 9.99999968E-21 : f32
    %586 = vector.broadcast %cst_176 : f32 to vector<16x1xf32>
    %587 = arith.maximumf %578, %586 : vector<16x1xf32>
    %588 = tpu.reciprocal %587 {approx = true} : vector<16x1xf32> -> vector<16x1xf32>
    %589 = vector.broadcast %588 : vector<16x1xf32> to vector<16x32xf32>
    %590 = arith.mulf %585, %589 : vector<16x32xf32>
    %591 = arith.truncf %590 : vector<16x32xf32> to vector<16x32xbf16>
    %c0_177 = arith.constant 0 : index
    %c0_178 = arith.constant 0 : index
    %c0_179 = arith.constant 0 : index
    %592 = vector.load %arg8[%c0_177, %c0_178, %c0_179] : memref<1x32x128xbf16, #tpu.memory_space<vmem>>, vector<1x32x128xbf16>
    %593 = vector.shape_cast %592 : vector<1x32x128xbf16> to vector<32x128xbf16>
    %cst_180 = arith.constant dense<0.000000e+00> : vector<16x128xf32>
    %594 = tpu.matmul %591, %593, %cst_180 {dimension_numbers = #tpu.dot_dimension_numbers<[1], [0], [0], [1], [0, 0, 1, 1], [], []>} : vector<16x32xbf16>, vector<32x128xbf16>, vector<16x128xf32> -> vector<16x128xf32>
    %c0_181 = arith.constant 0 : index
    %c0_182 = arith.constant 0 : index
    %c0_183 = arith.constant 0 : index
    %595 = vector.load %arg9[%c0_181, %c0_182, %c0_183] : memref<1x1x128xf32, #tpu.memory_space<vmem>>, vector<1x1x128xf32>
    %596 = vector.shape_cast %595 : vector<1x1x128xf32> to vector<1x128xf32>
    %597 = vector.broadcast %596 : vector<1x128xf32> to vector<16x128xf32>
    %598 = arith.addf %594, %597 : vector<16x128xf32>
    %cst_184 = arith.constant 5.000000e-01 : f32
    %599 = vector.broadcast %cst_184 : f32 to vector<16x128xf32>
    %600 = arith.mulf %599, %598 : vector<16x128xf32>
    %cst_185 = arith.constant 0.797884583 : f32
    %601 = vector.broadcast %cst_185 : f32 to vector<16x128xf32>
    %602 = arith.mulf %598, %601 : vector<16x128xf32>
    %cst_186 = arith.constant 4.471500e-02 : f32
    %603 = vector.broadcast %cst_186 : f32 to vector<16x128xf32>
    %604 = arith.mulf %603, %598 : vector<16x128xf32>
    %605 = arith.mulf %604, %598 : vector<16x128xf32>
    %cst_187 = arith.constant 1.000000e+00 : f32
    %606 = vector.broadcast %cst_187 : f32 to vector<16x128xf32>
    %607 = arith.addf %606, %605 : vector<16x128xf32>
    %608 = arith.mulf %602, %607 : vector<16x128xf32>
    %609 = math.tanh %608 : vector<16x128xf32>
    %cst_188 = arith.constant 1.000000e+00 : f32
    %610 = vector.broadcast %cst_188 : f32 to vector<16x128xf32>
    %611 = arith.addf %610, %609 : vector<16x128xf32>
    %612 = arith.mulf %600, %611 : vector<16x128xf32>
    %613 = arith.truncf %612 : vector<16x128xf32> to vector<16x128xbf16>
    %c0_189 = arith.constant 0 : index
    %c0_190 = arith.constant 0 : index
    %c0_191 = arith.constant 0 : index
    %614 = vector.load %arg10[%c0_189, %c0_190, %c0_191] : memref<1x128x32xbf16, #tpu.memory_space<vmem>>, vector<1x128x32xbf16>
    %615 = vector.shape_cast %614 : vector<1x128x32xbf16> to vector<128x32xbf16>
    %cst_192 = arith.constant dense<0.000000e+00> : vector<16x32xf32>
    %616 = tpu.matmul %613, %615, %cst_192 {dimension_numbers = #tpu.dot_dimension_numbers<[1], [0], [0], [1], [0, 0, 1, 1], [], []>} : vector<16x128xbf16>, vector<128x32xbf16>, vector<16x32xf32> -> vector<16x32xf32>
    %c0_193 = arith.constant 0 : index
    %c0_194 = arith.constant 0 : index
    %c0_195 = arith.constant 0 : index
    %617 = vector.load %arg11[%c0_193, %c0_194, %c0_195] : memref<1x1x32xf32, #tpu.memory_space<vmem>>, vector<1x1x32xf32>
    %618 = vector.shape_cast %617 : vector<1x1x32xf32> to vector<1x32xf32>
    %619 = vector.broadcast %618 : vector<1x32xf32> to vector<16x32xf32>
    %620 = arith.addf %616, %619 : vector<16x32xf32>
    %c0_196 = arith.constant 0 : index
    %c0_197 = arith.constant 0 : index
    %c0_198 = arith.constant 0 : index
    %c0_199 = arith.constant 0 : index
    %621 = vector.load %arg12[%c0_196, %c0_197, %c0_198, %c0_199] : memref<1x1x16x32xf32, #tpu.memory_space<vmem>>, vector<1x1x16x32xf32>
    %622 = vector.shape_cast %621 : vector<1x1x16x32xf32> to vector<16x32xf32>
    %623 = vector.shape_cast %620 : vector<16x32xf32> to vector<1x1x16x32xf32>
    tpu.vector_store %arg12[%c0_196, %c0_197, %c0_198, %c0_199], %623 {strides = array<i32>} : memref<1x1x16x32xf32, #tpu.memory_space<vmem>>, vector<1x1x16x32xf32>,
    return
  }
  func.func @transform_0(%arg0: i32, %arg1: i32) -> (i32, i32, i32, i32) {
    %c0_i32 = arith.constant 0 : i32
    %c0_i32_0 = arith.constant 0 : i32
    %c0_i32_1 = arith.constant 0 : i32
    return %arg0, %arg1, %c0_i32, %c0_i32_0 : i32, i32, i32, i32
  }
  func.func @transform_1(%arg0: i32, %arg1: i32) -> (i32, i32, i32, i32) {
    %c0_i32 = arith.constant 0 : i32
    %c0_i32_0 = arith.constant 0 : i32
    %c0_i32_1 = arith.constant 0 : i32
    return %arg0, %arg1, %c0_i32, %c0_i32_0 : i32, i32, i32, i32
  }
  func.func @transform_2(%arg0: i32, %arg1: i32) -> (i32, i32, i32) {
    %c0_i32 = arith.constant 0 : i32
    %c0_i32_0 = arith.constant 0 : i32
    %c0_i32_1 = arith.constant 0 : i32
    return %arg0, %c0_i32, %c0_i32_0 : i32, i32, i32
  }
  func.func @transform_3(%arg0: i32, %arg1: i32) -> (i32, i32, i32) {
    %c0_i32 = arith.constant 0 : i32
    %c0_i32_0 = arith.constant 0 : i32
    %c0_i32_1 = arith.constant 0 : i32
    return %arg0, %c0_i32, %c0_i32_0 : i32, i32, i32
  }
  func.func @transform_4(%arg0: i32, %arg1: i32) -> (i32, i32, i32) {
    %c0_i32 = arith.constant 0 : i32
    %c0_i32_0 = arith.constant 0 : i32
    %c0_i32_1 = arith.constant 0 : i32
    return %arg0, %c0_i32, %c0_i32_0 : i32, i32, i32
  }
  func.func @transform_5(%arg0: i32, %arg1: i32) -> (i32, i32, i32) {
    %c0_i32 = arith.constant 0 : i32
    %c0_i32_0 = arith.constant 0 : i32
    %c0_i32_1 = arith.constant 0 : i32
    return %arg0, %c0_i32, %c0_i32_0 : i32, i32, i32
  }
  func.func @transform_6(%arg0: i32, %arg1: i32) -> (i32, i32, i32) {
    %c0_i32 = arith.constant 0 : i32
    %c0_i32_0 = arith.constant 0 : i32
    %c0_i32_1 = arith.constant 0 : i32
    return %arg0, %c0_i32, %c0_i32_0 : i32, i32, i32
  }
  func.func @transform_7(%arg0: i32, %arg1: i32) -> (i32, i32, i32) {
    %c0_i32 = arith.constant 0 : i32
    %c0_i32_0 = arith.constant 0 : i32
    %c0_i32_1 = arith.constant 0 : i32
    return %arg0, %c0_i32, %c0_i32_0 : i32, i32, i32
  }
  func.func @transform_8(%arg0: i32, %arg1: i32) -> (i32, i32, i32) {
    %c0_i32 = arith.constant 0 : i32
    %c0_i32_0 = arith.constant 0 : i32
    %c0_i32_1 = arith.constant 0 : i32
    return %arg0, %c0_i32, %c0_i32_0 : i32, i32, i32
  }
  func.func @transform_9(%arg0: i32, %arg1: i32) -> (i32, i32, i32) {
    %c0_i32 = arith.constant 0 : i32
    %c0_i32_0 = arith.constant 0 : i32
    %c0_i32_1 = arith.constant 0 : i32
    return %arg0, %c0_i32, %c0_i32_0 : i32, i32, i32
  }
  func.func @transform_10(%arg0: i32, %arg1: i32) -> (i32, i32, i32, i32) {
    %c0_i32 = arith.constant 0 : i32
    %c0_i32_0 = arith.constant 0 : i32
    %c0_i32_1 = arith.constant 0 : i32
    return %arg0, %arg1, %c0_i32, %c0_i32_0 : i32, i32, i32, i32
  }
}

</mosaic_0001>

<bundles_post_ra>
// kernel: tpu_custom_call.1
= control target key start
LH: loop header
LB: loop body
LE: loop exit
PB: predicated region body
PF: predicated region fallthrough
CT: control target
= control target key end

     0   :  { %s5037_s0 = inlined_call_operand.hbm [shape: bf16[3,1,128,96], index: 0, kind: input, shape index: {}]   ;;  %s5038_s1 = inlined_call_operand.hbm [shape: s32[3,1,16,1], index: 1, kind: input, shape index: {}]   ;;  %s5039_s2 = inlined_call_operand.hbm [shape: bf16[3,32,96], index: 2, kind: input, shape index: {}]   ;;  %s5040_s3 = inlined_call_operand.hbm [shape: f32[3,1,96], index: 3, kind: input, shape index: {}]   ;;  %s5041_s4 = inlined_call_operand.hbm [shape: bf16[3,32,32], index: 4, kind: input, shape index: {}]   ;;  %s5042_s5 = inlined_call_operand.hbm [shape: f32[3,1,32], index: 5, kind: input, shape index: {}]   ;;  %s5043_s6 = inlined_call_operand.hbm [shape: bf16[3,32,128], index: 6, kind: input, shape index: {}]   ;;  %s5044_s7 = inlined_call_operand.hbm [shape: f32[3,1,128], index: 7, kind: input, shape index: {}]   ;;  %s5045_s8 = inlined_call_operand.hbm [shape: bf16[3,128,32], index: 8, kind: input, shape index: {}]   ;;  %s5046_s9 = inlined_call_operand.hbm [shape: f32[3,1,32], index: 9, kind: input, shape index: {}]   ;;  %s5047_s10 = inlined_call_operand.hbm [shape: f32[3,1,16,32], index: 10, kind: output, shape index: {}]  }
   0x1   :  { %5068 = sst [smem:[#allocation40_spill]] %s5037_s0 }
   0x2   :  { %5069 = sst [smem:[#allocation41_spill]] %s5038_s1 }
   0x3   :  { %5070 = sst [smem:[#allocation42_spill]] %s5039_s2 }
   0x4   :  { %5071 = sst [smem:[#allocation43_spill]] %s5040_s3 }
   0x5   :  { %5072 = sst [smem:[#allocation44_spill]] %s5042_s5 }
   0x6   :  { %5073 = sst [smem:[#allocation45_spill]] %s5044_s7 }
   0x7   :  { %5074 = sst [smem:[#allocation46_spill]] %s5047_s10 }
   0x8   :  { %15 = vsyncpa [#allocation5], 0 }
   0x9   :  { %17 = vsyncpa [#allocation5 + $0x1], 0 }
   0xa   :  { %18 = vsyncpa [#allocation8], 0 }
   0xb   :  { %20 = vsyncpa [#allocation8 + $0x1], 0 }
   0xc   :  { %21 = vsyncpa [#allocation11], 0 }
   0xd   :  { %23 = vsyncpa [#allocation11 + $0x1], 0 }
   0xe   :  { %24 = vsyncpa [#allocation14], 0 }
   0xf   :  { %26 = vsyncpa [#allocation14 + $0x1], 0 }
  0x10   :  { %27 = vsyncpa [#allocation17], 0 }
  0x11   :  { %29 = vsyncpa [#allocation17 + $0x1], 0 }
  0x12   :  { %30 = vsyncpa [#allocation20], 0 }
  0x13   :  { %32 = vsyncpa [#allocation20 + $0x1], 0 }
  0x14   :  { %33 = vsyncpa [#allocation6], 0 }
  0x15   :  { %35 = vsyncpa [#allocation6 + $0x1], 0  ;;  %s3957_s13 = smov 0   ;;  %s3959_s14 = smov 0  }
  0x16   :  { %s3961_s15 = smov 0   ;;  %s3963_s16 = smov 0  }
  0x17   :  { %s3965_s17 = smov 0   ;;  %s3967_s18 = smov 0  }
  0x18 LB: > { %5075 = sst [smem:[#allocation29_spill]] %s3858_s13  ;;  %s3988_s19 = sadd.s32 4294967295, %s3878_s18   ;;  %s3878_s18 = sphi %s3967_s18, %s41_s18   ;;  %s3874_s17 = sphi %s3965_s17, %s5128_s17   ;;  %s3870_s16 = sphi %s3963_s16, %s5127_s16   ;;  %s3866_s15 = sphi %s3961_s15, %s5126_s15   ;;  %s3862_s14 = sphi %s3959_s14, %s5130_s14   ;;  %s3858_s13 = sphi %s3957_s13, %s5129_s13  }
  0x19   : > { %5076 = sst [smem:[#allocation30_spill]] %s3866_s15  ;;  %s2884_s20 = sadd.s32 4294967294, %s3878_s18  }
  0x1a   : > { %5077 = sst [smem:[#allocation31_spill]] %s3870_s16  ;;  %s53_s21 = sadd.s32 1, %s3874_s17 }
  0x1b   : > { %5078 = sst [smem:[#allocation32_spill]] %s3874_s17  ;;  %s62_s22 = sadd.s32 1, %s3866_s15 }
  0x1c   : > { %5079 = sst [smem:[#allocation33_spill]] %s3878_s18  ;;  %p55_p0 = scmp.ge.s32.totalorder %s53_s21, 3 }
  0x1d   : > { %5080 = sst [smem:[#allocation34_spill]] %s3988_s19  ;;  %p69_p1 = scmp.ne.s32.totalorder %s3866_s15, %s3862_s14 }
  0x1e   : > { %p70_p2 = scmp.eq.s32.totalorder %s3878_s18, 0  ;;  %p75_p3 = scmp.ne.s32.totalorder %s3862_s14, %s3858_s13 }
  0x1f   : > { %s5132_s21 = smov (%p55_p0, %s53_s21), 0  ;;  %p76_p5 = scmp.eq.s32.totalorder %s3988_s19, 0 }
  0x20   : > { %5081 = sst [smem:[#allocation35_spill]] %s5132_s21  ;;  %p4000_p4 = por %p70_p2, %p69_p1 }
  0x21   : > { %s57_s24 = ssub.s32 %s3874_s17, %s5132_s21  ;;  %p337_p6 = scmp.eq.s32.totalorder %s3988_s19, 2 }
  0x22   : > { %p60_p7 = scmp.eq.s32.totalorder %s57_s24, 0  ;;  %p4008_p8 = por %p76_p5, %p75_p3 }
  0x23   : > { %p4012_p9 = por %p337_p6, %p69_p1  ;;  %p343_p10 = scmp.eq.s32.totalorder %s2884_s20, 2 }
  0x24   : > { %s5083_s25 = scalar_select %p4008_p8, 1, 0 }
  0x25   : > { %s5085_s26 = scalar_select %p4012_p9, 1, 0 }
  0x26   : > { %5084 = sst [smem:[#allocation36_spill]] %s5083_s25  ;;  %p4019_p11 = por %p343_p10, %p75_p3 }
  0x27   : > { %5086 = sst [smem:[#allocation37_spill]] %s5085_s26  ;;  %p3231_p12 = scmp.lt.s32.totalorder %s3878_s18, 3 }
  0x28   : > { %s4017_s27 = scalar_select %p60_p7, %s3866_s15, %s62_s22  }
  0x29   : > { %s5088_s28 = scalar_select %p4019_p11, 1, 0 }
  0x2a   : > { %5087 = sst [smem:[#allocation38_spill]] %s4017_s27  ;;  %s4025_s29 = sand.u32 1, %s3866_s15  }
  0x2b   : > { %5089 = sst [smem:[#allocation39_spill]] %s5088_s28  ;;  %s4028_s30 = sand.u32 1, %s3878_s18  }
  0x2c   : > { %s4031_s11 = sshll.u32 %s4025_s29, 4  ;;  %p4035_p13 = pnand %p3231_p12, %p4000_p4 }
  0x2d   : > { %s4040_s20 = sshll.u32 %s3874_s17, 8  ;;  %s5091_s1 = sld [smem:[#allocation41_spill]] }
  0x2e   : > { %s5090_s12 = scalar_select %p4035_p13, 1, 0 }
  0x2f   : > { %s390_s27 = scalar_lea.vmem [#allocation7], %s4031_s11  ;;  %p4056_p1 = pneg %p4035_p13 }
  0x30   : > { %s399_s23 = sshll.u32 %s390_s27, 4  ;;  %s4049_s23 = int_to_ptr.vmem [resolvable:$true] %s399_s23 }
  0x33   : > { %s4046_s21 = scalar_lea.hbm %s5091_s1, %s4040_s20  ;;  %s3481_s10 = scalar_lea.hbm %s5091_s1, 768 }
  0x34   : > { %s3476_s28 = scalar_lea.hbm %s4046_s21, 256  ;;  %p3482_p4 = scmp.lt.u32.totalorder %s4046_s21, %s5091_s1 }
  0x35   : > { %p3477_p0 = scmp.ne.s32.totalorder %s4046_s21, %s3476_s28  ;;  %p3483_p5 = scmp.lt.u32.totalorder %s3481_s10, %s3476_s28 }
  0x36   : > { %p3485_p7 = scmp.lt.u32.totalorder %s3476_s28, %s4046_s21 }
  0x37   : > { %p3479_p2 = pnand %p4056_p1, %p3477_p0  ;;  %p3484_p6 = por %p3483_p5, %p3482_p4 }
  0x39   : > { %p3480_p3 = pneg %p3479_p2  ;;  %p3486_p10 = por %p3485_p7, %p3484_p6 }
  0x3b   : > { %p3487_p12 = pnand %p3486_p10, %p3480_p3 }
  0x3d   : > { %3490 = shalt.err (!%p3487_p12)
}
  0x3e   : > { %s3491_s15 = scalar_lea.vmem %s4049_s23, 256  ;;  %s3880_s22 = smov [#allocation7]  }
  0x3f   : > { %p3492_p0 = scmp.ne.s32.totalorder %s4049_s23, %s3491_s15  ;;  %s3496_s24 = sshll.u32 %s3880_s22, 4  ;;  %s3497_s24 = int_to_ptr.vmem [resolvable:$false] %s3496_s24 }
  0x40   : > { %s3498_s26 = scalar_lea.vmem %s3497_s24, 512  ;;  %p3499_p9 = scmp.lt.s32.totalorder %s4049_s23, %s3497_s24 }
  0x41   : > { %p3494_p2 = pnand %p3492_p0, %p4056_p1  ;;  %p3500_p8 = scmp.lt.s32.totalorder %s3498_s26, %s3491_s15 }
  0x43   : > { %p3495_p11 = pneg %p3494_p2  ;;  %p3501_p4 = por %p3500_p8, %p3499_p9 }
  0x45   : > { %p3502_p5 = pnand %p3501_p4, %p3495_p11 }
  0x47   : > { %3505 = shalt.err (!%p3502_p5)
}
  0x48   : > { %s3881_s10 = smov 128   ;;  %s3882_s28 = smov 8  }
  0x49   : > { %s5093_s27 = scalar_lea.sflag [#allocation8], %s4028_s30  ;;  %p2909_p3 = scmp.ge.s32.totalorder %s3878_s18, 1 }
  0x4a   : > { %3202 = dma.hbm_to_vmem [thread:$0]  (!%p4035_p13), %s4046_s21, 256, %s4049_s23, %s5093_s27, %s3881_s10, %s3881_s10, %s3882_s28  }
  0x4b   : > { %p559_p6 = scmp.lt.s32.totalorder %s3878_s18, 4  ;;  %s4088_s22 = sshll.u32 %s3874_s17, 4 }
  0x4c   : > { %s5095_s3 = sld [smem:[#allocation43_spill]]  ;;  %s433_s16 = scalar_lea.vmem [#allocation10], %s4025_s29 }
  0x4d   : > { %p4083_p8 = pnand %p2909_p3, %p559_p6  ;;  %s440_s21 = sshll.u32 %s433_s16, 4  ;;  %s441_s21 = int_to_ptr.vmem [resolvable:$true] %s440_s21 }
  0x4f   : > { %s5094_s15 = scalar_select %p4083_p8, 1, 0 }
  0x52   : > { %s4094_s1 = scalar_lea.hbm %s5095_s3, %s4088_s22  ;;  %s3511_s18 = scalar_lea.hbm %s5095_s3, 48 }
  0x53   : > { %s3506_s10 = scalar_lea.hbm %s4094_s1, 16  ;;  %p3512_p10 = scmp.lt.u32.totalorder %s4094_s1, %s5095_s3 }
  0x54   : > { %p3507_p9 = scmp.ne.s32.totalorder %s4094_s1, %s3506_s10  ;;  %p3513_p12 = scmp.lt.u32.totalorder %s3511_s18, %s3506_s10 }
  0x55   : > { %p3515_p2 = scmp.lt.u32.totalorder %s3506_s10, %s4094_s1 }
  0x56   : > { %p3509_p11 = pnand %p3507_p9, %p4056_p1  ;;  %p3514_p0 = por %p3513_p12, %p3512_p10 }
  0x58   : > { %p3510_p7 = pneg %p3509_p11  ;;  %p3516_p4 = por %p3515_p2, %p3514_p0 }
  0x5a   : > { %p3517_p5 = pnand %p3516_p4, %p3510_p7 }
  0x5c   : > { %3520 = shalt.err (!%p3517_p5)
}
  0x5d   : > { %s3521_s16 = scalar_lea.vmem %s441_s21, 16  ;;  %s3883_s23 = smov [#allocation10]  }
  0x5e   : > { %p3522_p3 = scmp.ne.s32.totalorder %s441_s21, %s3521_s16  ;;  %s3526_s19 = sshll.u32 %s3883_s23, 4  ;;  %s3527_s19 = int_to_ptr.vmem [resolvable:$false] %s3526_s19 }
  0x5f   : > { %s3528_s28 = scalar_lea.vmem %s3527_s19, 32  ;;  %p3529_p11 = scmp.lt.s32.totalorder %s441_s21, %s3527_s19 }
  0x60   : > { %p3524_p6 = pnand %p3522_p3, %p4056_p1  ;;  %p3530_p8 = scmp.lt.s32.totalorder %s3528_s28, %s3521_s16 }
  0x62   : > { %p3525_p9 = pneg %p3524_p6  ;;  %p3531_p13 = por %p3530_p8, %p3529_p11 }
  0x64   : > { %p3532_p10 = pnand %p3531_p13, %p3525_p9 }
  0x66   : > { %3535 = shalt.err (!%p3532_p10)
}
  0x67   : > { %p5096_p12 = scmp.ne.s32.totalorder %s5090_s12, 0  ;;  %s5097_s18 = scalar_lea.sflag [#allocation11], %s4028_s30 }
  0x68   : > { %s5098_s5 = sld [smem:[#allocation44_spill]]  ;;  %s471_s19 = scalar_lea.vmem [#allocation13], %s4025_s29 }
  0x69   : > { %3208 = dma.hbm_to_vmem [thread:$0]  (!%p5096_p12), %s4094_s1, 16, %s441_s21, %s5097_s18  }
  0x6a   : > { %s478_s24 = sshll.u32 %s471_s19, 4  ;;  %s479_s24 = int_to_ptr.vmem [resolvable:$true] %s478_s24 }
  0x6e   : > { %s4121_s23 = scalar_lea.hbm %s5098_s5, %s4088_s22  ;;  %s3541_s21 = scalar_lea.hbm %s5098_s5, 48 }
  0x6f   : > { %s3536_s16 = scalar_lea.hbm %s4121_s23, 16  ;;  %p3542_p0 = scmp.lt.u32.totalorder %s4121_s23, %s5098_s5 }
  0x70   : > { %p3537_p13 = scmp.ne.s32.totalorder %s4121_s23, %s3536_s16  ;;  %p3543_p2 = scmp.lt.u32.totalorder %s3541_s21, %s3536_s16 }
  0x71   : > { %p3545_p5 = scmp.lt.u32.totalorder %s3536_s16, %s4121_s23 }
  0x72   : > { %p3539_p8 = pnand %p3537_p13, %p4056_p1  ;;  %p3544_p4 = por %p3543_p2, %p3542_p0 }
  0x74   : > { %p3540_p7 = pneg %p3539_p8  ;;  %p3546_p3 = por %p3545_p5, %p3544_p4 }
  0x76   : > { %p3547_p6 = pnand %p3546_p3, %p3540_p7 }
  0x78   : > { %3550 = shalt.err (!%p3547_p6)
}
  0x79   : > { %s3551_s27 = scalar_lea.vmem %s479_s24, 16  ;;  %s3884_s19 = smov [#allocation13]  }
  0x7a   : > { %p3552_p9 = scmp.ne.s32.totalorder %s479_s24, %s3551_s27  ;;  %s3556_s26 = sshll.u32 %s3884_s19, 4  ;;  %s3557_s26 = int_to_ptr.vmem [resolvable:$false] %s3556_s26 }
  0x7b   : > { %s3558_s28 = scalar_lea.vmem %s3557_s26, 32  ;;  %p3559_p13 = scmp.lt.s32.totalorder %s479_s24, %s3557_s26 }
  0x7c   : > { %p3554_p11 = pnand %p3552_p9, %p4056_p1  ;;  %p3560_p8 = scmp.lt.s32.totalorder %s3558_s28, %s3551_s27 }
  0x7e   : > { %p3555_p10 = pneg %p3554_p11  ;;  %p3561_p12 = por %p3560_p8, %p3559_p13 }
  0x80   : > { %p3562_p0 = pnand %p3561_p12, %p3555_p10 }
  0x82   : > { %3565 = shalt.err (!%p3562_p0)
}
  0x83   : > { %p5099_p2 = scmp.ne.s32.totalorder %s5090_s12, 0  ;;  %s5100_s16 = scalar_lea.sflag [#allocation14], %s4028_s30 }
  0x84   : > { %s5101_s7 = sld [smem:[#allocation45_spill]]  ;;  %s509_s26 = scalar_lea.vmem [#allocation16], %s4025_s29 }
  0x85   : > { %3214 = dma.hbm_to_vmem [thread:$0]  (!%p5099_p2), %s4121_s23, 16, %s479_s24, %s5100_s16  }
  0x86   : > { %s516_s10 = sshll.u32 %s509_s26, 4  ;;  %s517_s10 = int_to_ptr.vmem [resolvable:$true] %s516_s10 }
  0x8a   : > { %s4148_s18 = scalar_lea.hbm %s5101_s7, %s4088_s22  ;;  %s3571_s24 = scalar_lea.hbm %s5101_s7, 48 }
  0x8b   : > { %s3566_s19 = scalar_lea.hbm %s4148_s18, 16  ;;  %p3572_p5 = scmp.lt.u32.totalorder %s4148_s18, %s5101_s7 }
  0x8c   : > { %p3567_p12 = scmp.ne.s32.totalorder %s4148_s18, %s3566_s19  ;;  %p3573_p3 = scmp.lt.u32.totalorder %s3571_s24, %s3566_s19 }
  0x8d   : > { %p3575_p9 = scmp.lt.u32.totalorder %s3566_s19, %s4148_s18 }
  0x8e   : > { %p3569_p7 = pnand %p3567_p12, %p4056_p1  ;;  %p3574_p6 = por %p3573_p3, %p3572_p5 }
  0x90   : > { %p3570_p4 = pneg %p3569_p7  ;;  %p3576_p11 = por %p3575_p9, %p3574_p6 }
  0x92   : > { %p3577_p10 = pnand %p3576_p11, %p3570_p4 }
  0x94   : > { %3580 = shalt.err (!%p3577_p10)
}
  0x95   : > { %s3581_s21 = scalar_lea.vmem %s517_s10, 16  ;;  %s3885_s26 = smov [#allocation16]  }
  0x96   : > { %p3582_p13 = scmp.ne.s32.totalorder %s517_s10, %s3581_s21  ;;  %s3586_s27 = sshll.u32 %s3885_s26, 4  ;;  %s3587_s27 = int_to_ptr.vmem [resolvable:$false] %s3586_s27 }
  0x97   : > { %s3588_s28 = scalar_lea.vmem %s3587_s27, 32  ;;  %p3589_p12 = scmp.lt.s32.totalorder %s517_s10, %s3587_s27 }
  0x98   : > { %p3584_p8 = pnand %p3582_p13, %p4056_p1  ;;  %p3590_p7 = scmp.lt.s32.totalorder %s3588_s28, %s3581_s21 }
  0x9a   : > { %p3585_p0 = pneg %p3584_p8  ;;  %p3591_p2 = por %p3590_p7, %p3589_p12 }
  0x9c   : > { %p3592_p3 = pnand %p3591_p2, %p3585_p0 }
  0x9e   : > { %3595 = shalt.err (!%p3592_p3)
}
  0x9f   : > { %p5102_p5 = scmp.ne.s32.totalorder %s5090_s12, 0  ;;  %s5103_s19 = scalar_lea.sflag [#allocation17], %s4028_s30 }
  0xa0   : > { %s2887_s23 = sshll.u32 %s4025_s29, 6  ;;  %s2970_s24 = sshll.u32 %s3874_s17, 10 }
  0xa1   : > { %3220 = dma.hbm_to_vmem [thread:$0]  (!%p5102_p5), %s4148_s18, 16, %s517_s10, %s5103_s19  }
  0xa2   : > { %s5104_s0 = sld [smem:[#allocation40_spill]]  ;;  %s367_s21 = scalar_lea.vmem [#allocation4], %s2887_s23 }
  0xa3   : > { %s376_s26 = sshll.u32 %s367_s21, 4  ;;  %s364_s28 = scalar_lea.sflag [#allocation5], %s4025_s29  ;;  %s4182_s26 = int_to_ptr.vmem [resolvable:$true] %s376_s26 }
  0xa8   : > { %s4178_s1 = scalar_lea.hbm %s5104_s0, %s2970_s24  ;;  %s3601_s19 = scalar_lea.hbm %s5104_s0, 3072 }
  0xa9   : > { %s3596_s3 = scalar_lea.hbm %s4178_s1, 1024  ;;  %p3602_p9 = scmp.lt.u32.totalorder %s4178_s1, %s5104_s0 }
  0xaa   : > { %p3597_p2 = scmp.ne.s32.totalorder %s4178_s1, %s3596_s3  ;;  %p3603_p11 = scmp.lt.u32.totalorder %s3601_s19, %s3596_s3 }
  0xab   : > { %p3605_p13 = scmp.lt.u32.totalorder %s3596_s3, %s4178_s1 }
  0xac   : > { %p3599_p4 = pnand %p3597_p2, %p4056_p1  ;;  %p3604_p10 = por %p3603_p11, %p3602_p9 }
  0xae   : > { %p3600_p6 = pneg %p3599_p4  ;;  %p3606_p8 = por %p3605_p13, %p3604_p10 }
  0xb0   : > { %p3607_p0 = pnand %p3606_p8, %p3600_p6 }
  0xb2   : > { %3610 = shalt.err (!%p3607_p0)
}
  0xb3   : > { %s3611_s21 = scalar_lea.vmem %s4182_s26, 1024  ;;  %s3886_s18 = smov [#allocation4]  }
  0xb4   : > { %p3612_p12 = scmp.ne.s32.totalorder %s4182_s26, %s3611_s21  ;;  %s3616_s10 = sshll.u32 %s3886_s18, 4  ;;  %s3617_s10 = int_to_ptr.vmem [resolvable:$false] %s3616_s10 }
  0xb5   : > { %s3618_s27 = scalar_lea.vmem %s3617_s10, 2048  ;;  %p3619_p2 = scmp.lt.s32.totalorder %s4182_s26, %s3617_s10 }
  0xb6   : > { %p3614_p7 = pnand %p3612_p12, %p4056_p1  ;;  %p3620_p4 = scmp.lt.s32.totalorder %s3618_s27, %s3611_s21 }
  0xb8   : > { %p3615_p3 = pneg %p3614_p7  ;;  %p3621_p9 = por %p3620_p4, %p3619_p2 }
  0xba   : > { %p3622_p11 = pnand %p3621_p9, %p3615_p3 }
  0xbc   : > { %3625 = shalt.err (!%p3622_p11)
}
  0xbd   : > { %s5062_s3 = smov 64   ;;  %s3888_s19 = smov 4  }
  0xbe   : > { %3199 = dma.hbm_to_vmem [thread:$0]  (!%p5102_p5), %s4178_s1, 1024, %s4182_s26, %s364_s28, %s5062_s3, %s5062_s3, %s3888_s19  }
  0xbf   : > { %s4216_s18 = scalar_lea.hbm %s5045_s8, %s2970_s24  ;;  %s527_s10 = scalar_lea.vmem [#allocation18], %s2887_s23 }
  0xc0   : > { %s534_s27 = sshll.u32 %s527_s10, 4  ;;  %s5105_s2 = sld [smem:[#allocation42_spill]]  ;;  %s4220_s27 = int_to_ptr.vmem [resolvable:$true] %s534_s27 }
  0xc1   : > { %s413_s1 = scalar_lea.vmem [#allocation9], %s4031_s11  ;;  %s4235_s23 = scalar_lea.hbm %s5041_s4, %s4040_s20 }
  0xc2   : > { %s420_s26 = sshll.u32 %s413_s1, 4  ;;  %s4229_s26 = int_to_ptr.vmem [resolvable:$true] %s420_s26 }
  0xc6   : > { %s4226_s7 = scalar_lea.hbm %s5105_s2, %s4040_s20  ;;  %s3631_s21 = scalar_lea.hbm %s5105_s2, 768 }
  0xc7   : > { %s3626_s16 = scalar_lea.hbm %s4226_s7, 256  ;;  %p3632_p8 = scmp.lt.u32.totalorder %s4226_s7, %s5105_s2 }
  0xc8   : > { %p3627_p6 = scmp.ne.s32.totalorder %s4226_s7, %s3626_s16  ;;  %p3633_p0 = scmp.lt.u32.totalorder %s3631_s21, %s3626_s16 }
  0xc9   : > { %p3635_p7 = scmp.lt.u32.totalorder %s3626_s16, %s4226_s7 }
  0xca   : > { %p3629_p10 = pnand %p3627_p6, %p4056_p1  ;;  %p3634_p12 = por %p3633_p0, %p3632_p8 }
  0xcc   : > { %p3630_p13 = pneg %p3629_p10  ;;  %p3636_p3 = por %p3635_p7, %p3634_p12 }
  0xce   : > { %p3637_p2 = pnand %p3636_p3, %p3630_p13 }
  0xd0   : > { %3640 = shalt.err (!%p3637_p2)
}
  0xd1   : > { %s3641_s1 = scalar_lea.vmem %s4229_s26, 256  ;;  %s3889_s24 = smov [#allocation9]  }
  0xd2   : > { %p3642_p4 = scmp.ne.s32.totalorder %s4229_s26, %s3641_s1  ;;  %s3646_s28 = sshll.u32 %s3889_s24, 4  ;;  %s3647_s28 = int_to_ptr.vmem [resolvable:$false] %s3646_s28 }
  0xd3   : > { %s3648_s3 = scalar_lea.vmem %s3647_s28, 512  ;;  %p3649_p6 = scmp.lt.s32.totalorder %s4229_s26, %s3647_s28 }
  0xd4   : > { %p3644_p9 = pnand %p3642_p4, %p4056_p1  ;;  %p3650_p10 = scmp.lt.s32.totalorder %s3648_s3, %s3641_s1 }
  0xd6   : > { %p3645_p11 = pneg %p3644_p9  ;;  %p3651_p8 = por %p3650_p10, %p3649_p6 }
  0xd8   : > { %p3652_p0 = pnand %p3651_p8, %p3645_p11 }
  0xda   : > { %3655 = shalt.err (!%p3652_p0)
}
  0xdb   : > { %s5106_s16 = smov 64   ;;  %s5107_s0 = scalar_lea.sflag [#allocation8], %s4028_s30 }
  0xdc   : > { %3205 = dma.hbm_to_vmem [thread:$0]  (!%p5102_p5), %s4226_s7, 256, %s4229_s26, %s5107_s0, %s5106_s16, %s5106_s16, %s3888_s19  }
  0xdd   : > { %s451_s5 = scalar_lea.vmem [#allocation12], %s4031_s11  ;;  %s4270_s24 = scalar_lea.hbm %s5043_s6, %s4040_s20 }
  0xde   : > { %s458_s21 = sshll.u32 %s451_s5, 4  ;;  %s3656_s28 = scalar_lea.hbm %s4235_s23, 256  ;;  %s4264_s21 = int_to_ptr.vmem [resolvable:$true] %s458_s21 }
  0xdf   : > { %p3657_p13 = scmp.ne.s32.totalorder %s4235_s23, %s3656_s28  ;;  %s3661_s17 = scalar_lea.hbm %s5041_s4, 768 }
  0xe0   : > { %p3662_p3 = scmp.lt.u32.totalorder %s4235_s23, %s5041_s4  ;;  %p3663_p2 = scmp.lt.u32.totalorder %s3661_s17, %s3656_s28 }
  0xe1   : > { %p3659_p12 = pnand %p3657_p13, %p4056_p1  ;;  %p3665_p9 = scmp.lt.u32.totalorder %s3656_s28, %s4235_s23 }
  0xe2   : > { %p3664_p4 = por %p3663_p2, %p3662_p3 }
  0xe3   : > { %p3660_p7 = pneg %p3659_p12 }
  0xe4   : > { %p3666_p11 = por %p3665_p9, %p3664_p4 }
  0xe6   : > { %p3667_p6 = pnand %p3666_p11, %p3660_p7 }
  0xe8   : > { %3670 = shalt.err (!%p3667_p6)
}
  0xe9   : > { %s3671_s20 = scalar_lea.vmem %s4264_s21, 256  ;;  %s3890_s2 = smov [#allocation12]  }
  0xea   : > { %p3672_p10 = scmp.ne.s32.totalorder %s4264_s21, %s3671_s20  ;;  %s3676_s26 = sshll.u32 %s3890_s2, 4  ;;  %s3677_s26 = int_to_ptr.vmem [resolvable:$false] %s3676_s26 }
  0xeb   : > { %s3678_s25 = scalar_lea.vmem %s3677_s26, 512  ;;  %p3679_p13 = scmp.lt.s32.totalorder %s4264_s21, %s3677_s26 }
  0xec   : > { %p3674_p8 = pnand %p3672_p10, %p4056_p1  ;;  %p3680_p12 = scmp.lt.s32.totalorder %s3678_s25, %s3671_s20 }
  0xee   : > { %p3675_p0 = pneg %p3674_p8  ;;  %p3681_p3 = por %p3680_p12, %p3679_p13 }
  0xf0   : > { %p3682_p2 = pnand %p3681_p3, %p3675_p0 }
  0xf2   : > { %3685 = shalt.err (!%p3682_p2)
}
  0xf3   : > { %s5108_s17 = scalar_lea.sflag [#allocation11], %s4028_s30  ;;  %s489_s0 = scalar_lea.vmem [#allocation15], %s4031_s11 }
  0xf4   : > { %3211 = dma.hbm_to_vmem [thread:$0]  (!%p5102_p5), %s4235_s23, 256, %s4264_s21, %s5108_s17, %s5106_s16, %s5106_s16, %s3888_s19  }
  0xf5   : > { %s496_s5 = sshll.u32 %s489_s0, 4  ;;  %s3686_s10 = scalar_lea.hbm %s4270_s24, 256  ;;  %s4299_s5 = int_to_ptr.vmem [resolvable:$true] %s496_s5 }
  0xf6   : > { %p3687_p7 = scmp.ne.s32.totalorder %s4270_s24, %s3686_s10  ;;  %s3691_s3 = scalar_lea.hbm %s5043_s6, 768 }
  0xf7   : > { %p3692_p11 = scmp.lt.u32.totalorder %s4270_s24, %s5043_s6  ;;  %p3693_p6 = scmp.lt.u32.totalorder %s3691_s3, %s3686_s10 }
  0xf8   : > { %p3689_p4 = pnand %p3687_p7, %p4056_p1  ;;  %p3695_p8 = scmp.lt.u32.totalorder %s3686_s10, %s4270_s24 }
  0xf9   : > { %p3694_p10 = por %p3693_p6, %p3692_p11 }
  0xfa   : > { %p3690_p9 = pneg %p3689_p4 }
  0xfb   : > { %p3696_p0 = por %p3695_p8, %p3694_p10 }
  0xfd   : > { %p3697_p13 = pnand %p3696_p0, %p3690_p9 }
  0xff   : > { %3700 = shalt.err (!%p3697_p13)
}
 0x100   : > { %s3701_s11 = scalar_lea.vmem %s4299_s5, 256  ;;  %s3891_s23 = smov [#allocation15]  }
 0x101   : > { %p3702_p12 = scmp.ne.s32.totalorder %s4299_s5, %s3701_s11  ;;  %s3706_s21 = sshll.u32 %s3891_s23, 4  ;;  %s3707_s21 = int_to_ptr.vmem [resolvable:$false] %s3706_s21 }
 0x102   : > { %s3708_s2 = scalar_lea.vmem %s3707_s21, 512  ;;  %p3709_p7 = scmp.lt.s32.totalorder %s4299_s5, %s3707_s21 }
 0x103   : > { %p3704_p3 = pnand %p3702_p12, %p4056_p1  ;;  %p3710_p4 = scmp.lt.s32.totalorder %s3708_s2, %s3701_s11 }
 0x105   : > { %p3705_p2 = pneg %p3704_p3  ;;  %p3711_p11 = por %p3710_p4, %p3709_p7 }
 0x107   : > { %p3712_p6 = pnand %p3711_p11, %p3705_p2 }
 0x109   : > { %3715 = shalt.err (!%p3712_p6)
}
 0x10a   : > { %s5109_s26 = scalar_lea.sflag [#allocation14], %s4028_s30  ;;  %s3716_s25 = scalar_lea.hbm %s4216_s18, 1024 }
 0x10b   : > { %3217 = dma.hbm_to_vmem [thread:$0]  (!%p5102_p5), %s4270_s24, 256, %s4299_s5, %s5109_s26, %s5106_s16, %s5106_s16, %s3888_s19  }
 0x10c   : > { %p3717_p9 = scmp.ne.s32.totalorder %s4216_s18, %s3716_s25  ;;  %s3721_s10 = scalar_lea.hbm %s5045_s8, 3072 }
 0x10d   : > { %p3722_p0 = scmp.lt.u32.totalorder %s4216_s18, %s5045_s8  ;;  %p3723_p13 = scmp.lt.u32.totalorder %s3721_s10, %s3716_s25 }
 0x10e   : > { %p3719_p10 = pnand %p3717_p9, %p4056_p1  ;;  %p3725_p3 = scmp.lt.u32.totalorder %s3716_s25, %s4216_s18 }
 0x10f   : > { %p3724_p12 = por %p3723_p13, %p3722_p0 }
 0x110   : > { %p3720_p8 = pneg %p3719_p10 }
 0x111   : > { %p3726_p2 = por %p3725_p3, %p3724_p12 }
 0x113   : > { %p3727_p7 = pnand %p3726_p2, %p3720_p8 }
 0x115   : > { %3730 = shalt.err (!%p3727_p7)
}
 0x116   : > { %s3731_s24 = scalar_lea.vmem %s4220_s27, 1024  ;;  %s3892_s5 = smov [#allocation18]  }
 0x117   : > { %p3732_p4 = scmp.ne.s32.totalorder %s4220_s27, %s3731_s24  ;;  %s3736_s3 = sshll.u32 %s3892_s5, 4  ;;  %s3737_s3 = int_to_ptr.vmem [resolvable:$false] %s3736_s3 }
 0x118   : > { %s3738_s7 = scalar_lea.vmem %s3737_s3, 2048  ;;  %p3739_p9 = scmp.lt.s32.totalorder %s4220_s27, %s3737_s3 }
 0x119   : > { %p3734_p11 = pnand %p3732_p4, %p4056_p1  ;;  %p3740_p10 = scmp.lt.s32.totalorder %s3738_s7, %s3731_s24 }
 0x11b   : > { %p3735_p6 = pneg %p3734_p11  ;;  %p3741_p0 = por %p3740_p10, %p3739_p9 }
 0x11d   : > { %p3742_p13 = pnand %p3741_p0, %p3735_p6 }
 0x11f   : > { %3745 = shalt.err (!%p3742_p13)
}
 0x120   : > { %s5110_s20 = scalar_lea.sflag [#allocation17], %s4028_s30  ;;  %s4357_s21 = scalar_lea.hbm %s5046_s9, %s4088_s22 }
 0x121   : > { %3223 = dma.hbm_to_vmem [thread:$0]  (!%p5102_p5), %s4216_s18, 1024, %s4220_s27, %s5110_s20, %s5106_s16, %s5106_s16, %s3888_s19  }
 0x122   : > { %s547_s2 = scalar_lea.vmem [#allocation19], %s4025_s29  ;;  %s545_s30 = scalar_lea.sflag [#allocation20], %s4025_s29 }
 0x123   : > { %s554_s26 = sshll.u32 %s547_s2, 4  ;;  %s3746_s25 = scalar_lea.hbm %s4357_s21, 16  ;;  %s555_s26 = int_to_ptr.vmem [resolvable:$true] %s554_s26 }
 0x124   : > { %p3747_p8 = scmp.ne.s32.totalorder %s4357_s21, %s3746_s25  ;;  %s3751_s18 = scalar_lea.hbm %s5046_s9, 48 }
 0x125   : > { %p3752_p2 = scmp.lt.u32.totalorder %s4357_s21, %s5046_s9  ;;  %p3753_p7 = scmp.lt.u32.totalorder %s3751_s18, %s3746_s25 }
 0x126   : > { %p3749_p12 = pnand %p3747_p8, %p4056_p1  ;;  %p3755_p11 = scmp.lt.u32.totalorder %s3746_s25, %s4357_s21 }
 0x127   : > { %p3754_p4 = por %p3753_p7, %p3752_p2 }
 0x128   : > { %p3750_p3 = pneg %p3749_p12 }
 0x129   : > { %p3756_p6 = por %p3755_p11, %p3754_p4 }
 0x12b   : > { %p3757_p9 = pnand %p3756_p6, %p3750_p3 }
 0x12d   : > { %3760 = shalt.err (!%p3757_p9)
}
 0x12e   : > { %s3761_s29 = scalar_lea.vmem %s555_s26, 16  ;;  %s3893_s16 = smov [#allocation19]  }
 0x12f   : > { %p3762_p10 = scmp.ne.s32.totalorder %s555_s26, %s3761_s29  ;;  %s3766_s0 = sshll.u32 %s3893_s16, 4  ;;  %s3767_s0 = int_to_ptr.vmem [resolvable:$false] %s3766_s0 }
 0x130   : > { %s3768_s10 = scalar_lea.vmem %s3767_s0, 32  ;;  %p3769_p8 = scmp.lt.s32.totalorder %s555_s26, %s3767_s0 }
 0x131   : > { %p3764_p0 = pnand %p3762_p10, %p4056_p1  ;;  %p3770_p12 = scmp.lt.s32.totalorder %s3768_s10, %s3761_s29 }
 0x133   : > { %p3765_p13 = pneg %p3764_p0  ;;  %p3771_p5 = por %p3770_p12, %p3769_p8 }
 0x135   : > { %p3772_p2 = pnand %p3771_p5, %p3765_p13 }
 0x137   : > { %3775 = shalt.err (!%p3772_p2)
}
 0x138   : > { %p5111_p7 = scmp.ne.s32.totalorder %s5090_s12, 0  ;;  %p5112_p3 = scmp.ne.s32.totalorder %s5094_s15, 0 }
 0x139   : > { %s5113_s13 = sld [smem:[#allocation36_spill]] (!%p5112_p3)  ;;  %s4381_s1 = sand.u32 (!%p5112_p3), 1, %s3862_s14  }
 0x13a   : > { %3226 = dma.hbm_to_vmem [thread:$0]  (!%p5111_p7), %s4357_s21, 16, %s555_s26, %s545_s30  }
 0x13b   : > { %563 = sbr.rel (%p5112_p3) target bundleno = 6963 (0x1b33), region = 60  ;;  %s2910_s28 = sshll.u32 (!%p5112_p3), %s4381_s1, 6 }
 0x13c   : > { %s566_s24 = scalar_lea.sflag (!%p5112_p3), [#allocation5], %s4381_s1  ;;  %s4385_s5 = scalar_lea.vmem (!%p5112_p3), [#allocation4], %s2910_s28 }
 0x13f   : > { %p5114_p1 = scmp.ne.s32.totalorder (!%p5112_p3), %s5113_s13, 0 }
 0x142   : > { %3829 = dma.done.wait (%p5114_p1), %s566_s24, 1024  }
 0x143   : > { %3831 = vsyncadd (%p5114_p1), %s566_s24, 4294966272  ;;  %s5115_s12 = sld [smem:[#allocation34_spill]]  ;;  %s4393_s3 = sshll.u32 %s4381_s1, 4 }
 0x144   : > { %s578_s20 = scalar_lea.vmem [#allocation7], %s4393_s3 }
 0x149   : > { %s574_s15 = sand.u32 1, %s5115_s12  }
 0x14a   : > { %s575_s7 = scalar_lea.sflag [#allocation8], %s574_s15 }
 0x14b   : > { %3833 = dma.done.wait (%p5114_p1), %s575_s7, 512  }
 0x14c   : > { %3835 = vsyncadd (%p5114_p1), %s575_s7, 4294966784  ;;  %s587_s11 = scalar_lea.vmem [#allocation9], %s4393_s3  ;;  %s593_s23 = scalar_lea.sflag [#allocation11], %s574_s15 }
 0x14d   : > { %s595_s21 = scalar_lea.vmem [#allocation10], %s4381_s1 }
 0x14e   : > { %3837 = dma.done.wait (%p5114_p1), %s593_s23, 272  }
 0x14f   : > { %3839 = vsyncadd (%p5114_p1), %s593_s23, 4294967024  ;;  %s604_s2 = scalar_lea.vmem [#allocation12], %s4393_s3  ;;  %s610_s26 = scalar_lea.sflag [#allocation14], %s574_s15 }
 0x150   : > { %s612_s30 = scalar_lea.vmem [#allocation13], %s4381_s1 }
 0x151   : > { %3841 = dma.done.wait (%p5114_p1), %s610_s26, 272  }
 0x152   : > { %3843 = vsyncadd (%p5114_p1), %s610_s26, 4294967024  ;;  %s621_s25 = scalar_lea.vmem [#allocation15], %s4393_s3  ;;  %s627_s17 = scalar_lea.sflag [#allocation17], %s574_s15 }
 0x153   : > { %s629_s19 = scalar_lea.vmem [#allocation16], %s4381_s1 }
 0x154   : > { %3845 = dma.done.wait (%p5114_p1), %s627_s17, 1040  }
 0x155   : > { %3847 = vsyncadd (%p5114_p1), %s627_s17, 4294966256  ;;  %s4418_s18 = scalar_lea.vmem [#allocation18], %s2910_s28  ;;  %s644_s27 = scalar_lea.sflag [#allocation20], %s4381_s1 }
 0x156   : > { %s646_s22 = scalar_lea.vmem [#allocation19], %s4381_s1 }
 0x157   : > { %3849 = dma.done.wait (%p5114_p1), %s644_s27, 16  }
 0x158   : > { %3851 = vsyncadd (%p5114_p1), %s644_s27, 4294967280  ;;  %v3894_v0 = vmov 0.0   ;;  %vm3895_vm0 = vmmov 0   ;;  %v3896_v1 = vmov 0   ;;  %v4434_v2 = vld [vmem:[%s587_s11] sm:$0xff]   ;;  %v4439_v3 = vld [vmem:[%s587_s11 + $0x8] sm:$0xff]  }
 0x159   : > { %3062 = vmatprep.subr.bf16.mxu1 %v3894_v0  ;;  %3066 = vmatprep.mubr.msk.bf16.mxu1 %vm3895_vm0, %v3894_v0  ;;  %v4456_v4 = vld [vmem:[%s595_s21] ss:$0 sm:$0xff]  ;;  %s3897_s29 = smov 64   ;;  %s3898_s16 = smov 96   ;;  %vm746_vm1 = vcmask 261120   ;;  %v3009_v54 = vld [vmem:[%s4385_s5 + $0x8] sm:$0xff]  }
 0x15a   : > { %3094 = vmatprep.subr.bf16.mxu0 %v3894_v0  ;;  %3098 = vmatprep.mubr.msk.bf16.mxu0 %vm3895_vm0, %v3894_v0  ;;  %v2978_v11 = vld [vmem:[%s4385_s5] sm:$0xff]   ;;  %v2983_v55 = vunpack.c.l.bf16 %v3009_v54  ;;  %v2984_v56 = vunpack.c.h.bf16 %v3009_v54  ;;  %vm1919_vm2 = vcmask 7168   ;;  %s5116_s0 = sld [smem:[#allocation31_spill]]  ;;  %s723_s10 = scalar_lea.vmem [#allocation21], %s4393_s3 }
 0x15b   : > { %3292 = vset.pattern.permute.xlu0 %v3896_v1  ;;  %3293 = vset.pattern.permute.xlu1 %v3896_v1  ;;  %v2979_v12 = vunpack.c.l.bf16 %v2978_v11  ;;  %v2980_v14 = vunpack.c.h.bf16 %v2978_v11  ;;  %s5117_s13 = sld [smem:[#allocation37_spill]]  ;;  %s2610_s28 = sshll.u32 %s723_s10, 4  ;;  %s4982_s28 = int_to_ptr.vmem [resolvable:$true] %s2610_s28 }
 0x15c   : > { %3063 = vmatpush3.bf16.msra.mxu1 %v4434_v2  ;;  %3095 = vmatpush3.bf16.msra.mxu0 %v4434_v2  ;;  %s5118_s15 = sld [smem:[#allocation46_spill]]  ;;  %s2595_s3 = scalar_lea.sflag [#allocation6], %s4381_s1 }
 0x15d   : > { %3064 = vmatprep.subr.bf16.mxu1 %v3894_v0  ;;  %3096 = vmatprep.subr.bf16.mxu0 %v3894_v0  ;;  %s3776_s11 = scalar_lea.vmem %s4982_s28, 256  ;;  %s3899_s23 = smov [#allocation21]  }
 0x15e   : > { %p3777_p5 = scmp.ne.s32.totalorder %s4982_s28, %s3776_s11  ;;  %s3780_s21 = sshll.u32 %s3899_s23, 4  ;;  %s3781_s21 = int_to_ptr.vmem [resolvable:$false] %s3780_s21 }
 0x15f   : > { %p3783_p9 = scmp.lt.s32.totalorder %s4982_s28, %s3781_s21 }
 0x160   : > { %3065 = vmatpush3.bf16.msra.mxu1 %v4439_v3  ;;  %3097 = vmatpush3.bf16.msra.mxu0 %v4439_v3  ;;  %s2976_s24 = sshll.u32 %s5116_s0, 8 }
 0x161   : > { %3070 = vmatprep.subr.bf16.mxu1 %v3894_v0  ;;  %3110 = vmatprep.subr.bf16.mxu0 %v3894_v0  ;;  %p5120_p4 = scmp.ne.s32.totalorder %s5117_s13, 0 }
 0x162   : > { %s5119_s7 = smov %s5118_s15 }
 0x163   : > { %3067 = vmatmul.mubr.bf16.vlgmr.msra.gmra.mrb[0].mxu1 %v3896_v1  ;;  %p3778_p11 = pnand %p3777_p5, %p5120_p4 }
 0x164   : > { %3071 = vmatpush3.bf16.msra.mxu1 %v4434_v2  ;;  %3074 = vmatprep.mubr.msk.bf16.mxu1 %vm3895_vm0, %v3894_v0 }
 0x165   : > { %3072 = vmatprep.subr.bf16.mxu1 %v3894_v0  ;;  %p3779_p6 = pneg %p3778_p11 }
 0x168   : > { %3073 = vmatpush3.bf16.msra.mxu1 %v4439_v3 }
 0x169   : > { %3078 = vmatprep.subr.bf16.mxu1 %v3894_v0 }
 0x236   : > { %v784_v5 = vpop.f32.mrb[0].mxu1 }
 0x237   : > { %v3068_v6 = vpop.f32.mrb[1].mxu1  ;;  %v809_v7 = vadd.f32 %v4456_v4, %v784_v5  ;;  %v791_v13 = vadd.f32 %v2979_v12, %v784_v5 }
 0x238   : > { %v787_v8 = vpop.f32.mrb[2].mxu1 }
 0x239   : > { %813 = vrot.lane.b32.xlu0 %v809_v7, %s3897_s29  ;;  %v3069_v9 = vpop.f32.mrb[3].mxu1  ;;  %v810_v10 = vadd.f32 %v4456_v4, %v787_v8  ;;  %v799_v15 = vadd.f32 %v4456_v4, %v791_v13  ;;  %v792_v16 = vadd.f32 %v2980_v14, %v787_v8 }
 0x23b   : > { %v801_v17 = vmul.f32 0.5, %v799_v15  ;;  %v800_v18 = vadd.f32 %v4456_v4, %v792_v16 }
 0x23d   : > { %815 = vrot.lane.b32.xlu0 %v810_v10, %s3897_s29  ;;  %3308 = vtanh.f32 %v801_v17  ;;  %v802_v19 = vmul.f32 0.5, %v800_v18 }
 0x23f   : > { %3310 = vtanh.f32 %v802_v19 }
 0x247   : > { %v3309_v20 = vpop.eup %3308 }
 0x248   : > { %v805_v21 = vadd.f32 1.0, %v3309_v20 }
 0x249   : > { %v3311_v22 = vpop.eup %3310 }
 0x24a   : > { %v807_v23 = vmul.f32 0.5, %v805_v21  ;;  %v806_v24 = vadd.f32 1.0, %v3311_v22 }
 0x24c   : > { %v808_v27 = vmul.f32 0.5, %v806_v24  ;;  %v833_v37 = vsub.f32 1.0, %v807_v23  ;;  %v845_v41 = vmul.f32 0.0, %v807_v23 }
 0x24e   : > { %v834_v39 = vsub.f32 1.0, %v808_v27  ;;  %v846_v42 = vmul.f32 0.0, %v808_v27 }
 0x2ab   : > { %v814_v25 = vpop.permute.xlu0 %813 }
 0x2ac   : > { %v819_v26 = vmul.f32 %v814_v25, %v807_v23 }
 0x2ae   : > { %823 = vrot.lane.b32.xlu1 %v819_v26, %s3897_s29 }
 0x2af   : > { %v816_v28 = vpop.permute.xlu0 %815 }
 0x2b0   : > { %v820_v29 = vmul.f32 %v816_v28, %v808_v27 }
 0x2b2   : > { %825 = vrot.lane.b32.xlu1 %v820_v29, %s3897_s29 }
 0x320   : > { %v824_v30 = vpop.permute.xlu1 %823 }
 0x321   : > { %v829_v31 = vadd.f32 %v2979_v12, %v824_v30 }
 0x323   : > { %3312 = vtanh.f32 %v829_v31 }
 0x324   : > { %v826_v32 = vpop.permute.xlu1 %825 }
 0x325   : > { %v830_v33 = vadd.f32 %v2980_v14, %v826_v32 }
 0x327   : > { %3314 = vtanh.f32 %v830_v33 }
 0x32d   : > { %v3313_v34 = vpop.eup %3312 }
 0x32e   : > { %837 = vrot.lane.b32.xlu0 %v3313_v34, %s3898_s16 }
 0x331   : > { %v3315_v35 = vpop.eup %3314 }
 0x332   : > { %839 = vrot.lane.b32.xlu1 %v3315_v35, %s3898_s16 }
 0x3a0   : > { %v838_v36 = vpop.permute.xlu0 %837 }
 0x3a1   : > { %v843_v38 = vmul.f32 %v838_v36, %v833_v37  ;;  %v3010_v37 = vld [vmem:[%s4385_s5 + $0x10] sm:$0xff]  }
 0x3a3   : > { %v4469_v44 = vadd.f32 %v845_v41, %v843_v38  ;;  %v2987_v38 = vunpack.c.l.bf16 %v3010_v37 }
 0x3a4   : > { %v840_v40 = vpop.permute.xlu1 %839 }
 0x3a5   : > { %v844_v43 = vmul.f32 %v840_v40, %v834_v39  ;;  %v2988_v39 = vunpack.c.h.bf16 %v3010_v37 }
 0x3a7   : > { %v4471_v45 = vadd.f32 %v846_v42, %v844_v43 }
 0x3a9   : > { %v864_v46 = vpack.c.bf16 %v4471_v45, %v4469_v44 }
 0x3ab   : > { %866 = vrot.lane.b32.xlu0 %v864_v46, %s3898_s16 }
 0x41d   : > { %v867_v47 = vpop.permute.xlu0 %866 }
 0x41e   : > { %3075 = vmatmul.mubr.msk.bf16.vlgmr.msra.gmra.mrb[4].mxu1 %vm746_vm1, %v867_v47 }
 0x41f   : > { %3079 = vmatpush3.bf16.msra.mxu1 %v4434_v2  ;;  %3082 = vmatprep.mubr.msk.bf16.mxu1 %vm3895_vm0, %v3894_v0 }
 0x420   : > { %3080 = vmatprep.subr.bf16.mxu1 %v3894_v0 }
 0x423   : > { %3081 = vmatpush3.bf16.msra.mxu1 %v4439_v3 }
 0x424   : > { %3086 = vmatprep.subr.bf16.mxu1 %v3894_v0 }
 0x4f1   : > { %v905_v48 = vpop.f32.mrb[4].mxu1 }
 0x4f2   : > { %v924_v49 = vadd.f32 %v4456_v4, %v905_v48  ;;  %v3076_v50 = vpop.f32.mrb[5].mxu1  ;;  %v912_v57 = vadd.f32 %v2983_v55, %v905_v48 }
 0x4f3   : > { %v908_v51 = vpop.f32.mrb[6].mxu1 }
 0x4f4   : > { %v925_v52 = vadd.f32 %v4456_v4, %v908_v51  ;;  %928 = vrot.lane.b32.xlu1 %v924_v49, %s3897_s29  ;;  %v3077_v53 = vpop.f32.mrb[7].mxu1  ;;  %v913_v58 = vadd.f32 %v2984_v56, %v908_v51  ;;  %v914_v59 = vadd.f32 %v4456_v4, %v912_v57 }
 0x4f6   : > { %930 = vrot.lane.b32.xlu0 %v925_v52, %s3897_s29  ;;  %v915_v60 = vadd.f32 %v4456_v4, %v913_v58  ;;  %v916_v61 = vmul.f32 0.5, %v914_v59 }
 0x4f8   : > { %v917_v62 = vmul.f32 0.5, %v915_v60  ;;  %3316 = vtanh.f32 %v916_v61 }
 0x4fa   : > { %3318 = vtanh.f32 %v917_v62 }
 0x502   : > { %v3317_v63 = vpop.eup %3316 }
 0x503   : > { %v920_v5 = vadd.f32 1.0, %v3317_v63 }
 0x504   : > { %v3319_v1 = vpop.eup %3318 }
 0x505   : > { %v921_v6 = vadd.f32 1.0, %v3319_v1  ;;  %v922_v7 = vmul.f32 0.5, %v920_v5 }
 0x507   : > { %v923_v10 = vmul.f32 0.5, %v921_v6  ;;  %v948_v19 = vsub.f32 1.0, %v922_v7  ;;  %v960_v24 = vmul.f32 %v922_v7, %v4469_v44 }
 0x509   : > { %v949_v22 = vsub.f32 1.0, %v923_v10  ;;  %v961_v25 = vmul.f32 %v923_v10, %v4471_v45 }
 0x566   : > { %v929_v8 = vpop.permute.xlu1 %928 }
 0x567   : > { %v934_v9 = vmul.f32 %v929_v8, %v922_v7 }
 0x568   : > { %v931_v11 = vpop.permute.xlu0 %930 }
 0x569   : > { %v935_v12 = vmul.f32 %v931_v11, %v923_v10  ;;  %938 = vrot.lane.b32.xlu1 %v934_v9, %s3897_s29 }
 0x56b   : > { %940 = vrot.lane.b32.xlu0 %v935_v12, %s3897_s29 }
 0x5db   : > { %v939_v13 = vpop.permute.xlu1 %938 }
 0x5dc   : > { %v944_v14 = vadd.f32 %v2983_v55, %v939_v13 }
 0x5dd   : > { %v941_v15 = vpop.permute.xlu0 %940 }
 0x5de   : > { %3320 = vtanh.f32 %v944_v14  ;;  %v945_v16 = vadd.f32 %v2984_v56, %v941_v15 }
 0x5e0   : > { %3322 = vtanh.f32 %v945_v16 }
 0x5e8   : > { %v3321_v17 = vpop.eup %3320 }
 0x5e9   : > { %952 = vrot.lane.b32.xlu1 %v3321_v17, %s3898_s16 }
 0x5ea   : > { %v3323_v18 = vpop.eup %3322 }
 0x5eb   : > { %954 = vrot.lane.b32.xlu0 %v3323_v18, %s3898_s16 }
 0x65b   : > { %v953_v20 = vpop.permute.xlu1 %952 }
 0x65c   : > { %v958_v21 = vmul.f32 %v953_v20, %v948_v19 }
 0x65d   : > { %v955_v23 = vpop.permute.xlu0 %954 }
 0x65e   : > { %v959_v26 = vmul.f32 %v955_v23, %v949_v22  ;;  %v4496_v27 = vadd.f32 %v960_v24, %v958_v21  ;;  %v3011_v22 = vld [vmem:[%s4385_s5 + $0x18] sm:$0xff]  }
 0x65f   : > { %v2991_v23 = vunpack.c.l.bf16 %v3011_v22  ;;  %v2992_v24 = vunpack.c.h.bf16 %v3011_v22 }
 0x660   : > { %v4498_v28 = vadd.f32 %v961_v25, %v959_v26 }
 0x662   : > { %v980_v29 = vpack.c.bf16 %v4498_v28, %v4496_v27 }
 0x664   : > { %982 = vrot.lane.b32.xlu1 %v980_v29, %s3898_s16 }
 0x6d6   : > { %v983_v30 = vpop.permute.xlu1 %982 }
 0x6d7   : > { %3083 = vmatmul.mubr.msk.bf16.vlgmr.msra.gmra.mrb[8].mxu1 %vm746_vm1, %v983_v30 }
 0x6d8   : > { %3087 = vmatpush3.bf16.msra.mxu1 %v4434_v2  ;;  %3090 = vmatprep.mubr.msk.bf16.mxu1 %vm3895_vm0, %v3894_v0 }
 0x6d9   : > { %3088 = vmatprep.subr.bf16.mxu1 %v3894_v0 }
 0x6dc   : > { %3089 = vmatpush3.bf16.msra.mxu1 %v4439_v3 }
 0x6dd   : > { %3102 = vmatprep.subr.bf16.mxu1 %v3894_v0 }
 0x7aa   : > { %v1021_v31 = vpop.f32.mrb[8].mxu1 }
 0x7ab   : > { %v1040_v32 = vadd.f32 %v4456_v4, %v1021_v31  ;;  %v3084_v33 = vpop.f32.mrb[9].mxu1  ;;  %v1028_v40 = vadd.f32 %v2987_v38, %v1021_v31 }
 0x7ac   : > { %v1024_v34 = vpop.f32.mrb[10].mxu1 }
 0x7ad   : > { %v1041_v35 = vadd.f32 %v4456_v4, %v1024_v34  ;;  %1044 = vrot.lane.b32.xlu0 %v1040_v32, %s3897_s29  ;;  %v3085_v36 = vpop.f32.mrb[11].mxu1  ;;  %v1029_v41 = vadd.f32 %v2988_v39, %v1024_v34  ;;  %v1030_v42 = vadd.f32 %v4456_v4, %v1028_v40 }
 0x7af   : > { %1046 = vrot.lane.b32.xlu1 %v1041_v35, %s3897_s29  ;;  %v1031_v43 = vadd.f32 %v4456_v4, %v1029_v41  ;;  %v1032_v46 = vmul.f32 0.5, %v1030_v42 }
 0x7b1   : > { %v1033_v47 = vmul.f32 0.5, %v1031_v43  ;;  %3324 = vtanh.f32 %v1032_v46 }
 0x7b3   : > { %3326 = vtanh.f32 %v1033_v47 }
 0x7bb   : > { %v3325_v48 = vpop.eup %3324 }
 0x7bc   : > { %v1036_v50 = vadd.f32 1.0, %v3325_v48 }
 0x7bd   : > { %v3327_v49 = vpop.eup %3326 }
 0x7be   : > { %v1037_v51 = vadd.f32 1.0, %v3327_v49  ;;  %v1038_v52 = vmul.f32 0.5, %v1036_v50 }
 0x7c0   : > { %v1039_v55 = vmul.f32 0.5, %v1037_v51  ;;  %v1064_v1 = vsub.f32 1.0, %v1038_v52  ;;  %v1076_v9 = vmul.f32 %v1038_v52, %v4496_v27 }
 0x7c2   : > { %v1065_v7 = vsub.f32 1.0, %v1039_v55  ;;  %v1077_v10 = vmul.f32 %v1039_v55, %v4498_v28 }
 0x81f   : > { %v1045_v53 = vpop.permute.xlu0 %1044 }
 0x820   : > { %v1050_v54 = vmul.f32 %v1045_v53, %v1038_v52 }
 0x821   : > { %v1047_v56 = vpop.permute.xlu1 %1046 }
 0x822   : > { %v1051_v57 = vmul.f32 %v1047_v56, %v1039_v55  ;;  %1054 = vrot.lane.b32.xlu0 %v1050_v54, %s3897_s29 }
 0x824   : > { %1056 = vrot.lane.b32.xlu1 %v1051_v57, %s3897_s29 }
 0x894   : > { %v1055_v58 = vpop.permute.xlu0 %1054 }
 0x895   : > { %v1060_v59 = vadd.f32 %v2987_v38, %v1055_v58 }
 0x896   : > { %v1057_v60 = vpop.permute.xlu1 %1056 }
 0x897   : > { %3328 = vtanh.f32 %v1060_v59  ;;  %v1061_v61 = vadd.f32 %v2988_v39, %v1057_v60 }
 0x899   : > { %3330 = vtanh.f32 %v1061_v61 }
 0x8a1   : > { %v3329_v62 = vpop.eup %3328 }
 0x8a2   : > { %1068 = vrot.lane.b32.xlu0 %v3329_v62, %s3898_s16 }
 0x8a3   : > { %v3331_v63 = vpop.eup %3330 }
 0x8a4   : > { %1070 = vrot.lane.b32.xlu1 %v3331_v63, %s3898_s16 }
 0x914   : > { %v1069_v5 = vpop.permute.xlu0 %1068 }
 0x915   : > { %v1074_v6 = vmul.f32 %v1069_v5, %v1064_v1 }
 0x916   : > { %v1071_v8 = vpop.permute.xlu1 %1070 }
 0x917   : > { %v1075_v11 = vmul.f32 %v1071_v8, %v1065_v7  ;;  %v4523_v12 = vadd.f32 %v1076_v9, %v1074_v6  ;;  %v3012_v9 = vld [vmem:[%s4385_s5 + $0x20] sm:$0xff]  }
 0x919   : > { %v4525_v13 = vadd.f32 %v1077_v10, %v1075_v11  ;;  %v2995_v10 = vunpack.c.l.bf16 %v3012_v9  ;;  %v2996_v11 = vunpack.c.h.bf16 %v3012_v9 }
 0x91b   : > { %v1096_v14 = vpack.c.bf16 %v4525_v13, %v4523_v12 }
 0x91d   : > { %1098 = vrot.lane.b32.xlu0 %v1096_v14, %s3898_s16 }
 0x98f   : > { %v1099_v15 = vpop.permute.xlu0 %1098 }
 0x990   : > { %3091 = vmatmul.mubr.msk.bf16.vlgmr.msra.gmra.mrb[12].mxu1 %vm746_vm1, %v1099_v15 }
 0x991   : > { %3103 = vmatpush3.bf16.msra.mxu1 %v4434_v2  ;;  %3106 = vmatprep.mubr.msk.bf16.mxu1 %vm3895_vm0, %v3894_v0 }
 0x992   : > { %3104 = vmatprep.subr.bf16.mxu1 %v3894_v0 }
 0x995   : > { %3105 = vmatpush3.bf16.msra.mxu1 %v4439_v3 }
 0x996   : > { %3118 = vmatprep.subr.bf16.mxu1 %v3894_v0 }
 0xa63   : > { %v1137_v16 = vpop.f32.mrb[12].mxu1 }
 0xa64   : > { %v1156_v17 = vadd.f32 %v4456_v4, %v1137_v16  ;;  %v3092_v18 = vpop.f32.mrb[13].mxu1  ;;  %v1144_v25 = vadd.f32 %v2991_v23, %v1137_v16 }
 0xa65   : > { %v1140_v19 = vpop.f32.mrb[14].mxu1 }
 0xa66   : > { %v1157_v20 = vadd.f32 %v4456_v4, %v1140_v19  ;;  %1160 = vrot.lane.b32.xlu1 %v1156_v17, %s3897_s29  ;;  %v3093_v21 = vpop.f32.mrb[15].mxu1  ;;  %v1145_v26 = vadd.f32 %v2992_v24, %v1140_v19  ;;  %v1146_v29 = vadd.f32 %v4456_v4, %v1144_v25 }
 0xa68   : > { %1162 = vrot.lane.b32.xlu0 %v1157_v20, %s3897_s29  ;;  %v1147_v30 = vadd.f32 %v4456_v4, %v1145_v26  ;;  %v1148_v31 = vmul.f32 0.5, %v1146_v29 }
 0xa6a   : > { %v1149_v32 = vmul.f32 0.5, %v1147_v30  ;;  %3332 = vtanh.f32 %v1148_v31 }
 0xa6c   : > { %3334 = vtanh.f32 %v1149_v32 }
 0xa74   : > { %v3333_v33 = vpop.eup %3332 }
 0xa75   : > { %v1152_v35 = vadd.f32 1.0, %v3333_v33 }
 0xa76   : > { %v3335_v34 = vpop.eup %3334 }
 0xa77   : > { %v1153_v36 = vadd.f32 1.0, %v3335_v34  ;;  %v1154_v37 = vmul.f32 0.5, %v1152_v35 }
 0xa79   : > { %v1155_v40 = vmul.f32 0.5, %v1153_v36  ;;  %v1180_v51 = vsub.f32 1.0, %v1154_v37  ;;  %v1192_v56 = vmul.f32 %v1154_v37, %v4523_v12 }
 0xa7b   : > { %v1181_v54 = vsub.f32 1.0, %v1155_v40  ;;  %v1193_v57 = vmul.f32 %v1155_v40, %v4525_v13 }
 0xad8   : > { %v1161_v38 = vpop.permute.xlu1 %1160 }
 0xad9   : > { %v1166_v39 = vmul.f32 %v1161_v38, %v1154_v37 }
 0xada   : > { %v1163_v41 = vpop.permute.xlu0 %1162 }
 0xadb   : > { %v1167_v42 = vmul.f32 %v1163_v41, %v1155_v40  ;;  %1170 = vrot.lane.b32.xlu1 %v1166_v39, %s3897_s29 }
 0xadd   : > { %1172 = vrot.lane.b32.xlu0 %v1167_v42, %s3897_s29 }
 0xb4d   : > { %v1171_v43 = vpop.permute.xlu1 %1170 }
 0xb4e   : > { %v1176_v46 = vadd.f32 %v2991_v23, %v1171_v43 }
 0xb4f   : > { %v1173_v47 = vpop.permute.xlu0 %1172 }
 0xb50   : > { %3336 = vtanh.f32 %v1176_v46  ;;  %v1177_v48 = vadd.f32 %v2992_v24, %v1173_v47 }
 0xb52   : > { %3338 = vtanh.f32 %v1177_v48 }
 0xb5a   : > { %v3337_v49 = vpop.eup %3336 }
 0xb5b   : > { %1184 = vrot.lane.b32.xlu1 %v3337_v49, %s3898_s16 }
 0xb5c   : > { %v3339_v50 = vpop.eup %3338 }
 0xb5d   : > { %1186 = vrot.lane.b32.xlu0 %v3339_v50, %s3898_s16 }
 0xbcd   : > { %v1185_v52 = vpop.permute.xlu1 %1184 }
 0xbce   : > { %v1190_v53 = vmul.f32 %v1185_v52, %v1180_v51 }
 0xbcf   : > { %v1187_v55 = vpop.permute.xlu0 %1186 }
 0xbd0   : > { %v1191_v58 = vmul.f32 %v1187_v55, %v1181_v54  ;;  %v4550_v59 = vadd.f32 %v1192_v56, %v1190_v53 }
 0xbd2   : > { %v4552_v60 = vadd.f32 %v1193_v57, %v1191_v58 }
 0xbd4   : > { %v1212_v61 = vpack.c.bf16 %v4552_v60, %v4550_v59 }
 0xbd6   : > { %1214 = vrot.lane.b32.xlu1 %v1212_v61, %s3898_s16 }
 0xc48   : > { %v1215_v62 = vpop.permute.xlu1 %1214 }
 0xc49   : > { %3099 = vmatmul.mubr.msk.bf16.vlgmr.msra.gmra.mrb[0].mxu0 %vm746_vm1, %v1215_v62 }
 0xc4a   : > { %3111 = vmatpush3.bf16.msra.mxu0 %v4434_v2  ;;  %3114 = vmatprep.mubr.msk.bf16.mxu0 %vm3895_vm0, %v3894_v0 }
 0xc4b   : > { %3112 = vmatprep.subr.bf16.mxu0 %v3894_v0 }
 0xc4e   : > { %3113 = vmatpush3.bf16.msra.mxu0 %v4439_v3 }
 0xd1c   : > { %v1253_v63 = vpop.f32.mrb[0].mxu0 }
 0xd1d   : > { %v1272_v1 = vadd.f32 %v4456_v4, %v1253_v63  ;;  %v3100_v5 = vpop.f32.mrb[1].mxu0  ;;  %v1260_v14 = vadd.f32 %v2995_v10, %v1253_v63 }
 0xd1e   : > { %v1256_v6 = vpop.f32.mrb[2].mxu0 }
 0xd1f   : > { %v1273_v7 = vadd.f32 %v4456_v4, %v1256_v6  ;;  %1276 = vrot.lane.b32.xlu0 %v1272_v1, %s3897_s29  ;;  %v3101_v8 = vpop.f32.mrb[3].mxu0  ;;  %v1261_v15 = vadd.f32 %v2996_v11, %v1256_v6  ;;  %v1262_v16 = vadd.f32 %v4456_v4, %v1260_v14 }
 0xd21   : > { %1278 = vrot.lane.b32.xlu1 %v1273_v7, %s3897_s29  ;;  %v1263_v17 = vadd.f32 %v4456_v4, %v1261_v15  ;;  %v1264_v18 = vmul.f32 0.5, %v1262_v16 }
 0xd23   : > { %v1265_v19 = vmul.f32 0.5, %v1263_v17  ;;  %3340 = vtanh.f32 %v1264_v18 }
 0xd25   : > { %3342 = vtanh.f32 %v1265_v19 }
 0xd2d   : > { %v3341_v20 = vpop.eup %3340 }
 0xd2e   : > { %v1268_v22 = vadd.f32 1.0, %v3341_v20 }
 0xd2f   : > { %v3343_v21 = vpop.eup %3342 }
 0xd30   : > { %v1269_v23 = vadd.f32 1.0, %v3343_v21  ;;  %v1270_v24 = vmul.f32 0.5, %v1268_v22 }
 0xd32   : > { %v1271_v29 = vmul.f32 0.5, %v1269_v23  ;;  %v1296_v38 = vsub.f32 1.0, %v1270_v24  ;;  %v1308_v43 = vmul.f32 %v1270_v24, %v4550_v59 }
 0xd34   : > { %v1297_v41 = vsub.f32 1.0, %v1271_v29  ;;  %v1309_v46 = vmul.f32 %v1271_v29, %v4552_v60 }
 0xd91   : > { %v1277_v25 = vpop.permute.xlu0 %1276 }
 0xd92   : > { %v1282_v26 = vmul.f32 %v1277_v25, %v1270_v24 }
 0xd93   : > { %v1279_v30 = vpop.permute.xlu1 %1278 }
 0xd94   : > { %v1283_v31 = vmul.f32 %v1279_v30, %v1271_v29  ;;  %1286 = vrot.lane.b32.xlu0 %v1282_v26, %s3897_s29 }
 0xd96   : > { %1288 = vrot.lane.b32.xlu1 %v1283_v31, %s3897_s29 }
 0xe06   : > { %v1287_v32 = vpop.permute.xlu0 %1286 }
 0xe07   : > { %v1292_v33 = vadd.f32 %v2995_v10, %v1287_v32 }
 0xe08   : > { %v1289_v34 = vpop.permute.xlu1 %1288 }
 0xe09   : > { %3344 = vtanh.f32 %v1292_v33  ;;  %v1293_v35 = vadd.f32 %v2996_v11, %v1289_v34 }
 0xe0b   : > { %3346 = vtanh.f32 %v1293_v35 }
 0xe13   : > { %v3345_v36 = vpop.eup %3344 }
 0xe14   : > { %1300 = vrot.lane.b32.xlu0 %v3345_v36, %s3898_s16 }
 0xe15   : > { %v3347_v37 = vpop.eup %3346 }
 0xe16   : > { %1302 = vrot.lane.b32.xlu1 %v3347_v37, %s3898_s16 }
 0xe86   : > { %v1301_v39 = vpop.permute.xlu0 %1300 }
 0xe87   : > { %v1306_v40 = vmul.f32 %v1301_v39, %v1296_v38 }
 0xe88   : > { %v1303_v42 = vpop.permute.xlu1 %1302 }
 0xe89   : > { %v1307_v47 = vmul.f32 %v1303_v42, %v1297_v41  ;;  %v4576_v48 = vadd.f32 %v1308_v43, %v1306_v40 }
 0xe8b   : > { %v4578_v49 = vadd.f32 %v1309_v46, %v1307_v47  ;;  %v3014_v47 = vld [vmem:[%s4385_s5 + $0x30] sm:$0xff]  }
 0xe8d   : > { %v1328_v50 = vpack.c.bf16 %v4578_v49, %v4576_v48 }
 0xe8f   : > { %1330 = vrot.lane.b32.xlu0 %v1328_v50, %s3898_s16  ;;  %v3003_v50 = vunpack.c.l.bf16 %v3014_v47 }
 0xf01   : > { %v1331_v51 = vpop.permute.xlu0 %1330 }
 0xf02   : > { %3107 = vmatmul.mubr.msk.bf16.vlgmr.msra.gmra.mrb[16].mxu1 %vm746_vm1, %v1331_v51  ;;  %v3004_v51 = vunpack.c.h.bf16 %v3014_v47 }
 0xf03   : > { %3119 = vmatpush3.bf16.msra.mxu1 %v4434_v2  ;;  %3122 = vmatprep.mubr.msk.bf16.mxu1 %vm3895_vm0, %v3894_v0  ;;  %v3013_v2 = vld [vmem:[%s4385_s5 + $0x28] sm:$0xff]  }
 0xf04   : > { %3120 = vmatprep.subr.bf16.mxu1 %v3894_v0  ;;  %v2999_v58 = vunpack.c.l.bf16 %v3013_v2  ;;  %v3000_v61 = vunpack.c.h.bf16 %v3013_v2 }
 0xf07   : > { %3121 = vmatpush3.bf16.msra.mxu1 %v4439_v3 }
 0xf08   : > { %3146 = vmatprep.subr.bf16.mxu1 %v3894_v0 }
 0xfd5   : > { %v1369_v52 = vpop.f32.mrb[16].mxu1 }
 0xfd6   : > { %v1388_v53 = vadd.f32 %v4456_v4, %v1369_v52  ;;  %v3108_v54 = vpop.f32.mrb[17].mxu1  ;;  %v1376_v62 = vadd.f32 %v2999_v58, %v1369_v52 }
 0xfd7   : > { %v1372_v55 = vpop.f32.mrb[18].mxu1 }
 0xfd8   : > { %v1389_v56 = vadd.f32 %v4456_v4, %v1372_v55  ;;  %1392 = vrot.lane.b32.xlu1 %v1388_v53, %s3897_s29  ;;  %v3109_v57 = vpop.f32.mrb[19].mxu1  ;;  %v1377_v63 = vadd.f32 %v3000_v61, %v1372_v55  ;;  %v1378_v3 = vadd.f32 %v4456_v4, %v1376_v62 }
 0xfda   : > { %1394 = vrot.lane.b32.xlu0 %v1389_v56, %s3897_s29  ;;  %v1379_v1 = vadd.f32 %v4456_v4, %v1377_v63  ;;  %v1380_v5 = vmul.f32 0.5, %v1378_v3 }
 0xfdc   : > { %v1381_v6 = vmul.f32 0.5, %v1379_v1  ;;  %3348 = vtanh.f32 %v1380_v5 }
 0xfde   : > { %3350 = vtanh.f32 %v1381_v6 }
 0xfe6   : > { %v3349_v7 = vpop.eup %3348 }
 0xfe7   : > { %v1384_v9 = vadd.f32 1.0, %v3349_v7 }
 0xfe8   : > { %v3351_v8 = vpop.eup %3350 }
 0xfe9   : > { %v1385_v10 = vadd.f32 1.0, %v3351_v8  ;;  %v1386_v11 = vmul.f32 0.5, %v1384_v9 }
 0xfeb   : > { %v1387_v16 = vmul.f32 0.5, %v1385_v10  ;;  %v1412_v25 = vsub.f32 1.0, %v1386_v11  ;;  %v1424_v32 = vmul.f32 %v1386_v11, %v4576_v48 }
 0xfed   : > { %v1413_v30 = vsub.f32 1.0, %v1387_v16  ;;  %v1425_v33 = vmul.f32 %v1387_v16, %v4578_v49 }
0x104a   : > { %v1393_v14 = vpop.permute.xlu1 %1392 }
0x104b   : > { %v1398_v15 = vmul.f32 %v1393_v14, %v1386_v11 }
0x104c   : > { %v1395_v17 = vpop.permute.xlu0 %1394 }
0x104d   : > { %v1399_v18 = vmul.f32 %v1395_v17, %v1387_v16  ;;  %1402 = vrot.lane.b32.xlu1 %v1398_v15, %s3897_s29 }
0x104f   : > { %1404 = vrot.lane.b32.xlu0 %v1399_v18, %s3897_s29 }
0x10bf   : > { %v1403_v19 = vpop.permute.xlu1 %1402 }
0x10c0   : > { %v1408_v20 = vadd.f32 %v2999_v58, %v1403_v19 }
0x10c1   : > { %v1405_v21 = vpop.permute.xlu0 %1404 }
0x10c2   : > { %3352 = vtanh.f32 %v1408_v20  ;;  %v1409_v22 = vadd.f32 %v3000_v61, %v1405_v21 }
0x10c4   : > { %3354 = vtanh.f32 %v1409_v22 }
0x10cc   : > { %v3353_v23 = vpop.eup %3352 }
0x10cd   : > { %1416 = vrot.lane.b32.xlu1 %v3353_v23, %s3898_s16 }
0x10ce   : > { %v3355_v24 = vpop.eup %3354 }
0x10cf   : > { %1418 = vrot.lane.b32.xlu0 %v3355_v24, %s3898_s16 }
0x113f   : > { %v1417_v26 = vpop.permute.xlu1 %1416 }
0x1140   : > { %v1422_v29 = vmul.f32 %v1417_v26, %v1412_v25 }
0x1141   : > { %v1419_v31 = vpop.permute.xlu0 %1418 }
0x1142   : > { %v1423_v34 = vmul.f32 %v1419_v31, %v1413_v30  ;;  %v4603_v35 = vadd.f32 %v1424_v32, %v1422_v29 }
0x1144   : > { %v4605_v36 = vadd.f32 %v1425_v33, %v1423_v34 }
0x1146   : > { %v1444_v37 = vpack.c.bf16 %v4605_v36, %v4603_v35 }
0x1148   : > { %1446 = vrot.lane.b32.xlu1 %v1444_v37, %s3898_s16 }
0x11ba   : > { %v1447_v38 = vpop.permute.xlu1 %1446 }
0x11bb   : > { %3115 = vmatmul.mubr.msk.bf16.vlgmr.msra.gmra.mrb[4].mxu0 %vm746_vm1, %v1447_v38  ;;  %v3015_v38 = vld [vmem:[%s4385_s5 + $0x38] sm:$0xff]  }
0x128e   : > { %v1485_v39 = vpop.f32.mrb[4].mxu0 }
0x128f   : > { %v1504_v40 = vadd.f32 %v4456_v4, %v1485_v39  ;;  %v3116_v41 = vpop.f32.mrb[5].mxu0  ;;  %v1492_v52 = vadd.f32 %v3003_v50, %v1485_v39  ;;  %v3007_v39 = vunpack.c.l.bf16 %v3015_v38 }
0x1290   : > { %v1488_v42 = vpop.f32.mrb[6].mxu0 }
0x1291   : > { %v1505_v43 = vadd.f32 %v4456_v4, %v1488_v42  ;;  %1508 = vrot.lane.b32.xlu0 %v1504_v40, %s3897_s29  ;;  %v3117_v46 = vpop.f32.mrb[7].mxu0  ;;  %v1493_v53 = vadd.f32 %v3004_v51, %v1488_v42  ;;  %v1494_v54 = vadd.f32 %v4456_v4, %v1492_v52  ;;  %v3008_v40 = vunpack.c.h.bf16 %v3015_v38 }
0x1293   : > { %1510 = vrot.lane.b32.xlu1 %v1505_v43, %s3897_s29  ;;  %v1495_v55 = vadd.f32 %v4456_v4, %v1493_v53  ;;  %v1496_v56 = vmul.f32 0.5, %v1494_v54 }
0x1295   : > { %v1497_v57 = vmul.f32 0.5, %v1495_v55  ;;  %3356 = vtanh.f32 %v1496_v56 }
0x1297   : > { %3358 = vtanh.f32 %v1497_v57 }
0x129f   : > { %v3357_v2 = vpop.eup %3356 }
0x12a0   : > { %v1500_v61 = vadd.f32 1.0, %v3357_v2 }
0x12a1   : > { %v3359_v58 = vpop.eup %3358 }
0x12a2   : > { %v1501_v62 = vadd.f32 1.0, %v3359_v58  ;;  %v1502_v63 = vmul.f32 0.5, %v1500_v61 }
0x12a4   : > { %v1503_v5 = vmul.f32 0.5, %v1501_v62  ;;  %v1528_v16 = vsub.f32 1.0, %v1502_v63  ;;  %v1540_v21 = vmul.f32 %v1502_v63, %v4603_v35 }
0x12a6   : > { %v1529_v19 = vsub.f32 1.0, %v1503_v5  ;;  %v1541_v22 = vmul.f32 %v1503_v5, %v4605_v36 }
0x1303   : > { %v1509_v3 = vpop.permute.xlu0 %1508 }
0x1304   : > { %v1514_v1 = vmul.f32 %v1509_v3, %v1502_v63 }
0x1305   : > { %v1511_v6 = vpop.permute.xlu1 %1510 }
0x1306   : > { %v1515_v7 = vmul.f32 %v1511_v6, %v1503_v5  ;;  %1518 = vrot.lane.b32.xlu0 %v1514_v1, %s3897_s29  ;;  %v3296_v1 = vld [vmem:[%s604_s2] sm:$0xff]  }
0x1307   : > { %3126 = vmatprep.subr.bf16.mxu0 %v3296_v1 }
0x1308   : > { %1520 = vrot.lane.b32.xlu1 %v1515_v7, %s3897_s29  ;;  %3127 = vmatpush3.bf16.msra.mxu0 %v3296_v1  ;;  %v3297_v7 = vld [vmem:[%s604_s2 + $0x8] sm:$0xff]   ;;  %s3782_s2 = scalar_lea.vmem %s3781_s21, 512 }
0x1309   : > { %3128 = vmatprep.subr.bf16.mxu0 %v3297_v7  ;;  %p3784_p10 = scmp.lt.s32.totalorder %s3782_s2, %s3776_s11 }
0x130b   : > { %p3785_p0 = por %p3784_p10, %p3783_p9 }
0x130c   : > { %3129 = vmatpush3.bf16.msra.mxu0 %v3297_v7 }
0x130d   : > { %3154 = vmatprep.subr.bf16.mxu0 %v3894_v0  ;;  %p3786_p13 = pnand %p3785_p0, %p3779_p6 }
0x1378   : > { %v1519_v8 = vpop.permute.xlu0 %1518 }
0x1379   : > { %v1524_v9 = vadd.f32 %v3003_v50, %v1519_v8 }
0x137a   : > { %v1521_v10 = vpop.permute.xlu1 %1520 }
0x137b   : > { %3360 = vtanh.f32 %v1524_v9  ;;  %v1525_v11 = vadd.f32 %v3004_v51, %v1521_v10 }
0x137d   : > { %3362 = vtanh.f32 %v1525_v11 }
0x1385   : > { %v3361_v14 = vpop.eup %3360 }
0x1386   : > { %1532 = vrot.lane.b32.xlu0 %v3361_v14, %s3898_s16 }
0x1387   : > { %v3363_v15 = vpop.eup %3362 }
0x1388   : > { %1534 = vrot.lane.b32.xlu1 %v3363_v15, %s3898_s16 }
0x13f8   : > { %v1533_v17 = vpop.permute.xlu0 %1532 }
0x13f9   : > { %v1538_v18 = vmul.f32 %v1533_v17, %v1528_v16 }
0x13fa   : > { %v1535_v20 = vpop.permute.xlu1 %1534 }
0x13fb   : > { %v1539_v23 = vmul.f32 %v1535_v20, %v1529_v19  ;;  %v4624_v24 = vadd.f32 %v1540_v21, %v1538_v18 }
0x13fd   : > { %v4626_v25 = vadd.f32 %v1541_v22, %v1539_v23 }
0x13ff   : > { %v1560_v26 = vpack.c.bf16 %v4626_v25, %v4624_v24 }
0x1401   : > { %1562 = vrot.lane.b32.xlu0 %v1560_v26, %s3898_s16 }
0x1473   : > { %v1563_v29 = vpop.permute.xlu0 %1562 }
0x1474   : > { %3123 = vmatmul.mubr.msk.bf16.vlgmr.msra.gmra.mrb[20].mxu1 %vm746_vm1, %v1563_v29 }
0x1475   : > { %3150 = vmatprep.mubr.msk.bf16.mxu1 %vm3895_vm0, %v3894_v0 }
0x1547   : > { %v1601_v30 = vpop.f32.mrb[20].mxu1 }
0x1548   : > { %v1620_v31 = vadd.f32 %v4456_v4, %v1601_v30  ;;  %v3124_v32 = vpop.f32.mrb[21].mxu1  ;;  %v1608_v41 = vadd.f32 %v3007_v39, %v1601_v30 }
0x1549   : > { %v1604_v33 = vpop.f32.mrb[22].mxu1 }
0x154a   : > { %v1621_v34 = vadd.f32 %v4456_v4, %v1604_v33  ;;  %1624 = vrot.lane.b32.xlu1 %v1620_v31, %s3897_s29  ;;  %v3125_v37 = vpop.f32.mrb[23].mxu1  ;;  %v1609_v42 = vadd.f32 %v3008_v40, %v1604_v33  ;;  %v1610_v43 = vadd.f32 %v4456_v4, %v1608_v41 }
0x154c   : > { %1626 = vrot.lane.b32.xlu0 %v1621_v34, %s3897_s29  ;;  %v1611_v46 = vadd.f32 %v4456_v4, %v1609_v42  ;;  %v1612_v47 = vmul.f32 0.5, %v1610_v43 }
0x154e   : > { %v1613_v50 = vmul.f32 0.5, %v1611_v46  ;;  %3364 = vtanh.f32 %v1612_v47 }
0x1550   : > { %3366 = vtanh.f32 %v1613_v50 }
0x1558   : > { %v3365_v51 = vpop.eup %3364 }
0x1559   : > { %v1616_v53 = vadd.f32 1.0, %v3365_v51 }
0x155a   : > { %v3367_v52 = vpop.eup %3366 }
0x155b   : > { %v1617_v54 = vadd.f32 1.0, %v3367_v52  ;;  %v1618_v55 = vmul.f32 0.5, %v1616_v53 }
0x155d   : > { %v1619_v2 = vmul.f32 0.5, %v1617_v54 }
0x15bc   : > { %v1625_v56 = vpop.permute.xlu1 %1624 }
0x15bd   : > { %v1630_v57 = vmul.f32 %v1625_v56, %v1618_v55 }
0x15be   : > { %v1627_v58 = vpop.permute.xlu0 %1626 }
0x15bf   : > { %v1631_v61 = vmul.f32 %v1627_v58, %v1619_v2  ;;  %1634 = vrot.lane.b32.xlu1 %v1630_v57, %s3897_s29 }
0x15c1   : > { %1636 = vrot.lane.b32.xlu0 %v1631_v61, %s3897_s29 }
0x1631   : > { %v1635_v4 = vpop.permute.xlu1 %1634 }
0x1632   : > { %v1640_v62 = vadd.f32 %v3007_v39, %v1635_v4 }
0x1633   : > { %v1637_v63 = vpop.permute.xlu0 %1636 }
0x1634   : > { %3368 = vtanh.f32 %v1640_v62  ;;  %v1641_v3 = vadd.f32 %v3008_v40, %v1637_v63  ;;  %v4758_v63 = vld [vmem:[%s612_s30] ss:$0 sm:$0xff] }
0x1636   : > { %3370 = vtanh.f32 %v1641_v3 }
0x163e   : > { %v3369_v5 = vpop.eup %3368 }
0x163f   : > { %1648 = vrot.lane.b32.xlu1 %v3369_v5, %s3898_s16 }
0x1640   : > { %v3371_v6 = vpop.eup %3370 }
0x1641   : > { %1650 = vrot.lane.b32.xlu0 %v3371_v6, %s3898_s16 }
0x1643   : > { %851 = vrot.lane.b32.xlu1 %v4469_v44, %s3898_s16  ;;  %v1644_v44 = vsub.f32 1.0, %v1618_v55 }
0x1645   : > { %853 = vrot.lane.b32.xlu0 %v4471_v45, %s3898_s16 }
0x1647   : > { %966 = vrot.lane.b32.xlu1 %v4496_v27, %s3898_s16  ;;  %v1656_v27 = vmul.f32 %v1618_v55, %v4624_v24 }
0x1649   : > { %968 = vrot.lane.b32.xlu0 %v4498_v28, %s3898_s16 }
0x164b   : > { %1082 = vrot.lane.b32.xlu1 %v4523_v12, %s3898_s16  ;;  %v1645_v12 = vsub.f32 1.0, %v1619_v2 }
0x164d   : > { %1084 = vrot.lane.b32.xlu0 %v4525_v13, %s3898_s16 }
0x164f   : > { %1198 = vrot.lane.b32.xlu1 %v4550_v59, %s3898_s16 }
0x1651   : > { %1200 = vrot.lane.b32.xlu0 %v4552_v60, %s3898_s16  ;;  %v1657_v60 = vmul.f32 %v1619_v2, %v4626_v25 }
0x1653   : > { %1314 = vrot.lane.b32.xlu1 %v4576_v48, %s3898_s16 }
0x1655   : > { %1316 = vrot.lane.b32.xlu0 %v4578_v49, %s3898_s16 }
0x1657   : > { %1430 = vrot.lane.b32.xlu1 %v4603_v35, %s3898_s16 }
0x1659   : > { %1432 = vrot.lane.b32.xlu0 %v4605_v36, %s3898_s16 }
0x165b   : > { %1546 = vrot.lane.b32.xlu1 %v4624_v24, %s3898_s16 }
0x165d   : > { %1548 = vrot.lane.b32.xlu0 %v4626_v25, %s3898_s16 }
0x16b1   : > { %v1649_v45 = vpop.permute.xlu1 %1648 }
0x16b2   : > { %v1654_v28 = vmul.f32 %v1649_v45, %v1644_v44 }
0x16b3   : > { %v1651_v13 = vpop.permute.xlu0 %1650 }
0x16b4   : > { %v1658_v59 = vadd.f32 %v1656_v27, %v1654_v28  ;;  %v1655_v48 = vmul.f32 %v1651_v13, %v1645_v12 }
0x16b5   : > { %v852_v49 = vpop.permute.xlu1 %851 }
0x16b6   : > { %v1659_v35 = vadd.f32 %v1657_v60, %v1655_v48  ;;  %857 = vst.msk [vmem:[#allocation2] sm:$0xff] %vm746_vm1, %v852_v49  ;;  %1662 = vrot.lane.b32.xlu1 %v1658_v59, %s3898_s16 }
0x16b7   : > { %v854_v36 = vpop.permute.xlu0 %853 }
0x16b8   : > { %858 = vst.msk [vmem:[#allocation2 + $0x8] sm:$0xff] %vm746_vm1, %v854_v36  ;;  %1664 = vrot.lane.b32.xlu0 %v1659_v35, %s3898_s16 }
0x16b9   : > { %v967_v8 = vpop.permute.xlu1 %966 }
0x16ba   : > { %973 = vst.msk [vmem:[#allocation2 + $0x10] sm:$0xff] %vm746_vm1, %v967_v8 }
0x16bb   : > { %v969_v9 = vpop.permute.xlu0 %968 }
0x16bc   : > { %974 = vst.msk [vmem:[#allocation2 + $0x18] sm:$0xff] %vm746_vm1, %v969_v9 }
0x16bd   : > { %v1083_v10 = vpop.permute.xlu1 %1082  ;;  %v4687_v14 = vld [vmem:[#allocation2] sm:$0xff] }
0x16be   : > { %1089 = vst.msk [vmem:[#allocation2 + $0x20] sm:$0xff] %vm746_vm1, %v1083_v10 }
0x16bf   : > { %v1085_v11 = vpop.permute.xlu0 %1084  ;;  %v4689_v15 = vld [vmem:[#allocation2 + $0x8] sm:$0xff] }
0x16c0   : > { %1090 = vst.msk [vmem:[#allocation2 + $0x28] sm:$0xff] %vm746_vm1, %v1085_v11  ;;  %v1687_v16 = vpack.c.bf16 %v4689_v15, %v4687_v14 }
0x16c1   : > { %v1199_v17 = vpop.permute.xlu1 %1198  ;;  %v4696_v19 = vld [vmem:[#allocation2 + $0x10] sm:$0xff] }
0x16c2   : > { %1205 = vst.msk [vmem:[#allocation2 + $0x30] sm:$0xff] %vm746_vm1, %v1199_v17  ;;  %3130 = vmatprep.mubr.msk.bf16.mxu0 %vm746_vm1, %v1687_v16 }
0x16c3   : > { %v1201_v18 = vpop.permute.xlu0 %1200  ;;  %v4698_v20 = vld [vmem:[#allocation2 + $0x18] sm:$0xff] }
0x16c4   : > { %1206 = vst.msk [vmem:[#allocation2 + $0x38] sm:$0xff] %vm746_vm1, %v1201_v18  ;;  %v1688_v21 = vpack.c.bf16 %v4698_v20, %v4696_v19 }
0x16c5   : > { %v1315_v22 = vpop.permute.xlu1 %1314  ;;  %v4705_v24 = vld [vmem:[#allocation2 + $0x20] sm:$0xff] }
0x16c6   : > { %1321 = vst.msk [vmem:[#allocation2 + $0x40] sm:$0xff] %vm746_vm1, %v1315_v22  ;;  %3131 = vmatmul.mubr.msk.bf16.vlgmr.msra.gmra.mrb[8].mxu0 %vm746_vm1, %v1688_v21 }
0x16c7   : > { %v1317_v23 = vpop.permute.xlu0 %1316  ;;  %v4707_v25 = vld [vmem:[#allocation2 + $0x28] sm:$0xff] }
0x16c8   : > { %1322 = vst.msk [vmem:[#allocation2 + $0x48] sm:$0xff] %vm746_vm1, %v1317_v23  ;;  %v1689_v26 = vpack.c.bf16 %v4707_v25, %v4705_v24 }
0x16c9   : > { %v1431_v29 = vpop.permute.xlu1 %1430  ;;  %v4714_v31 = vld [vmem:[#allocation2 + $0x30] sm:$0xff] }
0x16ca   : > { %1437 = vst.msk [vmem:[#allocation2 + $0x50] sm:$0xff] %vm746_vm1, %v1431_v29  ;;  %3134 = vmatprep.mubr.msk.bf16.mxu0 %vm746_vm1, %v1689_v26 }
0x16cb   : > { %v1433_v30 = vpop.permute.xlu0 %1432  ;;  %v4716_v32 = vld [vmem:[#allocation2 + $0x38] sm:$0xff] }
0x16cc   : > { %1438 = vst.msk [vmem:[#allocation2 + $0x58] sm:$0xff] %vm746_vm1, %v1433_v30  ;;  %v1690_v33 = vpack.c.bf16 %v4716_v32, %v4714_v31 }
0x16cd   : > { %v1547_v34 = vpop.permute.xlu1 %1546  ;;  %v4723_v38 = vld [vmem:[#allocation2 + $0x40] sm:$0xff] }
0x16ce   : > { %1553 = vst.msk [vmem:[#allocation2 + $0x60] sm:$0xff] %vm746_vm1, %v1547_v34  ;;  %3135 = vmatmul.mubr.msk.bf16.gmra.mrb[12].mxu0 %vm746_vm1, %v1690_v33 }
0x16cf   : > { %v1549_v37 = vpop.permute.xlu0 %1548  ;;  %v4725_v39 = vld [vmem:[#allocation2 + $0x48] sm:$0xff] }
0x16d0   : > { %1554 = vst.msk [vmem:[#allocation2 + $0x68] sm:$0xff] %vm746_vm1, %v1549_v37  ;;  %v1691_v40 = vpack.c.bf16 %v4725_v39, %v4723_v38 }
0x16d1   : > { %v4731_v41 = vld [vmem:[#allocation2 + $0x50] sm:$0xff] }
0x16d2   : > { %3138 = vmatprep.mubr.msk.bf16.mxu0 %vm746_vm1, %v1691_v40 }
0x16d3   : > { %v4733_v42 = vld [vmem:[#allocation2 + $0x58] sm:$0xff] }
0x16d4   : > { %v1692_v43 = vpack.c.bf16 %v4733_v42, %v4731_v41 }
0x16d5   : > { %v4738_v46 = vld [vmem:[#allocation2 + $0x60] sm:$0xff] }
0x16d6   : > { %3139 = vmatmul.mubr.msk.bf16.gmra.mrb[16].mxu0 %vm746_vm1, %v1692_v43 }
0x16d7   : > { %v4740_v47 = vld [vmem:[#allocation2 + $0x68] sm:$0xff] }
0x16d8   : > { %v1693_v50 = vpack.c.bf16 %v4740_v47, %v4738_v46 }
0x16da   : > { %3142 = vmatprep.mubr.msk.bf16.mxu0 %vm746_vm1, %v1693_v50 }
0x1728   : > { %v1663_v51 = vpop.permute.xlu1 %1662 }
0x1729   : > { %1669 = vst.msk [vmem:[#allocation2 + $0x70] sm:$0xff] %vm746_vm1, %v1663_v51 }
0x172a   : > { %v1665_v52 = vpop.permute.xlu0 %1664 }
0x172b   : > { %1670 = vst.msk [vmem:[#allocation2 + $0x78] sm:$0xff] %vm746_vm1, %v1665_v52 }
0x1730   : > { %v4747_v53 = vld [vmem:[#allocation2 + $0x70] sm:$0xff] }
0x1732   : > { %v4749_v54 = vld [vmem:[#allocation2 + $0x78] sm:$0xff] }
0x1733   : > { %v1694_v55 = vpack.c.bf16 %v4749_v54, %v4747_v53 }
0x1735   : > { %3143 = vmatmul.mubr.msk.bf16.gmra.mrb[20].mxu0 %vm746_vm1, %v1694_v55 }
0x1736   : > { %3170 = vmatprep.mubr.msk.bf16.mxu0 %vm3895_vm0, %v3894_v0 }
0x1799   : > { %v3132_v56 = vpop.f32.mrb[8].mxu0 }
0x179a   : > { %3372 = vtanh.f32 %v3132_v56  ;;  %v1769_v57 = vpop.f32.mrb[9].mxu0 }
0x179b   : > { %3374 = vtanh.f32 %v1769_v57  ;;  %v3133_v2 = vpop.f32.mrb[10].mxu0 }
0x179c   : > { %3376 = vtanh.f32 %v3133_v2  ;;  %v1772_v58 = vpop.f32.mrb[11].mxu0 }
0x179d   : > { %3378 = vtanh.f32 %v1772_v58 }
0x17a1   : > { %v3136_v61 = vpop.f32.mrb[12].mxu0 }
0x17a2   : > { %3380 = vtanh.f32 %v3136_v61  ;;  %v1785_v4 = vpop.f32.mrb[13].mxu0 }
0x17a3   : > { %3382 = vtanh.f32 %v1785_v4  ;;  %v3137_v62 = vpop.f32.mrb[14].mxu0 }
0x17a4   : > { %v3373_v3 = vpop.eup %3372  ;;  %3384 = vtanh.f32 %v3137_v62  ;;  %v1788_v1 = vpop.f32.mrb[15].mxu0 }
0x17a5   : > { %v3375_v5 = vpop.eup %3374  ;;  %3386 = vtanh.f32 %v1788_v1  ;;  %v1857_v60 = vmul.f32 %v3373_v3, %v4758_v63 }
0x17a6   : > { %v3377_v6 = vpop.eup %3376  ;;  %v1855_v7 = vmul.f32 %v3375_v5, %v4758_v63 }
0x17a7   : > { %v3379_v44 = vpop.eup %3378  ;;  %v1858_v28 = vmul.f32 %v3377_v6, %v4758_v63  ;;  %v1877_v10 = vsel %vm746_vm1, %v1857_v60, 0.0 }
0x17a8   : > { %v1871_v45 = vsel %vm746_vm1, %v1855_v7, 0.0  ;;  %v1856_v27 = vmul.f32 %v3379_v44, %v4758_v63 }
0x17a9   : > { %1872 = vadd.xlane.f32.xlu1 %v1871_v45  ;;  %v3140_v12 = vpop.f32.mrb[16].mxu0  ;;  %v1880_v36 = vsel %vm746_vm1, %v1858_v28, 0.0 }
0x17aa   : > { %3388 = vtanh.f32 %v3140_v12  ;;  %v1801_v13 = vpop.f32.mrb[17].mxu0  ;;  %v1874_v59 = vsel %vm746_vm1, %v1856_v27, 0.0 }
0x17ab   : > { %3390 = vtanh.f32 %v1801_v13  ;;  %1875 = vadd.xlane.f32.xlu0 %v1874_v59  ;;  %v3141_v48 = vpop.f32.mrb[18].mxu0 }
0x17ac   : > { %v3381_v49 = vpop.eup %3380  ;;  %3392 = vtanh.f32 %v3141_v48  ;;  %v1804_v35 = vpop.f32.mrb[19].mxu0  ;;  %v4796_v48 = vld [vmem:[%s578_s20] sm:$0xff] }
0x17ad   : > { %v3383_v8 = vpop.eup %3382  ;;  %3394 = vtanh.f32 %v1804_v35  ;;  %1881 = vadd.xlane.f32.xlu1 %v1880_v36  ;;  %v1861_v22 = vmul.f32 %v3381_v49, %v4758_v63  ;;  %vm1940_vm3 = vcmp.gt.s32.totalorder %v4796_v48, 0  ;;  %vm1995_vm6 = vcmp.gt.s32.totalorder %v4796_v48, 1 }
0x17ae   : > { %v3385_v9 = vpop.eup %3384  ;;  %v1859_v11 = vmul.f32 %v3383_v8, %v4758_v63  ;;  %vm2050_vm8 = vcmp.gt.s32.totalorder %v4796_v48, 2  ;;  %vm2160_vm9 = vcmp.gt.s32.totalorder %v4796_v48, 4  ;;  %vm2105_vm11 = vcmp.gt.s32.totalorder %v4796_v48, 3 }
0x17af   : > { %v3387_v16 = vpop.eup %3386  ;;  %1878 = vadd.xlane.f32.xlu0 %v1877_v10  ;;  %v1862_v23 = vmul.f32 %v3385_v9, %v4758_v63  ;;  %v1889_v33 = vsel %vm746_vm1, %v1861_v22, 0.0  ;;  %vm2215_vm14 = vcmp.gt.s32.totalorder %v4796_v48, 5  ;;  %vm2270_vm15 = vcmp.gt.s32.totalorder %v4796_v48, 6 }
0x17b0   : > { %v1860_v17 = vmul.f32 %v3387_v16, %v4758_v63  ;;  %v1883_v18 = vsel %vm746_vm1, %v1859_v11, 0.0 }
0x17b1   : > { %v1892_v34 = vsel %vm746_vm1, %v1862_v23, 0.0 }
0x17b2   : > { %v1886_v21 = vsel %vm746_vm1, %v1860_v17, 0.0 }
0x17b3   : > { %1884 = vadd.xlane.f32.xlu0 %v1883_v18  ;;  %1887 = vadd.xlane.f32.xlu1 %v1886_v21 }
0x17b4   : > { %v3389_v26 = vpop.eup %3388 }
0x17b5   : > { %v3391_v29 = vpop.eup %3390  ;;  %v1865_v52 = vmul.f32 %v3389_v26, %v4758_v63 }
0x17b6   : > { %v3393_v30 = vpop.eup %3392  ;;  %v1863_v37 = vmul.f32 %v3391_v29, %v4758_v63 }
0x17b7   : > { %v3395_v40 = vpop.eup %3394  ;;  %1890 = vadd.xlane.f32.xlu0 %v1889_v33  ;;  %1893 = vadd.xlane.f32.xlu1 %v1892_v34  ;;  %v1866_v55 = vmul.f32 %v3393_v30, %v4758_v63  ;;  %v1901_v56 = vsel %vm746_vm1, %v1865_v52, 0.0 }
0x17b8   : > { %v1864_v43 = vmul.f32 %v3395_v40, %v4758_v63  ;;  %v1895_v50 = vsel %vm746_vm1, %v1863_v37, 0.0 }
0x17b9   : > { %v1904_v57 = vsel %vm746_vm1, %v1866_v55, 0.0 }
0x17ba   : > { %v1898_v51 = vsel %vm746_vm1, %v1864_v43, 0.0 }
0x17bb   : > { %1896 = vadd.xlane.f32.xlu0 %v1895_v50  ;;  %1899 = vadd.xlane.f32.xlu1 %v1898_v51 }
0x17bf   : > { %1902 = vadd.xlane.f32.xlu0 %v1901_v56  ;;  %1905 = vadd.xlane.f32.xlu1 %v1904_v57 }
0x1808   : > { %v3144_v2 = vpop.f32.mrb[20].mxu0 }
0x1809   : > { %3396 = vtanh.f32 %v3144_v2  ;;  %v1817_v58 = vpop.f32.mrb[21].mxu0 }
0x180a   : > { %3398 = vtanh.f32 %v1817_v58  ;;  %v3145_v61 = vpop.f32.mrb[22].mxu0 }
0x180b   : > { %3400 = vtanh.f32 %v3145_v61  ;;  %v1820_v4 = vpop.f32.mrb[23].mxu0 }
0x180c   : > { %3402 = vtanh.f32 %v1820_v4 }
0x1813   : > { %v3397_v62 = vpop.eup %3396 }
0x1814   : > { %v3399_v3 = vpop.eup %3398  ;;  %v1869_v45 = vmul.f32 %v3397_v62, %v4758_v63 }
0x1815   : > { %v3401_v1 = vpop.eup %3400  ;;  %v1867_v5 = vmul.f32 %v3399_v3, %v4758_v63 }
0x1816   : > { %v3403_v6 = vpop.eup %3402  ;;  %v1870_v28 = vmul.f32 %v3401_v1, %v4758_v63  ;;  %v1913_v12 = vsel %vm746_vm1, %v1869_v45, 0.0 }
0x1817   : > { %v1907_v7 = vsel %vm746_vm1, %v1867_v5, 0.0  ;;  %v1868_v44 = vmul.f32 %v3403_v6, %v4758_v63  ;;  %v4801_v63 = vld [vmem:[%s578_s20 + $0x8] sm:$0xff]  ;;  %s4987_s20 = scalar_lea.hbm %s5118_s15, %s2976_s24 }
0x1818   : > { %1908 = vadd.xlane.f32.xlu0 %v1907_v7  ;;  %v1916_v13 = vsel %vm746_vm1, %v1870_v28, 0.0  ;;  %vm1941_vm4 = vcmp.gt.s32.totalorder %v4801_v63, 0  ;;  %vm1996_vm5 = vcmp.gt.s32.totalorder %v4801_v63, 1  ;;  %vm2051_vm7 = vcmp.gt.s32.totalorder %v4801_v63, 2 }
0x1819   : > { %v1910_v27 = vsel %vm746_vm1, %v1868_v44, 0.0  ;;  %vm2106_vm10 = vcmp.gt.s32.totalorder %v4801_v63, 3  ;;  %vm2161_vm12 = vcmp.gt.s32.totalorder %v4801_v63, 4  ;;  %vm2216_vm13 = vcmp.gt.s32.totalorder %v4801_v63, 5 }
0x181a   : > { %1911 = vadd.xlane.f32.xlu1 %v1910_v27  ;;  %vm2271_vm0 = vcmp.gt.s32.totalorder %v4801_v63, 6 }
0x181c   : > { %1914 = vadd.xlane.f32.xlu0 %v1913_v12 }
0x181e   : > { %1917 = vadd.xlane.f32.xlu1 %v1916_v13 }
0x1836   : > { %v1873_v59 = vpop.xlane.xlu1 %1872 }
0x1837   : > { %1920 = vst.msk [vmem:[#allocation3] sm:$0xff] %vm1919_vm2, %v1873_v59 }
0x1838   : > { %v1876_v60 = vpop.xlane.xlu0 %1875 }
0x1839   : > { %1921 = vst.msk [vmem:[#allocation3 + $0x8] sm:$0xff] %vm1919_vm2, %v1876_v60 }
0x183a   : > { %v1882_v49 = vpop.xlane.xlu1 %1881 }
0x183b   : > { %1923 = vst.msk [vmem:[#allocation3 + $0x18] sm:$0xff] %vm1919_vm2, %v1882_v49 }
0x183c   : > { %v1879_v35 = vpop.xlane.xlu0 %1878 }
0x183d   : > { %1922 = vst.msk [vmem:[#allocation3 + $0x10] sm:$0xff] %vm1919_vm2, %v1879_v35 }
0x183e   : > { %v1938_v36 = vld [vmem:[#allocation3] sm:$0xff] }
0x183f   : > { %v1942_v8 = vsel %vm1940_vm3, %v1938_v36, -1e+30 }
0x1840   : > { %v1939_v9 = vld [vmem:[#allocation3 + $0x8] sm:$0xff]  ;;  %v1888_v10 = vpop.xlane.xlu1 %1887  ;;  %v1885_v11 = vpop.xlane.xlu0 %1884  ;;  %v1944_v16 = vmax.f32 %v1942_v8, -1e+30 }
0x1841   : > { %1925 = vst.msk [vmem:[#allocation3 + $0x28] sm:$0xff] %vm1919_vm2, %v1888_v10  ;;  %1924 = vst.msk [vmem:[#allocation3 + $0x20] sm:$0xff] %vm1919_vm2, %v1885_v11  ;;  %v1943_v17 = vsel %vm1941_vm4, %v1939_v9, -1e+30 }
0x1842   : > { %v1994_v18 = vld [vmem:[#allocation3 + $0x18] sm:$0xff]  ;;  %v1946_v21 = vsub.f32 -1e+30, %v1944_v16  ;;  %v1945_v22 = vmax.f32 %v1943_v17, -1e+30  ;;  %v1952_v23 = vsub.f32 %v1942_v8, %v1944_v16 }
0x1843   : > { %v1998_v26 = vsel %vm1996_vm5, %v1994_v18, -1e+30 }
0x1844   : > { %v1993_v29 = vld [vmem:[#allocation3 + $0x10] sm:$0xff]  ;;  %v1894_v30 = vpop.xlane.xlu1 %1893  ;;  %v1891_v33 = vpop.xlane.xlu0 %1890  ;;  %v1948_v34 = vmul.f32 1.442695, %v1946_v21  ;;  %v1947_v37 = vsub.f32 -1e+30, %v1945_v22  ;;  %v2000_v40 = vmax.f32 %v1945_v22, %v1998_v26  ;;  %v1953_v43 = vsub.f32 %v1943_v17, %v1945_v22 }
0x1845   : > { %1927 = vst.msk [vmem:[#allocation3 + $0x38] sm:$0xff] %vm1919_vm2, %v1894_v30  ;;  %1926 = vst.msk [vmem:[#allocation3 + $0x30] sm:$0xff] %vm1919_vm2, %v1891_v33  ;;  %v1954_v50 = vmul.f32 1.442695, %v1952_v23  ;;  %v1997_v51 = vsel %vm1995_vm6, %v1993_v29, -1e+30 }
0x1846   : > { %3404 = vpow2.f32 %v1948_v34  ;;  %v1950_v52 = vmul.f32 1.442695, %v1947_v37  ;;  %v1956_v55 = vmul.f32 1.442695, %v1953_v43  ;;  %v2002_v56 = vsub.f32 %v1945_v22, %v2000_v40 }
0x1847   : > { %3406 = vpow2.f32 %v1954_v50  ;;  %v2008_v57 = vsub.f32 %v1998_v26, %v2000_v40  ;;  %v1999_v2 = vmax.f32 %v1944_v16, %v1997_v51 }
0x1848   : > { %v2049_v58 = vld [vmem:[#allocation3 + $0x28] sm:$0xff]  ;;  %v1900_v61 = vpop.xlane.xlu1 %1899  ;;  %v1897_v4 = vpop.xlane.xlu0 %1896  ;;  %3408 = vpow2.f32 %v1950_v52  ;;  %v2005_v62 = vmul.f32 1.442695, %v2002_v56  ;;  %v2048_v3 = vld [vmem:[#allocation3 + $0x20] sm:$0xff] }
0x1849   : > { %1929 = vst.msk [vmem:[#allocation3 + $0x48] sm:$0xff] %vm1919_vm2, %v1900_v61  ;;  %1928 = vst.msk [vmem:[#allocation3 + $0x40] sm:$0xff] %vm1919_vm2, %v1897_v4  ;;  %v2053_v1 = vsel %vm2051_vm7, %v2049_v58, -1e+30  ;;  %3410 = vpow2.f32 %v1956_v55  ;;  %v2011_v5 = vmul.f32 1.442695, %v2008_v57  ;;  %v2001_v6 = vsub.f32 %v1944_v16, %v1999_v2 }
0x184a   : > { %v2055_v7 = vmax.f32 %v2000_v40, %v2053_v1  ;;  %v2007_v44 = vsub.f32 %v1997_v51, %v1999_v2  ;;  %v4831_v45 = vsel %vm2050_vm8, %v2048_v3, -1e+30 }
0x184b   : > { %3412 = vpow2.f32 %v2011_v5  ;;  %v2003_v27 = vmul.f32 1.442695, %v2001_v6  ;;  %v4835_v28 = vmax.f32 %v1999_v2, %v4831_v45 }
0x184c   : > { %v2104_v12 = vld [vmem:[#allocation3 + $0x38] sm:$0xff]  ;;  %v2103_v13 = vld [vmem:[#allocation3 + $0x30] sm:$0xff]  ;;  %v1906_v59 = vpop.xlane.xlu1 %1905  ;;  %v1903_v60 = vpop.xlane.xlu0 %1902  ;;  %v2057_v49 = vsub.f32 %v2000_v40, %v2055_v7  ;;  %3414 = vpow2.f32 %v2005_v62  ;;  %v2063_v35 = vsub.f32 %v2053_v1, %v2055_v7  ;;  %v2009_v36 = vmul.f32 1.442695, %v2007_v44 }
0x184d   : > { %1931 = vst.msk [vmem:[#allocation3 + $0x58] sm:$0xff] %vm1919_vm2, %v1906_v59  ;;  %1930 = vst.msk [vmem:[#allocation3 + $0x50] sm:$0xff] %vm1919_vm2, %v1903_v60  ;;  %3416 = vpow2.f32 %v2003_v27  ;;  %v2108_v8 = vsel %vm2106_vm10, %v2104_v12, -1e+30  ;;  %v2056_v9 = vsub.f32 %v1999_v2, %v4835_v28  ;;  %v4844_v10 = vsel %vm2105_vm11, %v2103_v13, -1e+30 }
0x184e   : > { %v2060_v11 = vmul.f32 1.442695, %v2057_v49  ;;  %v2066_v16 = vmul.f32 1.442695, %v2063_v35  ;;  %v2110_v17 = vmax.f32 %v2055_v7, %v2108_v8  ;;  %3418 = vpow2.f32 %v2009_v36 }
0x184f   : > { %v2058_v18 = vmul.f32 1.442695, %v2056_v9  ;;  %v4849_v21 = vmax.f32 %v4835_v28, %v4844_v10  ;;  %v2062_v33 = vsub.f32 %v4831_v45, %v4835_v28 }
0x1850   : > { %v3405_v22 = vpop.eup %3404  ;;  %v2158_v23 = vld [vmem:[#allocation3 + $0x40] sm:$0xff]  ;;  %3420 = vpow2.f32 %v2060_v11  ;;  %v2112_v26 = vsub.f32 %v2055_v7, %v2110_v17  ;;  %v2118_v29 = vsub.f32 %v2108_v8, %v2110_v17  ;;  %v2159_v30 = vld [vmem:[#allocation3 + $0x48] sm:$0xff] }
0x1851   : > { %v3407_v34 = vpop.eup %3406  ;;  %v4855_v37 = vsel %vm2160_vm9, %v2158_v23, -1e+30  ;;  %1966 = vperm.xlu0 %3292, %v3405_v22   ;;  %v1960_v40 = vmul.f32 0.0, %v3405_v22  ;;  %3422 = vpow2.f32 %v2066_v16  ;;  %v2163_v43 = vsel %vm2161_vm12, %v2159_v30, -1e+30 }
0x1852   : > { %v3409_v50 = vpop.eup %3408  ;;  %v1958_v51 = vsel %vm1940_vm3, %v3407_v34, 0.0  ;;  %v2115_v52 = vmul.f32 1.442695, %v2112_v26  ;;  %v2121_v55 = vmul.f32 1.442695, %v2118_v29  ;;  %v2165_v56 = vmax.f32 %v2110_v17, %v2163_v43 }
0x1853   : > { %v3411_v57 = vpop.eup %3410  ;;  %1971 = vperm.xlu1 %3293, %v3409_v50   ;;  %v1962_v2 = vadd.f32 %v1960_v40, %v1958_v51  ;;  %v1961_v58 = vmul.f32 0.0, %v3409_v50  ;;  %3424 = vpow2.f32 %v2058_v18  ;;  %v2111_v61 = vsub.f32 %v4835_v28, %v4849_v21 }
0x1854   : > { %v2214_v4 = vld [vmem:[#allocation3 + $0x58] sm:$0xff]  ;;  %v1959_v62 = vsel %vm1941_vm4, %v3411_v57, 0.0  ;;  %3426 = vpow2.f32 %v2115_v52  ;;  %v2167_v3 = vsub.f32 %v2110_v17, %v2165_v56  ;;  %v4867_v1 = vmax.f32 %v4849_v21, %v4855_v37 }
0x1855   : > { %v3413_v5 = vpop.eup %3412  ;;  %v1963_v6 = vadd.f32 %v1961_v58, %v1959_v62  ;;  %3428 = vpow2.f32 %v2121_v55  ;;  %v2218_v7 = vsel %vm2216_vm13, %v2214_v4, -1e+30  ;;  %v2113_v59 = vmul.f32 1.442695, %v2111_v61 }
0x1856   : > { %v3415_v44 = vpop.eup %3414  ;;  %v4873_v45 = vsel %vm1996_vm5, %v3413_v5, 0.0  ;;  %v2170_v27 = vmul.f32 1.442695, %v2167_v3  ;;  %v4875_v28 = vmax.f32 %v2165_v56, %v2218_v7  ;;  %v2166_v60 = vsub.f32 %v4849_v21, %v4867_v1 }
0x1857   : > { %v3417_v12 = vpop.eup %3416  ;;  %1980 = vperm.xlu1 %3293, %v1958_v51   ;;  %v2016_v13 = vmul.f32 %v3415_v44, %v1963_v6  ;;  %v2173_v49 = vsub.f32 %v2163_v43, %v2165_v56  ;;  %v2064_v9 = vmul.f32 1.442695, %v2062_v33  ;;  %v2117_v33 = vsub.f32 %v4844_v10, %v4849_v21 }
0x1858   : > { %v3419_v35 = vpop.eup %3418  ;;  %3430 = vpow2.f32 %v2170_v27  ;;  %v2222_v36 = vsub.f32 %v2165_v56, %v4875_v28  ;;  %v2015_v8 = vmul.f32 %v3417_v12, %v1962_v2  ;;  %v2228_v30 = vsub.f32 %v2218_v7, %v4875_v28 }
0x1859   : > { %v2018_v11 = vadd.f32 %v2016_v13, %v4873_v45  ;;  %v2013_v16 = vsel %vm1995_vm6, %v3419_v35, 0.0  ;;  %v2176_v23 = vmul.f32 1.442695, %v2173_v49  ;;  %3432 = vpow2.f32 %v2064_v9 }
0x185a   : > { %v3421_v17 = vpop.eup %3420  ;;  %v2225_v18 = vmul.f32 1.442695, %v2222_v36  ;;  %v2017_v22 = vadd.f32 %v2015_v8, %v2013_v16  ;;  %3434 = vpow2.f32 %v2113_v59  ;;  %v2168_v40 = vmul.f32 1.442695, %v2166_v60 }
0x185b   : > { %v3423_v26 = vpop.eup %3422  ;;  %2081 = vperm.xlu0 %3292, %v3421_v17   ;;  %1985 = vperm.xlu1 %3293, %v1959_v62   ;;  %v2071_v29 = vmul.f32 %v3421_v17, %v2018_v11  ;;  %3436 = vpow2.f32 %v2176_v23  ;;  %v2231_v51 = vmul.f32 1.442695, %v2228_v30  ;;  %v2119_v52 = vmul.f32 1.442695, %v2117_v33 }
0x185c   : > { %v2069_v34 = vsel %vm2051_vm7, %v3423_v26, 0.0  ;;  %3438 = vpow2.f32 %v2225_v18  ;;  %v2172_v17 = vsub.f32 %v4855_v37, %v4867_v1  ;;  %vm2325_vm3 = vcmp.gt.s32.totalorder %v4796_v48, 7  ;;  %v3298_v48 = vld [vmem:[%s621_s25] sm:$0xff]  }
0x185d   : > { %v3425_v43 = vpop.eup %3424  ;;  %v2073_v50 = vadd.f32 %v2071_v29, %v2069_v34  ;;  %3440 = vpow2.f32 %v2231_v51  ;;  %vm2326_vm4 = vcmp.gt.s32.totalorder %v4801_v63, 7  ;;  %3147 = vmatpush3.bf16.msra.mxu1 %v3298_v48 }
0x185e   : > { %v3427_v55 = vpop.eup %3426  ;;  %v2070_v56 = vmul.f32 %v3425_v43, %v2017_v22  ;;  %3442 = vpow2.f32 %v2119_v52  ;;  %v2174_v23 = vmul.f32 1.442695, %v2172_v17  ;;  %3148 = vmatprep.subr.bf16.mxu1 %v3894_v0 }
0x185f   : > { %v3429_v57 = vpop.eup %3428  ;;  %2095 = vperm.xlu0 %3292, %v2069_v34   ;;  %2021 = vperm.xlu1 %3293, %v3417_v12   ;;  %v2126_v2 = vmul.f32 %v3427_v55, %v2073_v50  ;;  %3444 = vpow2.f32 %v2168_v40 }
0x1860   : > { %v2124_v10 = vsel %vm2106_vm10, %v3429_v57, 0.0  ;;  %3446 = vpow2.f32 %v2174_v23 }
0x1861   : > { %v2128_v21 = vadd.f32 %v2126_v2, %v2124_v10 }
0x1862   : > { %v3431_v58 = vpop.eup %3430 }
0x1863   : > { %2136 = vperm.xlu0 %3292, %v3427_v55   ;;  %2026 = vperm.xlu1 %3293, %v3415_v44   ;;  %v2181_v61 = vmul.f32 %v3431_v58, %v2128_v21  ;;  %v3433_v4 = vpop.eup %3432  ;;  %v2213_v44 = vld [vmem:[#allocation3 + $0x50] sm:$0xff] }
0x1864   : > { %v3435_v62 = vpop.eup %3434  ;;  %v2068_v3 = vsel %vm2050_vm8, %v3433_v4, 0.0  ;;  %v2217_v11 = vsel %vm2215_vm14, %v2213_v44, -1e+30 }
0x1865   : > { %v2072_v5 = vadd.f32 %v2070_v56, %v2068_v3  ;;  %v3437_v6 = vpop.eup %3436  ;;  %v2219_v22 = vmax.f32 %v4867_v1, %v2217_v11 }
0x1866   : > { %v3439_v7 = vpop.eup %3438  ;;  %v2179_v27 = vsel %vm2161_vm12, %v3437_v6, 0.0 }
0x1867   : > { %2150 = vperm.xlu0 %3292, %v2124_v10   ;;  %2035 = vperm.xlu1 %3293, %v2013_v16   ;;  %v2125_v12 = vmul.f32 %v3435_v62, %v2072_v5  ;;  %v3441_v13 = vpop.eup %3440  ;;  %v2183_v59 = vadd.f32 %v2181_v61, %v2179_v27  ;;  %v2227_v26 = vsub.f32 %v2217_v11, %v2219_v22 }
0x1868   : > { %v3443_v60 = vpop.eup %3442  ;;  %v2234_v49 = vsel %vm2216_vm13, %v3441_v13, 0.0 }
0x1869   : > { %v3445_v35 = vpop.eup %3444  ;;  %v2236_v36 = vmul.f32 %v3439_v7, %v2183_v59  ;;  %v2123_v8 = vsel %vm2105_vm11, %v3443_v60, 0.0  ;;  %v2229_v30 = vmul.f32 1.442695, %v2227_v26 }
0x186a   : > { %v2127_v9 = vadd.f32 %v2125_v12, %v2123_v8  ;;  %v3447_v37 = vpop.eup %3446 }
0x186b   : > { %2191 = vperm.xlu0 %3292, %v3431_v58   ;;  %2040 = vperm.xlu1 %3293, %v4873_v45   ;;  %v4902_v16 = vadd.f32 %v2236_v36, %v2234_v49  ;;  %v2221_v45 = vsub.f32 %v4867_v1, %v2219_v22  ;;  %v2178_v33 = vsel %vm2160_vm9, %v3447_v37, 0.0 }
0x186c   : > { %v2180_v18 = vmul.f32 %v3445_v35, %v2127_v9 }
0x186d   : > { %v2223_v29 = vmul.f32 1.442695, %v2221_v45 }
0x186f   : > { %2205 = vperm.xlu0 %3292, %v2179_v27   ;;  %2076 = vperm.xlu1 %3293, %v3425_v43   ;;  %3448 = vpow2.f32 %v2223_v29 }
0x1870   : > { %3450 = vpow2.f32 %v2229_v30 }
0x1873   : > { %2246 = vperm.xlu0 %3292, %v3439_v7   ;;  %2090 = vperm.xlu1 %3293, %v2068_v3  }
0x1877   : > { %2260 = vperm.xlu0 %3292, %v2234_v49   ;;  %2131 = vperm.xlu1 %3293, %v3435_v62   ;;  %v2182_v49 = vadd.f32 %v2180_v18, %v2178_v33 }
0x1879   : > { %v3449_v34 = vpop.eup %3448 }
0x187a   : > { %v3451_v40 = vpop.eup %3450  ;;  %v2235_v23 = vmul.f32 %v3449_v34, %v2182_v49 }
0x187b   : > { %2145 = vperm.xlu1 %3293, %v2123_v8   ;;  %v2233_v1 = vsel %vm2215_vm14, %v3451_v40, 0.0 }
0x187c   : > { %v2237_v45 = vadd.f32 %v2235_v23, %v2233_v1 }
0x187f   : > { %2186 = vperm.xlu1 %3293, %v3445_v35  }
0x1883   : > { %2200 = vperm.xlu1 %3293, %v2178_v33  }
0x1887   : > { %2241 = vperm.xlu1 %3293, %v3449_v34  }
0x188b   : > { %2255 = vperm.xlu1 %3293, %v2233_v1  }
0x18a5   : > { %v1909_v43 = vpop.xlane.xlu0 %1908 }
0x18a6   : > { %1932 = vst.msk [vmem:[#allocation3 + $0x60] sm:$0xff] %vm1919_vm2, %v1909_v43 }
0x18a7   : > { %v1912_v50 = vpop.xlane.xlu1 %1911 }
0x18a8   : > { %1933 = vst.msk [vmem:[#allocation3 + $0x68] sm:$0xff] %vm1919_vm2, %v1912_v50 }
0x18a9   : > { %v1915_v51 = vpop.xlane.xlu0 %1914 }
0x18aa   : > { %1934 = vst.msk [vmem:[#allocation3 + $0x70] sm:$0xff] %vm1919_vm2, %v1915_v51 }
0x18ab   : > { %v1918_v52 = vpop.xlane.xlu1 %1917 }
0x18ac   : > { %1935 = vst.msk [vmem:[#allocation3 + $0x78] sm:$0xff] %vm1919_vm2, %v1918_v52 }
0x18ad   : > { %v2268_v55 = vld [vmem:[#allocation3 + $0x60] sm:$0xff] }
0x18ae   : > { %v2272_v56 = vsel %vm2270_vm15, %v2268_v55, -1e+30 }
0x18af   : > { %v2274_v57 = vmax.f32 %v2219_v22, %v2272_v56  ;;  %v2269_v2 = vld [vmem:[#allocation3 + $0x68] sm:$0xff] }
0x18b0   : > { %v2273_v10 = vsel %vm2271_vm0, %v2269_v2, -1e+30 }
0x18b1   : > { %v2276_v21 = vsub.f32 %v2219_v22, %v2274_v57  ;;  %v2275_v58 = vmax.f32 %v4875_v28, %v2273_v10  ;;  %v2323_v61 = vld [vmem:[#allocation3 + $0x70] sm:$0xff]  ;;  %v2282_v4 = vsub.f32 %v2272_v56, %v2274_v57 }
0x18b2   : > { %v2327_v62 = vsel %vm2325_vm3, %v2323_v61, -1e+30 }
0x18b3   : > { %v2277_v3 = vsub.f32 %v4875_v28, %v2275_v58  ;;  %v2329_v5 = vmax.f32 %v2274_v57, %v2327_v62  ;;  %v2324_v6 = vld [vmem:[#allocation3 + $0x78] sm:$0xff]  ;;  %v2278_v7 = vmul.f32 1.442695, %v2276_v21  ;;  %v2284_v27 = vmul.f32 1.442695, %v2282_v4 }
0x18b4   : > { %v2328_v12 = vsel %vm2326_vm4, %v2324_v6, -1e+30  ;;  %v2283_v13 = vsub.f32 %v2273_v10, %v2275_v58 }
0x18b5   : > { %v2331_v59 = vsub.f32 %v2274_v57, %v2329_v5  ;;  %v2330_v60 = vmax.f32 %v2275_v58, %v2328_v12  ;;  %3452 = vpow2.f32 %v2278_v7  ;;  %v2280_v44 = vmul.f32 1.442695, %v2277_v3  ;;  %v3300_v3 = vld [vmem:[%s4418_s18] sm:$0xff]  }
0x18b6   : > { %3454 = vpow2.f32 %v2284_v27  ;;  %v2286_v35 = vmul.f32 1.442695, %v2283_v13  ;;  %v2337_v36 = vsub.f32 %v2327_v62, %v2329_v5  ;;  %v3299_v62 = vld [vmem:[%s621_s25 + $0x8] sm:$0xff]   ;;  %3155 = vmatpush3.bf16.msra.mxu0 %v3300_v3 }
0x18b7   : > { %v2333_v8 = vmul.f32 1.442695, %v2331_v59  ;;  %v2332_v9 = vsub.f32 %v2275_v58, %v2330_v60  ;;  %3456 = vpow2.f32 %v2280_v44  ;;  %v2338_v28 = vsub.f32 %v2328_v12, %v2330_v60  ;;  %3149 = vmatpush3.bf16.msra.mxu1 %v3299_v62  ;;  %3156 = vmatprep.subr.bf16.mxu0 %v3894_v0 }
0x18b8   : > { %3458 = vpow2.f32 %v2286_v35  ;;  %v2339_v11 = vmul.f32 1.442695, %v2337_v36 }
0x18b9   : > { %3460 = vpow2.f32 %v2333_v8  ;;  %v2335_v17 = vmul.f32 1.442695, %v2332_v9  ;;  %v2341_v22 = vmul.f32 1.442695, %v2338_v28 }
0x18ba   : > { %3462 = vpow2.f32 %v2339_v11 }
0x18bb   : > { %3464 = vpow2.f32 %v2335_v17 }
0x18bc   : > { %3466 = vpow2.f32 %v2341_v22 }
0x18bf   : > { %v3453_v26 = vpop.eup %3452 }
0x18c0   : > { %v3455_v29 = vpop.eup %3454  ;;  %2296 = vperm.xlu1 %3293, %v3453_v26   ;;  %v2290_v18 = vmul.f32 %v3453_v26, %v2237_v45 }
0x18c1   : > { %v3457_v30 = vpop.eup %3456  ;;  %v2288_v37 = vsel %vm2270_vm15, %v3455_v29, 0.0 }
0x18c2   : > { %v3459_v33 = vpop.eup %3458  ;;  %2301 = vperm.xlu0 %3292, %v3457_v30   ;;  %v2292_v40 = vadd.f32 %v2290_v18, %v2288_v37  ;;  %v2291_v43 = vmul.f32 %v3457_v30, %v4902_v16 }
0x18c3   : > { %v3461_v50 = vpop.eup %3460  ;;  %v2289_v34 = vsel %vm2271_vm0, %v3459_v33, 0.0 }
0x18c4   : > { %v3463_v51 = vpop.eup %3462  ;;  %2310 = vperm.xlu1 %3293, %v2288_v37   ;;  %v2293_v1 = vadd.f32 %v2291_v43, %v2289_v34  ;;  %v2345_v52 = vmul.f32 %v3461_v50, %v2292_v40 }
0x18c5   : > { %v3465_v55 = vpop.eup %3464  ;;  %v2343_v56 = vsel %vm2325_vm3, %v3463_v51, 0.0 }
0x18c6   : > { %v3467_v57 = vpop.eup %3466  ;;  %2315 = vperm.xlu0 %3292, %v2289_v34   ;;  %v2347_v2 = vadd.f32 %v2345_v52, %v2343_v56  ;;  %v2346_v10 = vmul.f32 %v3465_v55, %v2293_v1 }
0x18c7   : > { %v2344_v16 = vsel %vm2326_vm4, %v3467_v57, 0.0 }
0x18c8   : > { %2351 = vperm.xlu1 %3293, %v3461_v50   ;;  %v2377_v21 = vmax.f32 %v2347_v2, 1e-20  ;;  %v2348_v58 = vadd.f32 %v2346_v10, %v2344_v16 }
0x18ca   : > { %2356 = vperm.xlu0 %3292, %v3465_v55   ;;  %3468 = vrcp.f32 %v2377_v21  ;;  %v2378_v61 = vmax.f32 %v2348_v58, 1e-20 }
0x18cc   : > { %2365 = vperm.xlu1 %3293, %v2343_v56   ;;  %3470 = vrcp.f32 %v2378_v61 }
0x18ce   : > { %2370 = vperm.xlu0 %3292, %v2344_v16  }
0x18d0   : > { %v1967_v60 = vpop.permute.xlu0 %1966 }
0x18d1   : > { %v1974_v33 = vmul.f32 0.0, %v1967_v60 }
0x18d2   : > { %v1972_v5 = vpop.permute.xlu1 %1971 }
0x18d3   : > { %v1975_v17 = vmul.f32 0.0, %v1972_v5 }
0x18d4   : > { %v3469_v4 = vpop.eup %3468 }
0x18d5   : > { %2383 = vperm.xlu1 %3293, %v3469_v4  }
0x18d6   : > { %v3471_v63 = vpop.eup %3470  ;;  %v1981_v6 = vpop.permute.xlu1 %1980 }
0x18d7   : > { %2388 = vperm.xlu0 %3292, %v3471_v63   ;;  %v1988_v37 = vmul.f32 %v1981_v6, %v4687_v14 }
0x18d9   : > { %v1990_v50 = vadd.f32 %v1988_v37, %v1974_v33  ;;  %v3301_v37 = vld [vmem:[%s4418_s18 + $0x8] sm:$0xff]   ;;  %v3304_v33 = vld [vmem:[%s4418_s18 + $0x20] sm:$0xff]  }
0x18da   : > { %v1986_v7 = vpop.permute.xlu1 %1985  ;;  %v2082_v49 = vpop.permute.xlu0 %2081  ;;  %3157 = vmatpush3.bf16.msra.mxu0 %v3301_v37 }
0x18db   : > { %v1989_v28 = vmul.f32 %v1986_v7, %v4689_v15  ;;  %3158 = vmatprep.subr.bf16.mxu0 %v3894_v0 }
0x18dd   : > { %v1991_v23 = vadd.f32 %v1989_v28, %v1975_v17 }
0x18de   : > { %v2022_v27 = vpop.permute.xlu1 %2021  ;;  %v2096_v36 = vpop.permute.xlu0 %2095 }
0x18df   : > { %v2099_v34 = vmul.f32 %v2096_v36, %v4707_v25  ;;  %v2029_v1 = vmul.f32 %v2022_v27, %v1990_v50  ;;  %v3307_v50 = vld [vmem:[%s4418_s18 + $0x38] sm:$0xff]  }
0x18e2   : > { %v2027_v12 = vpop.permute.xlu1 %2026  ;;  %v2137_v9 = vpop.permute.xlu0 %2136 }
0x18e3   : > { %v2030_v26 = vmul.f32 %v2027_v12, %v1991_v23 }
0x18e6   : > { %v2036_v13 = vpop.permute.xlu1 %2035  ;;  %v2151_v22 = vpop.permute.xlu0 %2150 }
0x18e7   : > { %v2043_v15 = vmul.f32 %v2036_v13, %v4696_v19  ;;  %v2154_v14 = vmul.f32 %v2151_v22, %v4716_v32 }
0x18e9   : > { %v2045_v55 = vadd.f32 %v2043_v15, %v2029_v1 }
0x18ea   : > { %v2041_v59 = vpop.permute.xlu1 %2040  ;;  %v2192_v30 = vpop.permute.xlu0 %2191 }
0x18eb   : > { %v2044_v45 = vmul.f32 %v2041_v59, %v4698_v20 }
0x18ed   : > { %v2046_v18 = vadd.f32 %v2044_v45, %v2030_v26 }
0x18ee   : > { %v2077_v44 = vpop.permute.xlu1 %2076  ;;  %v2206_v51 = vpop.permute.xlu0 %2205 }
0x18ef   : > { %v2085_v40 = vmul.f32 %v2082_v49, %v2046_v18  ;;  %v2084_v2 = vmul.f32 %v2077_v44, %v2045_v55  ;;  %v2209_v62 = vmul.f32 %v2206_v51, %v4725_v39 }
0x18f1   : > { %v2101_v52 = vadd.f32 %v2099_v34, %v2085_v40  ;;  %v3305_v40 = vld [vmem:[%s4418_s18 + $0x28] sm:$0xff]   ;;  %v2952_v34 = vld [vmem:[%s629_s19] ss:$0 sm:$0xff] }
0x18f2   : > { %v2091_v35 = vpop.permute.xlu1 %2090  ;;  %v2247_v10 = vpop.permute.xlu0 %2246 }
0x18f3   : > { %v2098_v20 = vmul.f32 %v2091_v35, %v4705_v24  ;;  %v2140_v57 = vmul.f32 %v2137_v9, %v2101_v52 }
0x18f5   : > { %v2100_v16 = vadd.f32 %v2098_v20, %v2084_v2  ;;  %v2156_v21 = vadd.f32 %v2154_v14, %v2140_v57 }
0x18f6   : > { %v2132_v8 = vpop.permute.xlu1 %2131  ;;  %v2261_v48 = vpop.permute.xlu0 %2260 }
0x18f7   : > { %v2139_v25 = vmul.f32 %v2132_v8, %v2100_v16  ;;  %v2195_v19 = vmul.f32 %v2192_v30, %v2156_v21  ;;  %v2264_v59 = vmul.f32 %v2261_v48, %v4733_v42 }
0x18f9   : > { %v2211_v5 = vadd.f32 %v2209_v62, %v2195_v19 }
0x18fa   : > { %v2146_v11 = vpop.permute.xlu1 %2145 }
0x18fb   : > { %v2153_v58 = vmul.f32 %v2146_v11, %v4714_v31  ;;  %v2250_v12 = vmul.f32 %v2247_v10, %v2211_v5 }
0x18fd   : > { %v2155_v4 = vadd.f32 %v2153_v58, %v2139_v25  ;;  %v2266_v35 = vadd.f32 %v2264_v59, %v2250_v12 }
0x18fe   : > { %v2187_v29 = vpop.permute.xlu1 %2186 }
0x18ff   : > { %v2194_v6 = vmul.f32 %v2187_v29, %v2155_v4 }
0x1902   : > { %v2201_v43 = vpop.permute.xlu1 %2200 }
0x1903   : > { %v2208_v24 = vmul.f32 %v2201_v43, %v4723_v38  ;;  %v3306_v43 = vld [vmem:[%s4418_s18 + $0x30] sm:$0xff]  }
0x1905   : > { %v2210_v27 = vadd.f32 %v2208_v24, %v2194_v6  ;;  %v2956_v6 = vld [vmem:[%s646_s22] ss:$0 sm:$0xff] }
0x1906   : > { %v2242_v56 = vpop.permute.xlu1 %2241 }
0x1907   : > { %v2249_v60 = vmul.f32 %v2242_v56, %v2210_v27 }
0x190a   : > { %v2256_v61 = vpop.permute.xlu1 %2255 }
0x190b   : > { %v2263_v13 = vmul.f32 %v2256_v61, %v4731_v41 }
0x190d   : > { %v2265_v49 = vadd.f32 %v2263_v13, %v2249_v60 }
0x193f   : > { %v2297_v63 = vpop.permute.xlu1 %2296 }
0x1940   : > { %v2304_v36 = vmul.f32 %v2297_v63, %v2265_v49 }
0x1941   : > { %v2302_v3 = vpop.permute.xlu0 %2301 }
0x1942   : > { %v2305_v8 = vmul.f32 %v2302_v3, %v2266_v35 }
0x1943   : > { %v2311_v7 = vpop.permute.xlu1 %2310 }
0x1944   : > { %v2318_v39 = vmul.f32 %v2311_v7, %v4738_v46 }
0x1945   : > { %v2316_v32 = vpop.permute.xlu0 %2315 }
0x1946   : > { %v2319_v38 = vmul.f32 %v2316_v32, %v4740_v47  ;;  %v2320_v11 = vadd.f32 %v2318_v39, %v2304_v36 }
0x1947   : > { %v2352_v31 = vpop.permute.xlu1 %2351 }
0x1948   : > { %v2321_v17 = vadd.f32 %v2319_v38, %v2305_v8  ;;  %v2359_v22 = vmul.f32 %v2352_v31, %v2320_v11 }
0x1949   : > { %v2357_v44 = vpop.permute.xlu0 %2356 }
0x194a   : > { %v2360_v23 = vmul.f32 %v2357_v44, %v2321_v17 }
0x194b   : > { %v2366_v9 = vpop.permute.xlu1 %2365 }
0x194c   : > { %v2373_v41 = vmul.f32 %v2366_v9, %v4747_v53  ;;  %v3302_v53 = vld [vmem:[%s4418_s18 + $0x10] sm:$0xff]  }
0x194d   : > { %v2371_v28 = vpop.permute.xlu0 %2370  ;;  %3159 = vmatpush3.bf16.msra.mxu0 %v3302_v53 }
0x194e   : > { %v2374_v42 = vmul.f32 %v2371_v28, %v4749_v54  ;;  %v2375_v26 = vadd.f32 %v2373_v41, %v2359_v22  ;;  %3160 = vmatprep.subr.bf16.mxu0 %v3894_v0  ;;  %v3303_v54 = vld [vmem:[%s4418_s18 + $0x18] sm:$0xff]  }
0x1950   : > { %v2376_v46 = vadd.f32 %v2374_v42, %v2360_v23 }
0x1951   : > { %3161 = vmatpush3.bf16.msra.mxu0 %v3303_v54 }
0x1952   : > { %3162 = vmatprep.subr.bf16.mxu0 %v3894_v0 }
0x1954   : > { %v2384_v45 = vpop.permute.xlu1 %2383 }
0x1955   : > { %v2391_v29 = vmul.f32 %v2384_v45, %v2375_v26  ;;  %3163 = vmatpush3.bf16.msra.mxu0 %v3304_v33 }
0x1956   : > { %v2389_v47 = vpop.permute.xlu0 %2388  ;;  %3164 = vmatprep.subr.bf16.mxu0 %v3894_v0 }
0x1957   : > { %v2392_v18 = vmul.f32 %v2389_v47, %v2376_v46 }
0x1959   : > { %v2393_v30 = vpack.c.bf16 %v2392_v18, %v2391_v29  ;;  %3165 = vmatpush3.bf16.msra.mxu0 %v3305_v40 }
0x195a   : > { %3166 = vmatprep.subr.bf16.mxu0 %v3894_v0 }
0x195b   : > { %3151 = vmatmul.mubr.msk.bf16.vlgmr.msra.gmra.mrb[24].mxu1 %vm746_vm1, %v2393_v30 }
0x195d   : > { %3167 = vmatpush3.bf16.msra.mxu0 %v3306_v43 }
0x195e   : > { %3168 = vmatprep.subr.bf16.mxu0 %v3894_v0 }
0x1961   : > { %3169 = vmatpush3.bf16.msra.mxu0 %v3307_v50 }
0x1a2e   : > { %v2454_v15 = vpop.f32.mrb[24].mxu1 }
0x1a2f   : > { %v2455_v51 = vadd.f32 %v2952_v34, %v2454_v15  ;;  %v3152_v1 = vpop.f32.mrb[25].mxu1 }
0x1a30   : > { %v2457_v52 = vpop.f32.mrb[26].mxu1 }
0x1a31   : > { %v2465_v55 = vmul.f32 0.044715, %v2455_v51  ;;  %v2458_v20 = vadd.f32 %v2952_v34, %v2457_v52  ;;  %v3153_v56 = vpop.f32.mrb[27].mxu1  ;;  %v2463_v10 = vmul.f32 0.7978846, %v2455_v51  ;;  %v2461_v4 = vmul.f32 0.5, %v2455_v51 }
0x1a33   : > { %v2467_v57 = vmul.f32 %v2465_v55, %v2455_v51  ;;  %v2466_v2 = vmul.f32 0.044715, %v2458_v20  ;;  %v2464_v58 = vmul.f32 0.7978846, %v2458_v20  ;;  %v2462_v63 = vmul.f32 0.5, %v2458_v20 }
0x1a35   : > { %v2469_v14 = vadd.f32 1.0, %v2467_v57  ;;  %v2468_v16 = vmul.f32 %v2466_v2, %v2458_v20 }
0x1a37   : > { %v2471_v21 = vmul.f32 %v2469_v14, %v2463_v10  ;;  %v2470_v0 = vadd.f32 1.0, %v2468_v16 }
0x1a39   : > { %3472 = vtanh.f32 %v2471_v21  ;;  %v2472_v61 = vmul.f32 %v2470_v0, %v2464_v58 }
0x1a3b   : > { %3474 = vtanh.f32 %v2472_v61 }
0x1a43   : > { %v3473_v25 = vpop.eup %3472 }
0x1a44   : > { %v2475_v48 = vadd.f32 1.0, %v3473_v25 }
0x1a45   : > { %v3475_v19 = vpop.eup %3474 }
0x1a46   : > { %v2476_v62 = vadd.f32 1.0, %v3475_v19  ;;  %v2477_v24 = vmul.f32 %v2475_v48, %v2461_v4 }
0x1a48   : > { %v2478_v3 = vmul.f32 %v2476_v62, %v2462_v63 }
0x1a4a   : > { %v2479_v5 = vpack.c.bf16 %v2478_v3, %v2477_v24 }
0x1a4c   : > { %3171 = vmatmul.mubr.bf16.vlgmr.msra.gmra.mrb[24].mxu0 %v2479_v5 }
0x1b1f   : > { %v2585_v7 = vpop.f32.mrb[24].mxu0 }
0x1b20   : > { %v2586_v27 = vadd.f32 %v2956_v6, %v2585_v7  ;;  %v3172_v32 = vpop.f32.mrb[25].mxu0 }
0x1b21   : > { %v2588_v12 = vpop.f32.mrb[26].mxu0 }
0x1b22   : > { %2592 = vst.msk [vmem:[%s723_s10] sm:$0xff] %vm746_vm1, %v2586_v27  ;;  %v2589_v13 = vadd.f32 %v2956_v6, %v2588_v12  ;;  %v3173_v31 = vpop.f32.mrb[27].mxu0 }
0x1b24   : > { %2593 = vst.msk [vmem:[%s723_s10 + $0x8] sm:$0xff] %vm746_vm1, %v2589_v13 }
0x1b25   : > { %3789 = shalt.err (!%p3786_p13)
}
0x1b26   : > { %s3790_s26 = scalar_lea.hbm %s4987_s20, 256  ;;  %s3794_s17 = scalar_lea.hbm %s5119_s7, 768 }
0x1b27   : > { %p3791_p8 = scmp.ne.s32.totalorder %s4987_s20, %s3790_s26  ;;  %p3795_p7 = scmp.lt.u32.totalorder %s4987_s20, %s5119_s7 }
0x1b28   : > { %p3796_p3 = scmp.lt.u32.totalorder %s3794_s17, %s3790_s26  ;;  %p3798_p5 = scmp.lt.u32.totalorder %s3790_s26, %s4987_s20 }
0x1b29   : > { %p3792_p12 = pnand %p3791_p8, %p5120_p4 }
0x1b2a   : > { %p3797_p1 = por %p3796_p3, %p3795_p7 }
0x1b2b   : > { %p3793_p2 = pneg %p3792_p12 }
0x1b2c   : > { %p3799_p11 = por %p3798_p5, %p3797_p1 }
0x1b2e   : > { %p3800_p6 = pnand %p3799_p11, %p3793_p2 }
0x1b30   : > { %3803 = shalt.err (!%p3800_p6)
}
0x1b31   : > { %s3900_s27 = smov 128   ;;  %s3901_s22 = smov 8  }
0x1b32   : > { %3194 = dma.vmem_to_hbm [thread:$0]  (%p5120_p4), %s4982_s28, 256, %s4987_s20, %s2595_s3, %s3900_s27, %s3900_s27, %s3901_s22  }
0x1b33 PF: > { %s5121_s29 = sld [smem:[#allocation33_spill]]  ;;  %s5122_s16 = sld [smem:[#allocation29_spill]] }
0x1b34   : > { %s5123_s0 = sld [smem:[#allocation39_spill]] }
0x1b39   : > { %p3232_p9 = scmp.ge.s32.totalorder %s5121_s29, 2  ;;  %s2625_s10 = sand.u32 1, %s5122_s16  }
0x1b3a   : > { %p5124_p10 = scmp.ne.s32.totalorder %s5123_s0, 0  ;;  %s2626_s24 = scalar_lea.sflag [#allocation6], %s2625_s10 }
0x1b3c   : > { %p3228_p0 = pnand %p3232_p9, %p5124_p10 }
0x1b3e   : > { %3853 = dma.done.wait (!%p3228_p0), %s2626_s24, 256  }
0x1b3f   : > { %3855 = vsyncadd (!%p3228_p0), %s2626_s24, 4294967040  ;;  %s41_s18 = sadd.s32 1, %s5121_s29   ;;  %s5125_s5 = sld [smem:[#allocation30_spill]] }
0x1b40   : > { %p38_p13 = scmp.ge.s32.totalorder %s41_s18, 5   ;;  %s5126_s15 = sld [smem:[#allocation38_spill]] }
0x1b41   : > { %s5127_s16 = sld [smem:[#allocation32_spill]]  ;;  %s5128_s17 = sld [smem:[#allocation35_spill]] }
0x1b42   : > { %s5129_s13 = smov %s3862_s14  ;;  %40 = sbr.rel (!%p38_p13) target bundleno = 24 (0x18), region = 235 }
0x1b45   : > { %s5130_s14 = smov %s5125_s5 }
0x1b49   :  { %2631 = vsyncpa [#allocation5], 1 }
0x1b4a   :  { %2633 = vsyncpa [#allocation5 + $0x1], 1 }
0x1b4b   :  { %2634 = vsyncpa [#allocation8], 1 }
0x1b4c   :  { %2636 = vsyncpa [#allocation8 + $0x1], 1 }
0x1b4d   :  { %2637 = vsyncpa [#allocation11], 1 }
0x1b4e   :  { %2639 = vsyncpa [#allocation11 + $0x1], 1 }
0x1b4f   :  { %2640 = vsyncpa [#allocation14], 1 }
0x1b50   :  { %2642 = vsyncpa [#allocation14 + $0x1], 1 }
0x1b51   :  { %2643 = vsyncpa [#allocation17], 1 }
0x1b52   :  { %2645 = vsyncpa [#allocation17 + $0x1], 1 }
0x1b53   :  { %2646 = vsyncpa [#allocation20], 1 }
0x1b54   :  { %2648 = vsyncpa [#allocation20 + $0x1], 1 }
0x1b55   :  { %2649 = vsyncpa [#allocation6], 1 }
0x1b56   :  { %2651 = vsyncpa [#allocation6 + $0x1], 1 }

</bundles_post_ra>
